<compile_context>
chip_gen: v7x
topology: tpu7x:2x2x1
jax: 0.10.0
libtpu: 0.0.40
codegen_flags: <defaults>
</compile_context>

<pallas_src>
import functools

import jax
import jax.numpy as jnp
import numpy as np
from jax.experimental import pallas as pl
from jax.experimental.pallas import tpu as pltpu

_JOINTS = 24          # fixed by the module: x.view(B, T, 24, 6)
_IN_CH = 6


# ----------------------------------------------------------------------------
# Fused encoder kernel (one grid step == one batch element)
# ----------------------------------------------------------------------------
def _encoder_kernel(*refs, num_res_layers, H1, H2, Cc):
    (xe_ref, xo_ref, b_ref, w1_ref, w2_ref, w3_ref) = refs[:6]
    res_refs = refs[6:6 + 2 * num_res_layers]
    o_ref = refs[6 + 2 * num_res_layers]
    h1_ref, e2_ref, o2_ref, pad_ref = refs[6 + 2 * num_res_layers + 1:]

    def mm(a, b):
        return jnp.dot(a, b, preferred_element_type=jnp.float32)

    # ---- conv1: 4x4, stride 2, pad 1, + bias + ReLU ------------------------
    # xe/xo hold even/odd rows of the zero-H-padded input (prepared in glue), so
    # the four H-taps of the stride-2 conv are contiguous row slices.
    h1 = (mm(xe_ref[0:H1, :], w1_ref[0]) + mm(xo_ref[0:H1, :], w1_ref[1]) +
          mm(xe_ref[1:H1 + 1, :], w1_ref[2]) + mm(xo_ref[1:H1 + 1, :], w1_ref[3]) +
          b_ref[0:1, :])
    h1 = jnp.maximum(h1, 0.0)
    h1_ref[...] = h1

    # ---- even/odd split of the (zero-H-padded) conv1 output for conv2 ------
    zrow = jnp.zeros((1, Cc), jnp.float32)
    e2_ref[0:1, :] = zrow                               # h1_pad[0] = 0
    for k in range(1, H2 + 1):                          # e2[k] = h1_pad[2k] = h1[2k-1]
        e2_ref[k:k + 1, :] = h1_ref[2 * k - 1:2 * k, :]
    for k in range(H2):                                 # o2[k] = h1_pad[2k+1] = h1[2k]
        o2_ref[k:k + 1, :] = h1_ref[2 * k:2 * k + 1, :]
    o2_ref[H2:H2 + 1, :] = zrow                         # h1_pad[H1+1] = 0

    # ---- conv2: 4x4, stride 2, pad 1, + bias + ReLU ------------------------
    h2 = (mm(e2_ref[0:H2, :], w2_ref[0]) + mm(o2_ref[0:H2, :], w2_ref[1]) +
          mm(e2_ref[1:H2 + 1, :], w2_ref[2]) + mm(o2_ref[1:H2 + 1, :], w2_ref[3]) +
          b_ref[1:2, :])
    h2 = jnp.maximum(h2, 0.0)

    # ---- zero-padded row buffer shared by every 3x3 stride-1 conv ----------
    pad_ref[...] = jnp.zeros((H2 + 2, Cc), jnp.float32)
    pad_ref[1:H2 + 1, :] = h2

    # ---- conv3: 3x3, stride 1, pad 1, + bias (no ReLU) ---------------------
    h = (mm(pad_ref[0:H2, :], w3_ref[0]) + mm(pad_ref[1:H2 + 1, :], w3_ref[1]) +
         mm(pad_ref[2:H2 + 2, :], w3_ref[2]) + b_ref[2:3, :])

    # ---- residual stack (each layer fully fused, intermediate stays on-chip)
    for l in range(num_res_layers):
        wr1_ref = res_refs[2 * l]
        wr2_ref = res_refs[2 * l + 1]
        pad_ref[1:H2 + 1, :] = h                        # rows 0 / H2+1 stay zero
        t = (mm(pad_ref[0:H2, :], wr1_ref[0]) + mm(pad_ref[1:H2 + 1, :], wr1_ref[1]) +
             mm(pad_ref[2:H2 + 2, :], wr1_ref[2]))
        t = jnp.maximum(t, 0.0)                         # ReLU after 3x3 (no bias)
        h = jnp.maximum(mm(t, wr2_ref[...]) + h, 0.0)   # 1x1 conv + residual + ReLU
    if num_res_layers == 0:
        h = jnp.maximum(h, 0.0)                         # ResidualStack trailing ReLU

    o_ref[...] = h


# ----------------------------------------------------------------------------
# Forward wrapper (single pallas_call; glue = pad + 2 slices + final reshape)
# ----------------------------------------------------------------------------
@functools.partial(jax.jit, static_argnums=(2, 3))
def encoder_forward(x, weights, num_hiddens, num_residual_layers):
    """x: (B, T, 144) f32 -> (B, num_hiddens, T//4, 6) (NCHW, as in PyTorch)."""
    B, T, D = x.shape
    assert D == _JOINTS * _IN_CH, "Encoder expects D == 24*6"
    assert T % 4 == 0, "fused kernel assumes T divisible by 4 (two stride-2 convs)"
    nh = num_hiddens
    L = num_residual_layers
    H1, H2 = T // 2, T // 4
    Cc = 6 * nh                         # == 12*(nh//2): hidden-layer column width

    # H-direction zero pad (pad=1) + even/odd row split for the stride-2 conv1.
    xpad = jnp.pad(x, ((0, 0), (1, 1), (0, 0)))
    xe = xpad[:, 0::2, :]               # (B, H1+1, 144)
    xo = xpad[:, 1::2, :]               # (B, H1+1, 144)

    ins = [xe, xo, weights['bias'], weights['w1'], weights['w2'], weights['w3']]
    in_specs = [
        pl.BlockSpec((None, H1 + 1, _JOINTS * _IN_CH), lambda b: (b, 0, 0)),
        pl.BlockSpec((None, H1 + 1, _JOINTS * _IN_CH), lambda b: (b, 0, 0)),
        pl.BlockSpec(weights['bias'].shape, lambda b: (0, 0)),
        pl.BlockSpec(weights['w1'].shape, lambda b: (0, 0, 0)),
        pl.BlockSpec(weights['w2'].shape, lambda b: (0, 0, 0)),
        pl.BlockSpec(weights['w3'].shape, lambda b: (0, 0, 0)),
    ]
    for (wr1, wr2) in weights['res']:
        ins += [wr1, wr2]
        in_specs += [pl.BlockSpec(wr1.shape, lambda b: (0, 0, 0)),
                     pl.BlockSpec(wr2.shape, lambda b: (0, 0))]

    kernel = functools.partial(_encoder_kernel, num_res_layers=L,
                               H1=H1, H2=H2, Cc=Cc)
    out2d = pl.pallas_call(
        kernel,
        out_shape=jax.ShapeDtypeStruct((B, H2, Cc), jnp.float32),
        grid=(B,),
        in_specs=in_specs,
        out_specs=pl.BlockSpec((None, H2, Cc), lambda b: (b, 0, 0)),
        scratch_shapes=[pltpu.VMEM((H1, Cc), jnp.float32),       # conv1 output rows
                        pltpu.VMEM((H2 + 1, Cc), jnp.float32),   # even rows for conv2
                        pltpu.VMEM((H2 + 1, Cc), jnp.float32),   # odd rows for conv2
                        pltpu.VMEM((H2 + 2, Cc), jnp.float32)],  # padded 3x3 input
        compiler_params=pltpu.CompilerParams(dimension_semantics=("parallel",)),
    )(*ins)

    # (B, T//4, 6*nh) -> NCHW (B, nh, T//4, 6)
    return out2d.reshape(B, H2, 6, nh).transpose(0, 3, 1, 2)


# ----------------------------------------------------------------------------
# Parameters: dense init (PyTorch-default-style) + one-time kernel weight prep
# ----------------------------------------------------------------------------
def _conv_init(key, kh, kw, cin, cout, with_bias=True):
    fan_in = cin * kh * kw
    bound = 1.0 / np.sqrt(fan_in)
    k1, k2 = jax.random.split(key)
    w = jax.random.uniform(k1, (kh, kw, cin, cout), jnp.float32, -bound, bound)
    b = jax.random.uniform(k2, (cout,), jnp.float32, -bound, bound) if with_bias else None
    return w, b


def init_encoder_params(key, in_channels, num_hiddens, num_residual_layers,
                        num_residual_hiddens):
    keys = jax.random.split(key, 3 + 2 * max(num_residual_layers, 1))
    params = {
        'conv1': _conv_init(keys[0], 4, 4, in_channels, num_hiddens // 2),
        'conv2': _conv_init(keys[1], 4, 4, num_hiddens // 2, num_hiddens),
        'conv3': _conv_init(keys[2], 3, 3, num_hiddens, num_hiddens),
        'residual': [],
    }
    for l in range(num_residual_layers):
        w1, _ = _conv_init(keys[3 + 2 * l], 3, 3, num_hiddens,
                           num_residual_hiddens, with_bias=False)
        w2, _ = _conv_init(keys[4 + 2 * l], 1, 1, num_residual_hiddens,
                           num_hiddens, with_bias=False)
        params['residual'].append((w1, w2))
    return params


def _band_w(w_hwio, w_in, w_out, stride, pad):
    """Fold the W-direction conv structure into per-H-tap banded matrices.

    Returns (kh, w_in*Cin, w_out*Cout): for H-tap di,
      out[:, wo*Cout+co] += act[:, wi*Cin+ci] * w[di, wi-(stride*wo-pad), ci, co].
    """
    w = np.asarray(w_hwio, np.float32)
    kh, kw, cin, cout = w.shape
    bw = np.zeros((kh, w_in * cin, w_out * cout), np.float32)
    for di in range(kh):
        for wo in range(w_out):
            for dj in range(kw):
                wi = stride * wo - pad + dj
                if 0 <= wi < w_in:
                    bw[di, wi * cin:(wi + 1) * cin,
                       wo * cout:(wo + 1) * cout] = w[di, dj]
    return jnp.asarray(bw)


def prepare_kernel_params(dense_params, num_hiddens):
    """One-time weight prep (banding + bias tiling) — hoisted out of the forward."""
    assert num_hiddens % 2 == 0
    (w1, b1) = dense_params['conv1']
    (w2, b2) = dense_params['conv2']
    (w3, b3) = dense_params['conv3']
    bias = np.stack([np.tile(np.asarray(b1, np.float32), 12),   # conv1: W_out=12
                     np.tile(np.asarray(b2, np.float32), 6),    # conv2: W_out=6
                     np.tile(np.asarray(b3, np.float32), 6)], axis=0)
    return {
        'w1': _band_w(w1, 24, 12, 2, 1),        # (4, 144,   6*nh)
        'w2': _band_w(w2, 12, 6, 2, 1),         # (4, 6*nh,  6*nh)
        'w3': _band_w(w3, 6, 6, 1, 1),          # (3, 6*nh,  6*nh)
        'bias': jnp.asarray(bias),              # (3, 6*nh)
        'res': [(_band_w(wr1, 6, 6, 1, 1),      # (3, 6*nh,  6*nrh)
                 _band_w(wr2, 6, 6, 1, 0)[0])   # (6*nrh, 6*nh)  (1x1 conv)
                for (wr1, wr2) in dense_params['residual']],
    }


# ----------------------------------------------------------------------------
# Pure-JAX reference (lax.conv) for correctness verification
# ----------------------------------------------------------------------------
def _ref_conv(x, w, b, stride, padding):
    out = jax.lax.conv_general_dilated(
        x, w, window_strides=(stride, stride),
        padding=((padding, padding), (padding, padding)),
        dimension_numbers=('NHWC', 'HWIO', 'NHWC'))
    return out if b is None else out + b


def reference_forward(x, params):
    B, T, D = x.shape
    h = x.reshape(B, T, 24, 6)
    w1, b1 = params['conv1']; h = jax.nn.relu(_ref_conv(h, w1, b1, 2, 1))
    w2, b2 = params['conv2']; h = jax.nn.relu(_ref_conv(h, w2, b2, 2, 1))
    w3, b3 = params['conv3']; h = _ref_conv(h, w3, b3, 1, 1)
    for (wr1, wr2) in params['residual']:
        t = jax.nn.relu(_ref_conv(h, wr1, None, 1, 1))
        h = jax.nn.relu(_ref_conv(t, wr2, None, 1, 0) + h)
    h = jax.nn.relu(h)                                  # ResidualStack trailing ReLU
    return jnp.transpose(h, (0, 3, 1, 2))


if __name__ == "__main__":
    key = jax.random.PRNGKey(0)
    kx, kp_key = jax.random.split(key)

    B, T, D = 2, 16, 144                     # D fixed to 24*6 by the module
    num_hiddens, num_residual_layers, num_residual_hiddens = 32, 2, 8

    x = jax.random.normal(kx, (B, T, D), jnp.float32)
    dense = init_encoder_params(kp_key, _IN_CH, num_hiddens,
                                num_residual_layers, num_residual_hiddens)
    kweights = prepare_kernel_params(dense, num_hiddens)

    out = jax.block_until_ready(
        encoder_forward(x, kweights, num_hiddens, num_residual_layers))
    assert out.shape == (B, num_hiddens, T // 4, _JOINTS // 4), out.shape

    ref = jax.block_until_ready(reference_forward(x, dense))
    np.testing.assert_allclose(np.asarray(out), np.asarray(ref),
                               rtol=1e-3, atol=1e-3)
    print("KERNEL_OK")
</pallas_src>

<mosaic_0001>
module attributes {stable_mosaic.version = 11 : i64} {
  func.func @_encoder_kernel(%arg0: i32, %arg1: memref<1x9x144xf32, #tpu.memory_space<vmem>>, %arg2: memref<1x9x144xf32, #tpu.memory_space<vmem>>, %arg3: memref<3x192xf32, #tpu.memory_space<vmem>>, %arg4: memref<4x144x192xf32, #tpu.memory_space<vmem>>, %arg5: memref<4x192x192xf32, #tpu.memory_space<vmem>>, %arg6: memref<3x192x192xf32, #tpu.memory_space<vmem>>, %arg7: memref<3x192x48xf32, #tpu.memory_space<vmem>>, %arg8: memref<48x192xf32, #tpu.memory_space<vmem>>, %arg9: memref<3x192x48xf32, #tpu.memory_space<vmem>>, %arg10: memref<48x192xf32, #tpu.memory_space<vmem>>, %arg11: memref<1x4x192xf32, #tpu.memory_space<vmem>>, %arg12: memref<8x192xf32, #tpu.memory_space<vmem>>, %arg13: memref<5x192xf32, #tpu.memory_space<vmem>>, %arg14: memref<5x192xf32, #tpu.memory_space<vmem>>, %arg15: memref<6x192xf32, #tpu.memory_space<vmem>>) attributes {dimension_semantics = [#tpu.dimension_semantics<parallel>], iteration_bounds = array<i64: 2>, scalar_prefetch = 0 : i64, scratch_operands = 4 : i64, tpu.core_type = #tpu.core_type<tc>, window_params = [{transform_indices = @transform_0, window_bounds = array<i64: 1, 9, 144>}, {transform_indices = @transform_1, window_bounds = array<i64: 1, 9, 144>}, {pipeline_mode = #tpu.pipeline_mode<synchronous>, transform_indices = @transform_2, window_bounds = array<i64: 3, 192>}, {pipeline_mode = #tpu.pipeline_mode<synchronous>, transform_indices = @transform_3, window_bounds = array<i64: 4, 144, 192>}, {pipeline_mode = #tpu.pipeline_mode<synchronous>, transform_indices = @transform_4, window_bounds = array<i64: 4, 192, 192>}, {pipeline_mode = #tpu.pipeline_mode<synchronous>, transform_indices = @transform_5, window_bounds = array<i64: 3, 192, 192>}, {pipeline_mode = #tpu.pipeline_mode<synchronous>, transform_indices = @transform_6, window_bounds = array<i64: 3, 192, 48>}, {pipeline_mode = #tpu.pipeline_mode<synchronous>, transform_indices = @transform_7, window_bounds = array<i64: 48, 192>}, {pipeline_mode = #tpu.pipeline_mode<synchronous>, transform_indices = @transform_8, window_bounds = array<i64: 3, 192, 48>}, {pipeline_mode = #tpu.pipeline_mode<synchronous>, transform_indices = @transform_9, window_bounds = array<i64: 48, 192>}, {transform_indices = @transform_10, window_bounds = array<i64: 1, 4, 192>}]} {
    %c0 = arith.constant 0 : index
    %c0_0 = arith.constant 0 : index
    %c0_1 = arith.constant 0 : index
    %0 = vector.load %arg1[%c0, %c0_0, %c0_1] : memref<1x9x144xf32, #tpu.memory_space<vmem>>, vector<1x8x144xf32>
    %1 = vector.shape_cast %0 : vector<1x8x144xf32> to vector<8x144xf32>
    %c0_2 = arith.constant 0 : index
    %c0_3 = arith.constant 0 : index
    %c0_4 = arith.constant 0 : index
    %2 = vector.load %arg4[%c0_2, %c0_3, %c0_4] : memref<4x144x192xf32, #tpu.memory_space<vmem>>, vector<1x144x192xf32>
    %3 = vector.shape_cast %2 : vector<1x144x192xf32> to vector<144x192xf32>
    %cst = arith.constant dense<0.000000e+00> : vector<8x192xf32>
    %4 = tpu.matmul %1, %3, %cst {dimension_numbers = #tpu.dot_dimension_numbers<[1], [0], [0], [1], [0, 0, 1, 1], [], []>} : vector<8x144xf32>, vector<144x192xf32>, vector<8x192xf32> -> vector<8x192xf32>
    %c0_5 = arith.constant 0 : index
    %c0_6 = arith.constant 0 : index
    %c0_7 = arith.constant 0 : index
    %5 = vector.load %arg2[%c0_5, %c0_6, %c0_7] : memref<1x9x144xf32, #tpu.memory_space<vmem>>, vector<1x8x144xf32>
    %6 = vector.shape_cast %5 : vector<1x8x144xf32> to vector<8x144xf32>
    %c1 = arith.constant 1 : index
    %c0_8 = arith.constant 0 : index
    %c0_9 = arith.constant 0 : index
    %7 = vector.load %arg4[%c1, %c0_8, %c0_9] : memref<4x144x192xf32, #tpu.memory_space<vmem>>, vector<1x144x192xf32>
    %8 = vector.shape_cast %7 : vector<1x144x192xf32> to vector<144x192xf32>
    %cst_10 = arith.constant dense<0.000000e+00> : vector<8x192xf32>
    %9 = tpu.matmul %6, %8, %cst_10 {dimension_numbers = #tpu.dot_dimension_numbers<[1], [0], [0], [1], [0, 0, 1, 1], [], []>} : vector<8x144xf32>, vector<144x192xf32>, vector<8x192xf32> -> vector<8x192xf32>
    %10 = arith.addf %4, %9 : vector<8x192xf32>
    %c0_11 = arith.constant 0 : index
    %c1_12 = arith.constant 1 : index
    %c0_13 = arith.constant 0 : index
    %11 = vector.load %arg1[%c0_11, %c1_12, %c0_13] : memref<1x9x144xf32, #tpu.memory_space<vmem>>, vector<1x8x144xf32>
    %12 = vector.shape_cast %11 : vector<1x8x144xf32> to vector<8x144xf32>
    %c2 = arith.constant 2 : index
    %c0_14 = arith.constant 0 : index
    %c0_15 = arith.constant 0 : index
    %13 = vector.load %arg4[%c2, %c0_14, %c0_15] : memref<4x144x192xf32, #tpu.memory_space<vmem>>, vector<1x144x192xf32>
    %14 = vector.shape_cast %13 : vector<1x144x192xf32> to vector<144x192xf32>
    %cst_16 = arith.constant dense<0.000000e+00> : vector<8x192xf32>
    %15 = tpu.matmul %12, %14, %cst_16 {dimension_numbers = #tpu.dot_dimension_numbers<[1], [0], [0], [1], [0, 0, 1, 1], [], []>} : vector<8x144xf32>, vector<144x192xf32>, vector<8x192xf32> -> vector<8x192xf32>
    %16 = arith.addf %10, %15 : vector<8x192xf32>
    %c0_17 = arith.constant 0 : index
    %c1_18 = arith.constant 1 : index
    %c0_19 = arith.constant 0 : index
    %17 = vector.load %arg2[%c0_17, %c1_18, %c0_19] : memref<1x9x144xf32, #tpu.memory_space<vmem>>, vector<1x8x144xf32>
    %18 = vector.shape_cast %17 : vector<1x8x144xf32> to vector<8x144xf32>
    %c3 = arith.constant 3 : index
    %c0_20 = arith.constant 0 : index
    %c0_21 = arith.constant 0 : index
    %19 = vector.load %arg4[%c3, %c0_20, %c0_21] : memref<4x144x192xf32, #tpu.memory_space<vmem>>, vector<1x144x192xf32>
    %20 = vector.shape_cast %19 : vector<1x144x192xf32> to vector<144x192xf32>
    %cst_22 = arith.constant dense<0.000000e+00> : vector<8x192xf32>
    %21 = tpu.matmul %18, %20, %cst_22 {dimension_numbers = #tpu.dot_dimension_numbers<[1], [0], [0], [1], [0, 0, 1, 1], [], []>} : vector<8x144xf32>, vector<144x192xf32>, vector<8x192xf32> -> vector<8x192xf32>
    %22 = arith.addf %16, %21 : vector<8x192xf32>
    %c0_23 = arith.constant 0 : index
    %c0_24 = arith.constant 0 : index
    %23 = vector.load %arg3[%c0_23, %c0_24] : memref<3x192xf32, #tpu.memory_space<vmem>>, vector<1x192xf32>
    %24 = vector.broadcast %23 : vector<1x192xf32> to vector<8x192xf32>
    %25 = arith.addf %22, %24 : vector<8x192xf32>
    %cst_25 = arith.constant 0.000000e+00 : f32
    %26 = vector.broadcast %cst_25 : f32 to vector<8x192xf32>
    %27 = arith.maximumf %25, %26 : vector<8x192xf32>
    %c0_26 = arith.constant 0 : index
    %c0_27 = arith.constant 0 : index
    %28 = vector.load %arg12[%c0_26, %c0_27] : memref<8x192xf32, #tpu.memory_space<vmem>>, vector<8x192xf32>
    tpu.vector_store %arg12[%c0_26, %c0_27], %27 {strides = array<i32>} : memref<8x192xf32, #tpu.memory_space<vmem>>, vector<8x192xf32>,
    %cst_28 = arith.constant 0.000000e+00 : f32
    %29 = vector.broadcast %cst_28 : f32 to vector<1x192xf32>
    %c0_29 = arith.constant 0 : index
    %c0_30 = arith.constant 0 : index
    %30 = vector.load %arg13[%c0_29, %c0_30] : memref<5x192xf32, #tpu.memory_space<vmem>>, vector<1x192xf32>
    tpu.vector_store %arg13[%c0_29, %c0_30], %29 {strides = array<i32>} : memref<5x192xf32, #tpu.memory_space<vmem>>, vector<1x192xf32>,
    %c1_31 = arith.constant 1 : index
    %c0_32 = arith.constant 0 : index
    %31 = vector.load %arg12[%c1_31, %c0_32] : memref<8x192xf32, #tpu.memory_space<vmem>>, vector<1x192xf32>
    %c1_33 = arith.constant 1 : index
    %c0_34 = arith.constant 0 : index
    %32 = vector.load %arg13[%c1_33, %c0_34] : memref<5x192xf32, #tpu.memory_space<vmem>>, vector<1x192xf32>
    tpu.vector_store %arg13[%c1_33, %c0_34], %31 {strides = array<i32>} : memref<5x192xf32, #tpu.memory_space<vmem>>, vector<1x192xf32>,
    %c3_35 = arith.constant 3 : index
    %c0_36 = arith.constant 0 : index
    %33 = vector.load %arg12[%c3_35, %c0_36] : memref<8x192xf32, #tpu.memory_space<vmem>>, vector<1x192xf32>
    %c2_37 = arith.constant 2 : index
    %c0_38 = arith.constant 0 : index
    %34 = vector.load %arg13[%c2_37, %c0_38] : memref<5x192xf32, #tpu.memory_space<vmem>>, vector<1x192xf32>
    tpu.vector_store %arg13[%c2_37, %c0_38], %33 {strides = array<i32>} : memref<5x192xf32, #tpu.memory_space<vmem>>, vector<1x192xf32>,
    %c5 = arith.constant 5 : index
    %c0_39 = arith.constant 0 : index
    %35 = vector.load %arg12[%c5, %c0_39] : memref<8x192xf32, #tpu.memory_space<vmem>>, vector<1x192xf32>
    %c3_40 = arith.constant 3 : index
    %c0_41 = arith.constant 0 : index
    %36 = vector.load %arg13[%c3_40, %c0_41] : memref<5x192xf32, #tpu.memory_space<vmem>>, vector<1x192xf32>
    tpu.vector_store %arg13[%c3_40, %c0_41], %35 {strides = array<i32>} : memref<5x192xf32, #tpu.memory_space<vmem>>, vector<1x192xf32>,
    %c7 = arith.constant 7 : index
    %c0_42 = arith.constant 0 : index
    %37 = vector.load %arg12[%c7, %c0_42] : memref<8x192xf32, #tpu.memory_space<vmem>>, vector<1x192xf32>
    %c4 = arith.constant 4 : index
    %c0_43 = arith.constant 0 : index
    %38 = vector.load %arg13[%c4, %c0_43] : memref<5x192xf32, #tpu.memory_space<vmem>>, vector<1x192xf32>
    tpu.vector_store %arg13[%c4, %c0_43], %37 {strides = array<i32>} : memref<5x192xf32, #tpu.memory_space<vmem>>, vector<1x192xf32>,
    %c0_44 = arith.constant 0 : index
    %c0_45 = arith.constant 0 : index
    %39 = vector.load %arg12[%c0_44, %c0_45] : memref<8x192xf32, #tpu.memory_space<vmem>>, vector<1x192xf32>
    %c0_46 = arith.constant 0 : index
    %c0_47 = arith.constant 0 : index
    %40 = vector.load %arg14[%c0_46, %c0_47] : memref<5x192xf32, #tpu.memory_space<vmem>>, vector<1x192xf32>
    tpu.vector_store %arg14[%c0_46, %c0_47], %39 {strides = array<i32>} : memref<5x192xf32, #tpu.memory_space<vmem>>, vector<1x192xf32>,
    %c2_48 = arith.constant 2 : index
    %c0_49 = arith.constant 0 : index
    %41 = vector.load %arg12[%c2_48, %c0_49] : memref<8x192xf32, #tpu.memory_space<vmem>>, vector<1x192xf32>
    %c1_50 = arith.constant 1 : index
    %c0_51 = arith.constant 0 : index
    %42 = vector.load %arg14[%c1_50, %c0_51] : memref<5x192xf32, #tpu.memory_space<vmem>>, vector<1x192xf32>
    tpu.vector_store %arg14[%c1_50, %c0_51], %41 {strides = array<i32>} : memref<5x192xf32, #tpu.memory_space<vmem>>, vector<1x192xf32>,
    %c4_52 = arith.constant 4 : index
    %c0_53 = arith.constant 0 : index
    %43 = vector.load %arg12[%c4_52, %c0_53] : memref<8x192xf32, #tpu.memory_space<vmem>>, vector<1x192xf32>
    %c2_54 = arith.constant 2 : index
    %c0_55 = arith.constant 0 : index
    %44 = vector.load %arg14[%c2_54, %c0_55] : memref<5x192xf32, #tpu.memory_space<vmem>>, vector<1x192xf32>
    tpu.vector_store %arg14[%c2_54, %c0_55], %43 {strides = array<i32>} : memref<5x192xf32, #tpu.memory_space<vmem>>, vector<1x192xf32>,
    %c6 = arith.constant 6 : index
    %c0_56 = arith.constant 0 : index
    %45 = vector.load %arg12[%c6, %c0_56] : memref<8x192xf32, #tpu.memory_space<vmem>>, vector<1x192xf32>
    %c3_57 = arith.constant 3 : index
    %c0_58 = arith.constant 0 : index
    %46 = vector.load %arg14[%c3_57, %c0_58] : memref<5x192xf32, #tpu.memory_space<vmem>>, vector<1x192xf32>
    tpu.vector_store %arg14[%c3_57, %c0_58], %45 {strides = array<i32>} : memref<5x192xf32, #tpu.memory_space<vmem>>, vector<1x192xf32>,
    %c4_59 = arith.constant 4 : index
    %c0_60 = arith.constant 0 : index
    %47 = vector.load %arg14[%c4_59, %c0_60] : memref<5x192xf32, #tpu.memory_space<vmem>>, vector<1x192xf32>
    tpu.vector_store %arg14[%c4_59, %c0_60], %29 {strides = array<i32>} : memref<5x192xf32, #tpu.memory_space<vmem>>, vector<1x192xf32>,
    %c0_61 = arith.constant 0 : index
    %c0_62 = arith.constant 0 : index
    %48 = vector.load %arg13[%c0_61, %c0_62] : memref<5x192xf32, #tpu.memory_space<vmem>>, vector<4x192xf32>
    %c0_63 = arith.constant 0 : index
    %c0_64 = arith.constant 0 : index
    %c0_65 = arith.constant 0 : index
    %49 = vector.load %arg5[%c0_63, %c0_64, %c0_65] : memref<4x192x192xf32, #tpu.memory_space<vmem>>, vector<1x192x192xf32>
    %50 = vector.shape_cast %49 : vector<1x192x192xf32> to vector<192x192xf32>
    %cst_66 = arith.constant dense<0.000000e+00> : vector<4x192xf32>
    %51 = tpu.matmul %48, %50, %cst_66 {dimension_numbers = #tpu.dot_dimension_numbers<[1], [0], [0], [1], [0, 0, 1, 1], [], []>} : vector<4x192xf32>, vector<192x192xf32>, vector<4x192xf32> -> vector<4x192xf32>
    %c0_67 = arith.constant 0 : index
    %c0_68 = arith.constant 0 : index
    %52 = vector.load %arg14[%c0_67, %c0_68] : memref<5x192xf32, #tpu.memory_space<vmem>>, vector<4x192xf32>
    %c1_69 = arith.constant 1 : index
    %c0_70 = arith.constant 0 : index
    %c0_71 = arith.constant 0 : index
    %53 = vector.load %arg5[%c1_69, %c0_70, %c0_71] : memref<4x192x192xf32, #tpu.memory_space<vmem>>, vector<1x192x192xf32>
    %54 = vector.shape_cast %53 : vector<1x192x192xf32> to vector<192x192xf32>
    %cst_72 = arith.constant dense<0.000000e+00> : vector<4x192xf32>
    %55 = tpu.matmul %52, %54, %cst_72 {dimension_numbers = #tpu.dot_dimension_numbers<[1], [0], [0], [1], [0, 0, 1, 1], [], []>} : vector<4x192xf32>, vector<192x192xf32>, vector<4x192xf32> -> vector<4x192xf32>
    %56 = arith.addf %51, %55 : vector<4x192xf32>
    %c1_73 = arith.constant 1 : index
    %c0_74 = arith.constant 0 : index
    %57 = vector.load %arg13[%c1_73, %c0_74] : memref<5x192xf32, #tpu.memory_space<vmem>>, vector<4x192xf32>
    %c2_75 = arith.constant 2 : index
    %c0_76 = arith.constant 0 : index
    %c0_77 = arith.constant 0 : index
    %58 = vector.load %arg5[%c2_75, %c0_76, %c0_77] : memref<4x192x192xf32, #tpu.memory_space<vmem>>, vector<1x192x192xf32>
    %59 = vector.shape_cast %58 : vector<1x192x192xf32> to vector<192x192xf32>
    %cst_78 = arith.constant dense<0.000000e+00> : vector<4x192xf32>
    %60 = tpu.matmul %57, %59, %cst_78 {dimension_numbers = #tpu.dot_dimension_numbers<[1], [0], [0], [1], [0, 0, 1, 1], [], []>} : vector<4x192xf32>, vector<192x192xf32>, vector<4x192xf32> -> vector<4x192xf32>
    %61 = arith.addf %56, %60 : vector<4x192xf32>
    %c1_79 = arith.constant 1 : index
    %c0_80 = arith.constant 0 : index
    %62 = vector.load %arg14[%c1_79, %c0_80] : memref<5x192xf32, #tpu.memory_space<vmem>>, vector<4x192xf32>
    %c3_81 = arith.constant 3 : index
    %c0_82 = arith.constant 0 : index
    %c0_83 = arith.constant 0 : index
    %63 = vector.load %arg5[%c3_81, %c0_82, %c0_83] : memref<4x192x192xf32, #tpu.memory_space<vmem>>, vector<1x192x192xf32>
    %64 = vector.shape_cast %63 : vector<1x192x192xf32> to vector<192x192xf32>
    %cst_84 = arith.constant dense<0.000000e+00> : vector<4x192xf32>
    %65 = tpu.matmul %62, %64, %cst_84 {dimension_numbers = #tpu.dot_dimension_numbers<[1], [0], [0], [1], [0, 0, 1, 1], [], []>} : vector<4x192xf32>, vector<192x192xf32>, vector<4x192xf32> -> vector<4x192xf32>
    %66 = arith.addf %61, %65 : vector<4x192xf32>
    %c1_85 = arith.constant 1 : index
    %c0_86 = arith.constant 0 : index
    %67 = vector.load %arg3[%c1_85, %c0_86] : memref<3x192xf32, #tpu.memory_space<vmem>>, vector<1x192xf32>
    %68 = vector.broadcast %67 : vector<1x192xf32> to vector<4x192xf32>
    %69 = arith.addf %66, %68 : vector<4x192xf32>
    %cst_87 = arith.constant 0.000000e+00 : f32
    %70 = vector.broadcast %cst_87 : f32 to vector<4x192xf32>
    %71 = arith.maximumf %69, %70 : vector<4x192xf32>
    %cst_88 = arith.constant 0.000000e+00 : f32
    %72 = vector.broadcast %cst_88 : f32 to vector<6x192xf32>
    %c0_89 = arith.constant 0 : index
    %c0_90 = arith.constant 0 : index
    %73 = vector.load %arg15[%c0_89, %c0_90] : memref<6x192xf32, #tpu.memory_space<vmem>>, vector<6x192xf32>
    tpu.vector_store %arg15[%c0_89, %c0_90], %72 {strides = array<i32>} : memref<6x192xf32, #tpu.memory_space<vmem>>, vector<6x192xf32>,
    %c1_91 = arith.constant 1 : index
    %c0_92 = arith.constant 0 : index
    %74 = vector.load %arg15[%c1_91, %c0_92] : memref<6x192xf32, #tpu.memory_space<vmem>>, vector<4x192xf32>
    tpu.vector_store %arg15[%c1_91, %c0_92], %71 {strides = array<i32>} : memref<6x192xf32, #tpu.memory_space<vmem>>, vector<4x192xf32>,
    %c0_93 = arith.constant 0 : index
    %c0_94 = arith.constant 0 : index
    %75 = vector.load %arg15[%c0_93, %c0_94] : memref<6x192xf32, #tpu.memory_space<vmem>>, vector<4x192xf32>
    %c0_95 = arith.constant 0 : index
    %c0_96 = arith.constant 0 : index
    %c0_97 = arith.constant 0 : index
    %76 = vector.load %arg6[%c0_95, %c0_96, %c0_97] : memref<3x192x192xf32, #tpu.memory_space<vmem>>, vector<1x192x192xf32>
    %77 = vector.shape_cast %76 : vector<1x192x192xf32> to vector<192x192xf32>
    %cst_98 = arith.constant dense<0.000000e+00> : vector<4x192xf32>
    %78 = tpu.matmul %75, %77, %cst_98 {dimension_numbers = #tpu.dot_dimension_numbers<[1], [0], [0], [1], [0, 0, 1, 1], [], []>} : vector<4x192xf32>, vector<192x192xf32>, vector<4x192xf32> -> vector<4x192xf32>
    %c1_99 = arith.constant 1 : index
    %c0_100 = arith.constant 0 : index
    %79 = vector.load %arg15[%c1_99, %c0_100] : memref<6x192xf32, #tpu.memory_space<vmem>>, vector<4x192xf32>
    %c1_101 = arith.constant 1 : index
    %c0_102 = arith.constant 0 : index
    %c0_103 = arith.constant 0 : index
    %80 = vector.load %arg6[%c1_101, %c0_102, %c0_103] : memref<3x192x192xf32, #tpu.memory_space<vmem>>, vector<1x192x192xf32>
    %81 = vector.shape_cast %80 : vector<1x192x192xf32> to vector<192x192xf32>
    %cst_104 = arith.constant dense<0.000000e+00> : vector<4x192xf32>
    %82 = tpu.matmul %79, %81, %cst_104 {dimension_numbers = #tpu.dot_dimension_numbers<[1], [0], [0], [1], [0, 0, 1, 1], [], []>} : vector<4x192xf32>, vector<192x192xf32>, vector<4x192xf32> -> vector<4x192xf32>
    %83 = arith.addf %78, %82 : vector<4x192xf32>
    %c2_105 = arith.constant 2 : index
    %c0_106 = arith.constant 0 : index
    %84 = vector.load %arg15[%c2_105, %c0_106] : memref<6x192xf32, #tpu.memory_space<vmem>>, vector<4x192xf32>
    %c2_107 = arith.constant 2 : index
    %c0_108 = arith.constant 0 : index
    %c0_109 = arith.constant 0 : index
    %85 = vector.load %arg6[%c2_107, %c0_108, %c0_109] : memref<3x192x192xf32, #tpu.memory_space<vmem>>, vector<1x192x192xf32>
    %86 = vector.shape_cast %85 : vector<1x192x192xf32> to vector<192x192xf32>
    %cst_110 = arith.constant dense<0.000000e+00> : vector<4x192xf32>
    %87 = tpu.matmul %84, %86, %cst_110 {dimension_numbers = #tpu.dot_dimension_numbers<[1], [0], [0], [1], [0, 0, 1, 1], [], []>} : vector<4x192xf32>, vector<192x192xf32>, vector<4x192xf32> -> vector<4x192xf32>
    %88 = arith.addf %83, %87 : vector<4x192xf32>
    %c2_111 = arith.constant 2 : index
    %c0_112 = arith.constant 0 : index
    %89 = vector.load %arg3[%c2_111, %c0_112] : memref<3x192xf32, #tpu.memory_space<vmem>>, vector<1x192xf32>
    %90 = vector.broadcast %89 : vector<1x192xf32> to vector<4x192xf32>
    %91 = arith.addf %88, %90 : vector<4x192xf32>
    %c1_113 = arith.constant 1 : index
    %c0_114 = arith.constant 0 : index
    %92 = vector.load %arg15[%c1_113, %c0_114] : memref<6x192xf32, #tpu.memory_space<vmem>>, vector<4x192xf32>
    tpu.vector_store %arg15[%c1_113, %c0_114], %91 {strides = array<i32>} : memref<6x192xf32, #tpu.memory_space<vmem>>, vector<4x192xf32>,
    %c0_115 = arith.constant 0 : index
    %c0_116 = arith.constant 0 : index
    %93 = vector.load %arg15[%c0_115, %c0_116] : memref<6x192xf32, #tpu.memory_space<vmem>>, vector<4x192xf32>
    %c0_117 = arith.constant 0 : index
    %c0_118 = arith.constant 0 : index
    %c0_119 = arith.constant 0 : index
    %94 = vector.load %arg7[%c0_117, %c0_118, %c0_119] : memref<3x192x48xf32, #tpu.memory_space<vmem>>, vector<1x192x48xf32>
    %95 = vector.shape_cast %94 : vector<1x192x48xf32> to vector<192x48xf32>
    %cst_120 = arith.constant dense<0.000000e+00> : vector<4x48xf32>
    %96 = tpu.matmul %93, %95, %cst_120 {dimension_numbers = #tpu.dot_dimension_numbers<[1], [0], [0], [1], [0, 0, 1, 1], [], []>} : vector<4x192xf32>, vector<192x48xf32>, vector<4x48xf32> -> vector<4x48xf32>
    %c1_121 = arith.constant 1 : index
    %c0_122 = arith.constant 0 : index
    %97 = vector.load %arg15[%c1_121, %c0_122] : memref<6x192xf32, #tpu.memory_space<vmem>>, vector<4x192xf32>
    %c1_123 = arith.constant 1 : index
    %c0_124 = arith.constant 0 : index
    %c0_125 = arith.constant 0 : index
    %98 = vector.load %arg7[%c1_123, %c0_124, %c0_125] : memref<3x192x48xf32, #tpu.memory_space<vmem>>, vector<1x192x48xf32>
    %99 = vector.shape_cast %98 : vector<1x192x48xf32> to vector<192x48xf32>
    %cst_126 = arith.constant dense<0.000000e+00> : vector<4x48xf32>
    %100 = tpu.matmul %97, %99, %cst_126 {dimension_numbers = #tpu.dot_dimension_numbers<[1], [0], [0], [1], [0, 0, 1, 1], [], []>} : vector<4x192xf32>, vector<192x48xf32>, vector<4x48xf32> -> vector<4x48xf32>
    %101 = arith.addf %96, %100 : vector<4x48xf32>
    %c2_127 = arith.constant 2 : index
    %c0_128 = arith.constant 0 : index
    %102 = vector.load %arg15[%c2_127, %c0_128] : memref<6x192xf32, #tpu.memory_space<vmem>>, vector<4x192xf32>
    %c2_129 = arith.constant 2 : index
    %c0_130 = arith.constant 0 : index
    %c0_131 = arith.constant 0 : index
    %103 = vector.load %arg7[%c2_129, %c0_130, %c0_131] : memref<3x192x48xf32, #tpu.memory_space<vmem>>, vector<1x192x48xf32>
    %104 = vector.shape_cast %103 : vector<1x192x48xf32> to vector<192x48xf32>
    %cst_132 = arith.constant dense<0.000000e+00> : vector<4x48xf32>
    %105 = tpu.matmul %102, %104, %cst_132 {dimension_numbers = #tpu.dot_dimension_numbers<[1], [0], [0], [1], [0, 0, 1, 1], [], []>} : vector<4x192xf32>, vector<192x48xf32>, vector<4x48xf32> -> vector<4x48xf32>
    %106 = arith.addf %101, %105 : vector<4x48xf32>
    %cst_133 = arith.constant 0.000000e+00 : f32
    %107 = vector.broadcast %cst_133 : f32 to vector<4x48xf32>
    %108 = arith.maximumf %106, %107 : vector<4x48xf32>
    %c0_134 = arith.constant 0 : index
    %c0_135 = arith.constant 0 : index
    %109 = vector.load %arg8[%c0_134, %c0_135] : memref<48x192xf32, #tpu.memory_space<vmem>>, vector<48x192xf32>
    %cst_136 = arith.constant dense<0.000000e+00> : vector<4x192xf32>
    %110 = tpu.matmul %108, %109, %cst_136 {dimension_numbers = #tpu.dot_dimension_numbers<[1], [0], [0], [1], [0, 0, 1, 1], [], []>} : vector<4x48xf32>, vector<48x192xf32>, vector<4x192xf32> -> vector<4x192xf32>
    %111 = arith.addf %110, %91 : vector<4x192xf32>
    %cst_137 = arith.constant 0.000000e+00 : f32
    %112 = vector.broadcast %cst_137 : f32 to vector<4x192xf32>
    %113 = arith.maximumf %111, %112 : vector<4x192xf32>
    %c1_138 = arith.constant 1 : index
    %c0_139 = arith.constant 0 : index
    %114 = vector.load %arg15[%c1_138, %c0_139] : memref<6x192xf32, #tpu.memory_space<vmem>>, vector<4x192xf32>
    tpu.vector_store %arg15[%c1_138, %c0_139], %113 {strides = array<i32>} : memref<6x192xf32, #tpu.memory_space<vmem>>, vector<4x192xf32>,
    %c0_140 = arith.constant 0 : index
    %c0_141 = arith.constant 0 : index
    %115 = vector.load %arg15[%c0_140, %c0_141] : memref<6x192xf32, #tpu.memory_space<vmem>>, vector<4x192xf32>
    %c0_142 = arith.constant 0 : index
    %c0_143 = arith.constant 0 : index
    %c0_144 = arith.constant 0 : index
    %116 = vector.load %arg9[%c0_142, %c0_143, %c0_144] : memref<3x192x48xf32, #tpu.memory_space<vmem>>, vector<1x192x48xf32>
    %117 = vector.shape_cast %116 : vector<1x192x48xf32> to vector<192x48xf32>
    %cst_145 = arith.constant dense<0.000000e+00> : vector<4x48xf32>
    %118 = tpu.matmul %115, %117, %cst_145 {dimension_numbers = #tpu.dot_dimension_numbers<[1], [0], [0], [1], [0, 0, 1, 1], [], []>} : vector<4x192xf32>, vector<192x48xf32>, vector<4x48xf32> -> vector<4x48xf32>
    %c1_146 = arith.constant 1 : index
    %c0_147 = arith.constant 0 : index
    %119 = vector.load %arg15[%c1_146, %c0_147] : memref<6x192xf32, #tpu.memory_space<vmem>>, vector<4x192xf32>
    %c1_148 = arith.constant 1 : index
    %c0_149 = arith.constant 0 : index
    %c0_150 = arith.constant 0 : index
    %120 = vector.load %arg9[%c1_148, %c0_149, %c0_150] : memref<3x192x48xf32, #tpu.memory_space<vmem>>, vector<1x192x48xf32>
    %121 = vector.shape_cast %120 : vector<1x192x48xf32> to vector<192x48xf32>
    %cst_151 = arith.constant dense<0.000000e+00> : vector<4x48xf32>
    %122 = tpu.matmul %119, %121, %cst_151 {dimension_numbers = #tpu.dot_dimension_numbers<[1], [0], [0], [1], [0, 0, 1, 1], [], []>} : vector<4x192xf32>, vector<192x48xf32>, vector<4x48xf32> -> vector<4x48xf32>
    %123 = arith.addf %118, %122 : vector<4x48xf32>
    %c2_152 = arith.constant 2 : index
    %c0_153 = arith.constant 0 : index
    %124 = vector.load %arg15[%c2_152, %c0_153] : memref<6x192xf32, #tpu.memory_space<vmem>>, vector<4x192xf32>
    %c2_154 = arith.constant 2 : index
    %c0_155 = arith.constant 0 : index
    %c0_156 = arith.constant 0 : index
    %125 = vector.load %arg9[%c2_154, %c0_155, %c0_156] : memref<3x192x48xf32, #tpu.memory_space<vmem>>, vector<1x192x48xf32>
    %126 = vector.shape_cast %125 : vector<1x192x48xf32> to vector<192x48xf32>
    %cst_157 = arith.constant dense<0.000000e+00> : vector<4x48xf32>
    %127 = tpu.matmul %124, %126, %cst_157 {dimension_numbers = #tpu.dot_dimension_numbers<[1], [0], [0], [1], [0, 0, 1, 1], [], []>} : vector<4x192xf32>, vector<192x48xf32>, vector<4x48xf32> -> vector<4x48xf32>
    %128 = arith.addf %123, %127 : vector<4x48xf32>
    %cst_158 = arith.constant 0.000000e+00 : f32
    %129 = vector.broadcast %cst_158 : f32 to vector<4x48xf32>
    %130 = arith.maximumf %128, %129 : vector<4x48xf32>
    %c0_159 = arith.constant 0 : index
    %c0_160 = arith.constant 0 : index
    %131 = vector.load %arg10[%c0_159, %c0_160] : memref<48x192xf32, #tpu.memory_space<vmem>>, vector<48x192xf32>
    %cst_161 = arith.constant dense<0.000000e+00> : vector<4x192xf32>
    %132 = tpu.matmul %130, %131, %cst_161 {dimension_numbers = #tpu.dot_dimension_numbers<[1], [0], [0], [1], [0, 0, 1, 1], [], []>} : vector<4x48xf32>, vector<48x192xf32>, vector<4x192xf32> -> vector<4x192xf32>
    %133 = arith.addf %132, %113 : vector<4x192xf32>
    %cst_162 = arith.constant 0.000000e+00 : f32
    %134 = vector.broadcast %cst_162 : f32 to vector<4x192xf32>
    %135 = arith.maximumf %133, %134 : vector<4x192xf32>
    %c0_163 = arith.constant 0 : index
    %c0_164 = arith.constant 0 : index
    %c0_165 = arith.constant 0 : index
    %136 = vector.load %arg11[%c0_163, %c0_164, %c0_165] : memref<1x4x192xf32, #tpu.memory_space<vmem>>, vector<1x4x192xf32>
    %137 = vector.shape_cast %136 : vector<1x4x192xf32> to vector<4x192xf32>
    %138 = vector.shape_cast %135 : vector<4x192xf32> to vector<1x4x192xf32>
    tpu.vector_store %arg11[%c0_163, %c0_164, %c0_165], %138 {strides = array<i32>} : memref<1x4x192xf32, #tpu.memory_space<vmem>>, vector<1x4x192xf32>,
    return
  }
  func.func @transform_0(%arg0: i32) -> (i32, i32, i32) {
    %c0_i32 = arith.constant 0 : i32
    %c0_i32_0 = arith.constant 0 : i32
    %c0_i32_1 = arith.constant 0 : i32
    return %arg0, %c0_i32, %c0_i32_0 : i32, i32, i32
  }
  func.func @transform_1(%arg0: i32) -> (i32, i32, i32) {
    %c0_i32 = arith.constant 0 : i32
    %c0_i32_0 = arith.constant 0 : i32
    %c0_i32_1 = arith.constant 0 : i32
    return %arg0, %c0_i32, %c0_i32_0 : i32, i32, i32
  }
  func.func @transform_2(%arg0: i32) -> (i32, i32) {
    %c0_i32 = arith.constant 0 : i32
    %c0_i32_0 = arith.constant 0 : i32
    %c0_i32_1 = arith.constant 0 : i32
    return %c0_i32, %c0_i32_0 : i32, i32
  }
  func.func @transform_3(%arg0: i32) -> (i32, i32, i32) {
    %c0_i32 = arith.constant 0 : i32
    %c0_i32_0 = arith.constant 0 : i32
    %c0_i32_1 = arith.constant 0 : i32
    %c0_i32_2 = arith.constant 0 : i32
    return %c0_i32, %c0_i32_0, %c0_i32_1 : i32, i32, i32
  }
  func.func @transform_4(%arg0: i32) -> (i32, i32, i32) {
    %c0_i32 = arith.constant 0 : i32
    %c0_i32_0 = arith.constant 0 : i32
    %c0_i32_1 = arith.constant 0 : i32
    %c0_i32_2 = arith.constant 0 : i32
    return %c0_i32, %c0_i32_0, %c0_i32_1 : i32, i32, i32
  }
  func.func @transform_5(%arg0: i32) -> (i32, i32, i32) {
    %c0_i32 = arith.constant 0 : i32
    %c0_i32_0 = arith.constant 0 : i32
    %c0_i32_1 = arith.constant 0 : i32
    %c0_i32_2 = arith.constant 0 : i32
    return %c0_i32, %c0_i32_0, %c0_i32_1 : i32, i32, i32
  }
  func.func @transform_6(%arg0: i32) -> (i32, i32, i32) {
    %c0_i32 = arith.constant 0 : i32
    %c0_i32_0 = arith.constant 0 : i32
    %c0_i32_1 = arith.constant 0 : i32
    %c0_i32_2 = arith.constant 0 : i32
    return %c0_i32, %c0_i32_0, %c0_i32_1 : i32, i32, i32
  }
  func.func @transform_7(%arg0: i32) -> (i32, i32) {
    %c0_i32 = arith.constant 0 : i32
    %c0_i32_0 = arith.constant 0 : i32
    %c0_i32_1 = arith.constant 0 : i32
    return %c0_i32, %c0_i32_0 : i32, i32
  }
  func.func @transform_8(%arg0: i32) -> (i32, i32, i32) {
    %c0_i32 = arith.constant 0 : i32
    %c0_i32_0 = arith.constant 0 : i32
    %c0_i32_1 = arith.constant 0 : i32
    %c0_i32_2 = arith.constant 0 : i32
    return %c0_i32, %c0_i32_0, %c0_i32_1 : i32, i32, i32
  }
  func.func @transform_9(%arg0: i32) -> (i32, i32) {
    %c0_i32 = arith.constant 0 : i32
    %c0_i32_0 = arith.constant 0 : i32
    %c0_i32_1 = arith.constant 0 : i32
    return %c0_i32, %c0_i32_0 : i32, i32
  }
  func.func @transform_10(%arg0: i32) -> (i32, i32, i32) {
    %c0_i32 = arith.constant 0 : i32
    %c0_i32_0 = arith.constant 0 : i32
    %c0_i32_1 = arith.constant 0 : i32
    return %arg0, %c0_i32, %c0_i32_0 : i32, i32, i32
  }
}

</mosaic_0001>

<bundles_post_ra>
// kernel: encoder_forward.1
= control target key start
LH: loop header
LB: loop body
LE: loop exit
PB: predicated region body
PF: predicated region fallthrough
CT: control target
= control target key end

     0   :  { %15 = vsyncpa [#allocation7], 0  ;;  %s5368_s0 = inlined_call_operand.vmem [shape: f32[2,9,144], index: 0, kind: input, shape index: {}]   ;;  %s5369_s1 = inlined_call_operand.vmem [shape: f32[2,9,144], index: 1, kind: input, shape index: {}]   ;;  %s5370_s2 = inlined_call_operand.vmem [shape: f32[3,192], index: 2, kind: input, shape index: {}]   ;;  %s5371_s3 = inlined_call_operand.hbm [shape: f32[4,144,192], index: 3, kind: input, shape index: {}]   ;;  %s5372_s4 = inlined_call_operand.vmem [shape: f32[4,192,192], index: 4, kind: input, shape index: {}]   ;;  %s5373_s5 = inlined_call_operand.hbm [shape: f32[3,192,192], index: 5, kind: input, shape index: {}]   ;;  %s5374_s6 = inlined_call_operand.vmem [shape: f32[3,192,48], index: 6, kind: input, shape index: {}]   ;;  %s5375_s7 = inlined_call_operand.vmem [shape: f32[48,192], index: 7, kind: input, shape index: {}]   ;;  %s5376_s8 = inlined_call_operand.vmem [shape: f32[3,192,48], index: 8, kind: input, shape index: {}]   ;;  %s5377_s9 = inlined_call_operand.vmem [shape: f32[48,192], index: 9, kind: input, shape index: {}]   ;;  %s5378_s10 = inlined_call_operand.vmem [shape: f32[2,4,192], index: 10, kind: output, shape index: {}]  }
   0x1   :  { %16 = vsyncpa [#allocation9], 0  ;;  %s3995_s13 = smov 0  }
   0x2 LB: > { %s4001_s14 = sadd.s32 4294967295, %s3932_s13   ;;  %p2806_p0 = scmp.ge.s32.totalorder %s3932_s13, 1  ;;  %s3932_s13 = sphi %s3995_s13, %s22_s13  }
   0x3   : > { %p273_p1 = scmp.lt.s32.totalorder %s3932_s13, 3  ;;  %s3934_s15 = smov [#allocation6]  }
   0x4   : > { %s288_s16 = sshll.u32 %s3934_s15, 4  ;;  %p5379_p3 = scmp.eq.s32.totalorder %s4001_s14, 0  ;;  %s289_s16 = int_to_ptr.vmem [resolvable:$true] %s288_s16 }
   0x5   : > { %p4005_p2 = pnand %p2806_p0, %p273_p1  ;;  %s3935_s18 = smov [#allocation8]  }
   0x6   : > { %s304_s19 = sshll.u32 %s3935_s18, 4  ;;  %s3862_s23 = scalar_lea.hbm %s5371_s3, 18432  ;;  %s4018_s19 = int_to_ptr.vmem [resolvable:$true] %s304_s19 }
   0x7   : > { %s5381_s17 = scalar_select %p4005_p2, 1, 0 }
   0x8   : > { %p3837_p4 = pneg %p4005_p2  ;;  %p3863_p6 = scmp.ne.s32.totalorder %s5371_s3, %s3862_s23 }
   0x9   : > { %p3869_p10 = scmp.lt.u32.totalorder %s3862_s23, %s5371_s3 }
   0xa   : > { %p4014_p5 = pnand %p5379_p3, %p3837_p4 }
   0xc   : > { %p3864_p7 = pneg %p4014_p5 }
   0xe   : > { %p3865_p8 = pnand %p3864_p7, %p3863_p6 }
  0x10   : > { %p3866_p9 = pneg %p3865_p8 }
  0x12   : > { %p3871_p11 = pnand %p3869_p10, %p3866_p9 }
  0x14   : > { %3874 = shalt.err (!%p3871_p11)
}
  0x15   : > { %s3875_s28 = scalar_lea.vmem %s289_s16, 18432  ;;  %p3883_p1 = scmp.lt.s32.totalorder %s289_s16, %s289_s16 }
  0x16   : > { %p3876_p12 = scmp.ne.s32.totalorder %s289_s16, %s3875_s28  ;;  %p3884_p4 = scmp.lt.s32.totalorder %s3875_s28, %s3875_s28 }
  0x18   : > { %p3878_p13 = pnand %p3876_p12, %p3864_p7  ;;  %p3885_p3 = por %p3884_p4, %p3883_p1 }
  0x1a   : > { %p3879_p0 = pneg %p3878_p13 }
  0x1c   : > { %p3886_p2 = pnand %p3885_p3, %p3879_p0 }
  0x1e   : > { %3889 = shalt.err (!%p3886_p2)
}
  0x1f   : > { %s3936_s29 = smov 256   ;;  %s3937_s30 = smov 16  }
  0x20   : > { %3840 = dma.hbm_to_vmem [thread:$0]  (!%p4014_p5), %s5371_s3, 18432, %s289_s16, [#allocation7], %s3936_s29, %s3936_s29, %s3937_s30  }
  0x21   : > { %s3890_s21 = scalar_lea.hbm %s5373_s5, 18432 }
  0x22   : > { %p3891_p6 = scmp.ne.s32.totalorder %s5373_s5, %s3890_s21  ;;  %p3897_p8 = scmp.lt.u32.totalorder %s3890_s21, %s5373_s5 }
  0x24   : > { %p3893_p2 = pnand %p3891_p6, %p3864_p7 }
  0x26   : > { %p3894_p3 = pneg %p3893_p2 }
  0x28   : > { %p3899_p9 = pnand %p3897_p8, %p3894_p3 }
  0x2a   : > { %3902 = shalt.err (!%p3899_p9)
}
  0x2b   : > { %s3903_s16 = scalar_lea.vmem %s4018_s19, 18432  ;;  %p3911_p13 = scmp.lt.s32.totalorder %s4018_s19, %s4018_s19 }
  0x2c   : > { %p3904_p10 = scmp.ne.s32.totalorder %s4018_s19, %s3903_s16  ;;  %p3912_p0 = scmp.lt.s32.totalorder %s3903_s16, %s3903_s16 }
  0x2e   : > { %p3906_p11 = pnand %p3904_p10, %p3864_p7  ;;  %p3913_p1 = por %p3912_p0, %p3911_p13 }
  0x30   : > { %p3907_p12 = pneg %p3906_p11 }
  0x32   : > { %p3914_p4 = pnand %p3913_p1, %p3907_p12 }
  0x34   : > { %3917 = shalt.err (!%p3914_p4)
}
  0x35   : > { %3843 = dma.hbm_to_vmem [thread:$0]  (!%p4014_p5), %s5373_s5, 18432, %s4018_s19, [#allocation9], %s3936_s29, %s3936_s29, %s3937_s30  }
  0x36   : > { %p5383_p6 = scmp.ne.s32.totalorder %s5381_s17, 0 }
  0x37   : > { %p5384_p2 = scmp.eq.s32.totalorder (!%p5383_p6), %s4001_s14, 0 }
  0x38   : > { %348 = sbr.rel (%p5383_p6) target bundleno = 2174 (0x87e), region = 60 }
  0x3f   : > { %3923 = dma.done.wait (%p5384_p2), [#allocation7], 18432   ;;  %p5385_p7 = pmov %p5384_p2 }
  0x40   : > { %p5386_p3 = pmov %p5384_p2 }
  0x41   : > { %3925 = vsyncadd (%p5385_p7), [#allocation7], 4294948864 }
  0x42   : > { %3927 = dma.done.wait (%p5386_p3), [#allocation9], 18432   ;;  %p5387_p8 = pmov %p5384_p2 }
  0x43   : > { %p395_p9 = scmp.lt.s32.totalorder %s4001_s14, 1  ;;  %v452_v0 = vld [vmem:[#allocation6 + $0x128] sm:$0xff]  ;;  %v454_v1 = vld [vmem:[#allocation6 + $0x138] sm:$0xff]  ;;  %v451_v2 = vld [vmem:[#allocation6 + $0x120] sm:$0xff]  ;;  %vm487_vm0 = vcmask 130048   ;;  %vm681_vm1 = vcmask 1046528  }
  0x44   : > { %3929 = vsyncadd (%p5387_p8), [#allocation9], 4294948864  ;;  %v3085_v3 = vpack.c.bf16 %v454_v1, %v452_v0  ;;  %v453_v4 = vld [vmem:[#allocation6 + $0x130] sm:$0xff]  ;;  %v456_v5 = vld [vmem:[#allocation6 + $0x148] sm:$0xff]  ;;  %vm908_vm3 = vcmask 523264   ;;  %vm1486_vm4 = vcmask 521216  }
  0x45   : > { %v458_v6 = vld [vmem:[#allocation6 + $0x158] sm:$0xff]  ;;  %v3087_v7 = vpack.c.bf16 %v453_v4, %v451_v2  ;;  %v455_v9 = vld [vmem:[#allocation6 + $0x140] sm:$0xff]  ;;  %v457_v10 = vld [vmem:[#allocation6 + $0x150] sm:$0xff]  ;;  %s5391_s14 = smov (!%p395_p9, %s4001_s14), 1  ;;  %vm1495_vm5 = vcmask 520193   ;;  %vm2225_vm6 = vcmask 392192  }
  0x46   : > { %v3089_v8 = vpack.c.bf16 %v458_v6, %v456_v5  ;;  %v460_v11 = vld [vmem:[#allocation6 + $0x168] sm:$0xff]  ;;  %3086 = vmatprep.subr.bf16.mxu0 %v3085_v3  ;;  %v462_v12 = vld [vmem:[#allocation6 + $0x178] sm:$0xff]  ;;  %v3091_v13 = vpack.c.bf16 %v457_v10, %v455_v9  ;;  %v459_v15 = vld [vmem:[#allocation6 + $0x160] sm:$0xff]  ;;  %s3082_s17 = sshll.u32 %s5391_s14, 5  ;;  %s3084_s27 = sshll.u32 %s5391_s14, 3  ;;  %vm2711_vm7 = vcmask 1043456  }
  0x47   : > { %3088 = vmatpush1.bf16.msra.mxu0 %v3087_v7  ;;  %v3093_v14 = vpack.c.bf16 %v462_v12, %v460_v11  ;;  %v461_v16 = vld [vmem:[#allocation6 + $0x170] sm:$0xff]  ;;  %v464_v17 = vld [vmem:[#allocation6 + $0x188] sm:$0xff]  ;;  %v466_v18 = vld [vmem:[#allocation6 + $0x198] sm:$0xff]  ;;  %s4087_s28 = scalar_lea.vmem %s5369_s1, %s3082_s17  ;;  %s4096_s11 = scalar_lea.vmem %s5368_s0, %s3082_s17  ;;  %vm2712_vm8 = vcmask 523268  }
  0x48   : > { %3090 = vmatprep.subr.bf16.mxu0 %v3089_v8  ;;  %v3095_v19 = vpack.c.bf16 %v461_v16, %v459_v15  ;;  %v3097_v20 = vpack.c.bf16 %v466_v18, %v464_v17  ;;  %v463_v21 = vld [vmem:[#allocation6 + $0x180] sm:$0xff]  ;;  %v465_v22 = vld [vmem:[#allocation6 + $0x190] sm:$0xff]  ;;  %v468_v23 = vld [vmem:[#allocation6 + $0x1a8] sm:$0xff]  ;;  %s409_s20 = scalar_lea.vmem %s5378_s10, %s3084_s27 }
  0x49   : > { %v470_v24 = vld [vmem:[#allocation6 + $0x1b8] sm:$0xff]  ;;  %v3099_v25 = vpack.c.bf16 %v465_v22, %v463_v21  ;;  %v449_v26 = vld [vmem:[%s4087_s28 + $0x8] sm:$0xff]  ;;  %v467_v28 = vld [vmem:[#allocation6 + $0x1a0] sm:$0xff] }
  0x4a   : > { %v3101_v27 = vpack.c.bf16 %v470_v24, %v468_v23  ;;  %v469_v29 = vld [vmem:[#allocation6 + $0x1b0] sm:$0xff]  ;;  %2819 = vmatprep.mubr.msk.f32.mxu0 %vm487_vm0, %v449_v26  ;;  %v472_v30 = vld [vmem:[#allocation6 + $0x1c8] sm:$0xff]  ;;  %v474_v31 = vld [vmem:[#allocation6 + $0x1d8] sm:$0xff] }
  0x4b   : > { %3092 = vmatpush1.bf16.msra.mxu0 %v3091_v13  ;;  %v3103_v32 = vpack.c.bf16 %v469_v29, %v467_v28  ;;  %v3105_v33 = vpack.c.bf16 %v474_v31, %v472_v30  ;;  %v471_v34 = vld [vmem:[#allocation6 + $0x1c0] sm:$0xff]  ;;  %v473_v35 = vld [vmem:[#allocation6 + $0x1d0] sm:$0xff]  ;;  %v476_v36 = vld [vmem:[#allocation6 + $0x1e8] sm:$0xff] }
  0x4c   : > { %3094 = vmatprep.subr.bf16.mxu0 %v3093_v14  ;;  %v478_v37 = vld [vmem:[#allocation6 + $0x1f8] sm:$0xff]  ;;  %v3107_v38 = vpack.c.bf16 %v473_v35, %v471_v34  ;;  %v475_v40 = vld [vmem:[#allocation6 + $0x1e0] sm:$0xff]  ;;  %v477_v41 = vld [vmem:[#allocation6 + $0x1f0] sm:$0xff] }
  0x4d   : > { %v3109_v39 = vpack.c.bf16 %v478_v37, %v476_v36  ;;  %v480_v42 = vld [vmem:[#allocation6 + $0x208] sm:$0xff]  ;;  %v482_v43 = vld [vmem:[#allocation6 + $0x218] sm:$0xff]  ;;  %v3111_v44 = vpack.c.bf16 %v477_v41, %v475_v40  ;;  %v479_v46 = vld [vmem:[#allocation6 + $0x200] sm:$0xff] }
  0x4e   : > { %v3113_v45 = vpack.c.bf16 %v482_v43, %v480_v42  ;;  %v481_v47 = vld [vmem:[#allocation6 + $0x210] sm:$0xff]  ;;  %v484_v48 = vld [vmem:[#allocation6 + $0x228] sm:$0xff]  ;;  %v486_v49 = vld [vmem:[#allocation6 + $0x238] sm:$0xff] }
  0x4f   : > { %3096 = vmatpush1.bf16.msra.mxu0 %v3095_v19  ;;  %v3115_v50 = vpack.c.bf16 %v481_v47, %v479_v46  ;;  %v3117_v51 = vpack.c.bf16 %v486_v49, %v484_v48  ;;  %v483_v52 = vld [vmem:[#allocation6 + $0x220] sm:$0xff]  ;;  %v485_v53 = vld [vmem:[#allocation6 + $0x230] sm:$0xff]  ;;  %v413_v54 = vld [vmem:[#allocation6 + $0x8] sm:$0xff] }
  0x50   : > { %3098 = vmatprep.subr.bf16.mxu0 %v3097_v20  ;;  %v415_v55 = vld [vmem:[#allocation6 + $0x18] sm:$0xff]  ;;  %v3119_v56 = vpack.c.bf16 %v485_v53, %v483_v52  ;;  %v412_v58 = vld [vmem:[#allocation6] sm:$0xff]  ;;  %v414_v59 = vld [vmem:[#allocation6 + $0x10] sm:$0xff] }
  0x51   : > { %v3121_v57 = vpack.c.bf16 %v415_v55, %v413_v54  ;;  %v417_v60 = vld [vmem:[#allocation6 + $0x28] sm:$0xff]  ;;  %v419_v61 = vld [vmem:[#allocation6 + $0x38] sm:$0xff]  ;;  %v448_v62 = vld [vmem:[%s4087_s28] sm:$0xff]  ;;  %v3123_v63 = vpack.c.bf16 %v414_v59, %v412_v58 }
  0x52   : > { %v3125_v0 = vpack.c.bf16 %v419_v61, %v417_v60  ;;  %v416_v1 = vld [vmem:[#allocation6 + $0x20] sm:$0xff]  ;;  %v418_v2 = vld [vmem:[#allocation6 + $0x30] sm:$0xff]  ;;  %v411_v3 = vld [vmem:[%s4096_s11 + $0x8] sm:$0xff] }
  0x53   : > { %3100 = vmatpush1.bf16.msra.mxu0 %v3099_v25  ;;  %v421_v4 = vld [vmem:[#allocation6 + $0x48] sm:$0xff]  ;;  %v423_v5 = vld [vmem:[#allocation6 + $0x58] sm:$0xff]  ;;  %v3127_v6 = vpack.c.bf16 %v418_v2, %v416_v1  ;;  %v420_v8 = vld [vmem:[#allocation6 + $0x40] sm:$0xff] }
  0x54   : > { %3102 = vmatprep.subr.bf16.mxu0 %v3101_v27  ;;  %v3129_v7 = vpack.c.bf16 %v423_v5, %v421_v4  ;;  %v422_v9 = vld [vmem:[#allocation6 + $0x50] sm:$0xff]  ;;  %v425_v10 = vld [vmem:[#allocation6 + $0x68] sm:$0xff]  ;;  %v427_v11 = vld [vmem:[#allocation6 + $0x78] sm:$0xff] }
  0x55   : > { %v3131_v12 = vpack.c.bf16 %v422_v9, %v420_v8  ;;  %v3133_v13 = vpack.c.bf16 %v427_v11, %v425_v10  ;;  %v424_v14 = vld [vmem:[#allocation6 + $0x60] sm:$0xff]  ;;  %v426_v15 = vld [vmem:[#allocation6 + $0x70] sm:$0xff]  ;;  %v429_v16 = vld [vmem:[#allocation6 + $0x88] sm:$0xff] }
  0x56   : > { %v431_v17 = vld [vmem:[#allocation6 + $0x98] sm:$0xff]  ;;  %v3135_v18 = vpack.c.bf16 %v426_v15, %v424_v14  ;;  %v428_v20 = vld [vmem:[#allocation6 + $0x80] sm:$0xff]  ;;  %v430_v21 = vld [vmem:[#allocation6 + $0x90] sm:$0xff] }
  0x57   : > { %3104 = vmatpush1.bf16.msra.mxu0 %v3103_v32  ;;  %v3137_v19 = vpack.c.bf16 %v431_v17, %v429_v16  ;;  %v433_v22 = vld [vmem:[#allocation6 + $0xa8] sm:$0xff]  ;;  %v435_v23 = vld [vmem:[#allocation6 + $0xb8] sm:$0xff]  ;;  %v432_v24 = vld [vmem:[#allocation6 + $0xa0] sm:$0xff]  ;;  %v3139_v28 = vpack.c.bf16 %v430_v21, %v428_v20 }
  0x58   : > { %3106 = vmatprep.subr.bf16.mxu0 %v3105_v33  ;;  %v434_v25 = vld [vmem:[#allocation6 + $0xb0] sm:$0xff]  ;;  %v764_v26 = vld [vmem:[%s4087_s28] sm:$0xfe]  ;;  %v2824_v27 = vld [vmem:[%s5372_s4 + $0x188] sm:$0xff]  ;;  %v3141_v35 = vpack.c.bf16 %v435_v23, %v433_v22 }
  0x59   : > { %v437_v29 = vld [vmem:[#allocation6 + $0xc8] sm:$0xff]  ;;  %v439_v30 = vld [vmem:[#allocation6 + $0xd8] sm:$0xff]  ;;  %v766_v31 = vld [vmem:[%s4087_s28 + $0x10] sm:$0x1]  ;;  %v809_v32 = vrot.slane %v764_v26, 1  ;;  %v3143_v48 = vpack.c.bf16 %v434_v25, %v432_v24 }
  0x5a   : > { %v2826_v33 = vld [vmem:[%s5372_s4 + $0x198] sm:$0xff]  ;;  %v2823_v34 = vld [vmem:[%s5372_s4 + $0x180] sm:$0xff]  ;;  %v810_v36 = vrot.slane %v766_v31, 1  ;;  %v3145_v52 = vpack.c.bf16 %v439_v30, %v437_v29  ;;  %v441_v53 = vld [vmem:[#allocation6 + $0xe8] sm:$0xff] }
  0x5b   : > { %3108 = vmatpush1.bf16.msra.mxu0 %v3107_v38  ;;  %v3229_v37 = vpack.c.bf16 %v2826_v33, %v2824_v27  ;;  %v2825_v38 = vld [vmem:[%s5372_s4 + $0x190] sm:$0xff]  ;;  %v2830_v40 = vld [vmem:[%s5372_s4 + $0x1b8] sm:$0xff]  ;;  %v2827_v43 = vld [vmem:[%s5372_s4 + $0x1a0] sm:$0xff] }
  0x5c   : > { %3110 = vmatprep.subr.bf16.mxu0 %v3109_v39  ;;  %v2828_v39 = vld [vmem:[%s5372_s4 + $0x1a8] sm:$0xff]  ;;  %v3231_v41 = vpack.c.bf16 %v2825_v38, %v2823_v34  ;;  %v4131_v46 = vsel %vm681_vm1, %v809_v32, %v810_v36  ;;  %v2834_v47 = vld [vmem:[%s5372_s4 + $0x1d8] sm:$0xff]  ;;  %v436_v49 = vld [vmem:[#allocation6 + $0xc0] sm:$0xff] }
  0x5d   : > { %v3233_v42 = vpack.c.bf16 %v2830_v40, %v2828_v39  ;;  %3230 = vmatprep.subr.bf16.mxu1 %v3229_v37  ;;  %v2831_v55 = vld [vmem:[%s5372_s4 + $0x1c0] sm:$0xff]  ;;  %v2836_v58 = vld [vmem:[%s5372_s4 + $0x1e8] sm:$0xff]  ;;  %v2838_v59 = vld [vmem:[%s5372_s4 + $0x1f8] sm:$0xff] }
  0x5e   : > { %3232 = vmatpush1.bf16.msra.mxu1 %v3231_v41  ;;  %v440_v61 = vld [vmem:[#allocation6 + $0xe0] sm:$0xff]  ;;  %v445_v1 = vld [vmem:[#allocation6 + $0x108] sm:$0xff]  ;;  %v3241_v2 = vpack.c.bf16 %v2838_v59, %v2836_v58  ;;  %v2837_v4 = vld [vmem:[%s5372_s4 + $0x1f0] sm:$0xff] }
  0x5f   : > { %3112 = vmatpush1.bf16.msra.mxu0 %v3111_v44  ;;  %v2829_v44 = vld [vmem:[%s5372_s4 + $0x1b0] sm:$0xff]  ;;  %3234 = vmatprep.subr.bf16.mxu1 %v3233_v42  ;;  %v447_v5 = vld [vmem:[#allocation6 + $0x118] sm:$0xff]  ;;  %v444_v8 = vld [vmem:[#allocation6 + $0x100] sm:$0xff] }
  0x60   : > { %3114 = vmatprep.subr.bf16.mxu0 %v3113_v45  ;;  %v2832_v45 = vld [vmem:[%s5372_s4 + $0x1c8] sm:$0xff]  ;;  %v446_v10 = vld [vmem:[#allocation6 + $0x110] sm:$0xff]  ;;  %v3153_v14 = vpack.c.bf16 %v447_v5, %v445_v1  ;;  %v2839_v17 = vld [vmem:[%s5372_s4 + $0x200] sm:$0xff] }
  0x61   : > { %v3237_v54 = vpack.c.bf16 %v2834_v47, %v2832_v45  ;;  %v642_v11 = vld [vmem:[#allocation6 + $0x248] sm:$0xff]  ;;  %v2846_v21 = vld [vmem:[%s5372_s4 + $0x238] sm:$0xff]  ;;  %v3155_v22 = vpack.c.bf16 %v446_v10, %v444_v8  ;;  %v641_v25 = vld [vmem:[#allocation6 + $0x240] sm:$0xff] }
  0x62   : > { %v637_v15 = vld [vmem:[%s4096_s11 + $0x8] sm:$0xfe]  ;;  %v643_v26 = vld [vmem:[#allocation6 + $0x250] sm:$0xff]  ;;  %v648_v31 = vld [vmem:[#allocation6 + $0x278] sm:$0xff] }
  0x63   : > { %3116 = vmatpush1.bf16.msra.mxu0 %v3115_v50  ;;  %v438_v50 = vld [vmem:[#allocation6 + $0xd0] sm:$0xff]  ;;  %v2844_v20 = vld [vmem:[%s5372_s4 + $0x228] sm:$0xff]  ;;  %v2843_v32 = vld [vmem:[%s5372_s4 + $0x220] sm:$0xff]  ;;  %v3159_v37 = vpack.c.bf16 %v643_v26, %v641_v25 }
  0x64   : > { %3118 = vmatprep.subr.bf16.mxu0 %v3117_v51  ;;  %v3235_v51 = vpack.c.bf16 %v2829_v44, %v2827_v43  ;;  %v3147_v60 = vpack.c.bf16 %v438_v50, %v436_v49  ;;  %v646_v27 = vld [vmem:[#allocation6 + $0x268] sm:$0xff]  ;;  %v3249_v30 = vpack.c.bf16 %v2846_v21, %v2844_v20  ;;  %v2845_v33 = vld [vmem:[%s5372_s4 + $0x230] sm:$0xff]  ;;  %v410_v36 = vld [vmem:[%s4096_s11] sm:$0xff] }
  0x65   : > { %v2848_v34 = vld [vmem:[%s5372_s4 + $0x248] sm:$0xff]  ;;  %v3161_v38 = vpack.c.bf16 %v648_v31, %v646_v27  ;;  %v645_v39 = vld [vmem:[#allocation6 + $0x260] sm:$0xff]  ;;  %v647_v40 = vld [vmem:[#allocation6 + $0x270] sm:$0xff]  ;;  %v3251_v43 = vpack.c.bf16 %v2845_v33, %v2843_v32 }
  0x66   : > { %3236 = vmatpush1.bf16.msra.mxu1 %v3235_v51  ;;  %v650_v41 = vld [vmem:[#allocation6 + $0x288] sm:$0xff]  ;;  %v652_v44 = vld [vmem:[#allocation6 + $0x298] sm:$0xff]  ;;  %v2847_v47 = vld [vmem:[%s5372_s4 + $0x240] sm:$0xff]  ;;  %v3163_v49 = vpack.c.bf16 %v647_v40, %v645_v39 }
  0x67   : > { %3120 = vmatpush1.bf16.msra.mxu0 %v3119_v56  ;;  %v2833_v56 = vld [vmem:[%s5372_s4 + $0x1d0] sm:$0xff]  ;;  %3238 = vmatprep.subr.bf16.mxu1 %v3237_v54  ;;  %v3165_v50 = vpack.c.bf16 %v652_v44, %v650_v41  ;;  %v649_v51 = vld [vmem:[#allocation6 + $0x280] sm:$0xff]  ;;  %v654_v54 = vld [vmem:[#allocation6 + $0x2a8] sm:$0xff] }
  0x68   : > { %3122 = vmatprep.subr.bf16.mxu0 %v3121_v57  ;;  %v443_v57 = vld [vmem:[#allocation6 + $0xf8] sm:$0xff]  ;;  %v653_v58 = vld [vmem:[#allocation6 + $0x2a0] sm:$0xff]  ;;  %v655_v59 = vld [vmem:[#allocation6 + $0x2b0] sm:$0xff] }
  0x69   : > { %v659_v1 = vld [vmem:[#allocation6 + $0x2d0] sm:$0xff]  ;;  %v666_v8 = vld [vmem:[#allocation6 + $0x308] sm:$0xff]  ;;  %v676_v21 = vld [vmem:[#allocation6 + $0x358] sm:$0xff] }
  0x6a   : > { %556 = vmatmul.mubr.f32.vlgmr.msra.gmra.mrb[0].mxu0 %v448_v62  ;;  %v442_v62 = vld [vmem:[#allocation6 + $0xf0] sm:$0xff]  ;;  %v674_v20 = vld [vmem:[#allocation6 + $0x348] sm:$0xff]  ;;  %v636_v27 = vld [vmem:[%s4096_s11] sm:$0xfe] }
  0x6b   : > { %3124 = vmatpush1.bf16.msra.mxu0 %v3123_v63  ;;  %2820 = vmatprep.mubr.msk.f32.mxu0 %vm487_vm0, %v411_v3  ;;  %v3239_v63 = vpack.c.bf16 %v2833_v56, %v2831_v55  ;;  %v2835_v3 = vld [vmem:[%s5372_s4 + $0x1e0] sm:$0xff]  ;;  %v3151_v9 = vpack.c.bf16 %v442_v62, %v440_v61  ;;  %v656_v55 = vld [vmem:[#allocation6 + $0x2b8] sm:$0xff]  ;;  %v3171_v62 = vpack.c.bf16 %v655_v59, %v653_v58  ;;  %v770_v26 = vld [vmem:[#allocation6 + $0x368] sm:$0xff]  ;;  %v682_v33 = vrot.slane %v636_v27, 1 }
  0x6c   : > { %3126 = vmatprep.subr.bf16.mxu0 %v3125_v0  ;;  %v3149_v0 = vpack.c.bf16 %v443_v57, %v441_v53  ;;  %v3169_v57 = vpack.c.bf16 %v656_v55, %v654_v54  ;;  %v660_v61 = vld [vmem:[#allocation6 + $0x2d8] sm:$0xff]  ;;  %v3189_v25 = vpack.c.bf16 %v676_v21, %v674_v20  ;;  %v774_v40 = vld [vmem:[#allocation6 + $0x388] sm:$0xff]  ;;  %v779_v54 = vld [vmem:[#allocation6 + $0x3b0] sm:$0xff] }
  0x6d   : > { %3240 = vmatpush1.bf16.msra.mxu1 %v3239_v63  ;;  %v767_v31 = vld [vmem:[%s4087_s28 + $0x18] sm:$0x1]  ;;  %v782_v55 = vld [vmem:[#allocation6 + $0x3c8] sm:$0xff]  ;;  %v781_v59 = vld [vmem:[#allocation6 + $0x3c0] sm:$0xff] }
  0x6e   : > { %3242 = vmatprep.subr.bf16.mxu1 %v3241_v2  ;;  %v662_v2 = vld [vmem:[#allocation6 + $0x2e8] sm:$0xff]  ;;  %v813_v39 = vrot.slane %v767_v31, 1  ;;  %v776_v41 = vld [vmem:[#allocation6 + $0x398] sm:$0xff]  ;;  %v799_v20 = vld [vmem:[#allocation6 + $0x450] sm:$0xff] }
  0x6f   : > { %3128 = vmatpush1.bf16.msra.mxu0 %v3127_v6  ;;  %v2840_v6 = vld [vmem:[%s5372_s4 + $0x208] sm:$0xff]  ;;  %v3197_v44 = vpack.c.bf16 %v776_v41, %v774_v40  ;;  %v2851_v31 = vld [vmem:[%s5372_s4 + $0x260] sm:$0xff]  ;;  %v3938_v40 = vmov 0.0   ;;  %vm2713_vm9 = vmor %vm2712_vm8, %vm2711_vm7 }
  0x70   : > { %3130 = vmatprep.subr.bf16.mxu0 %v3129_v7  ;;  %v2842_v7 = vld [vmem:[%s5372_s4 + $0x218] sm:$0xff]  ;;  %v802_v21 = vld [vmem:[#allocation6 + $0x468] sm:$0xff]  ;;  %1485 = vst [vmem:[#allocation5] sm:$0x3f] %v3938_v40  ;;  %1487 = vst.msk [vmem:[#allocation5 + $0x8] sm:$0x3f] %vm1486_vm4, %v3938_v40 }
  0x71   : > { %v3245_v16 = vpack.c.bf16 %v2842_v7, %v2840_v6  ;;  %v661_v6 = vld [vmem:[#allocation6 + $0x2e0] sm:$0xff]  ;;  %v663_v7 = vld [vmem:[#allocation6 + $0x2f0] sm:$0xff] }
  0x72   : > { %v3179_v10 = vpack.c.bf16 %v663_v7, %v661_v6  ;;  %v789_v7 = vld [vmem:[#allocation6 + $0x400] sm:$0xff] }
  0x73   : > { %3132 = vmatpush1.bf16.msra.mxu0 %v3131_v12  ;;  %v644_v12 = vld [vmem:[#allocation6 + $0x258] sm:$0xff] }
  0x74   : > { %3134 = vmatprep.subr.bf16.mxu0 %v3133_v13  ;;  %v3243_v13 = vpack.c.bf16 %v2837_v4, %v2835_v3  ;;  %v3157_v24 = vpack.c.bf16 %v644_v12, %v642_v11  ;;  %v664_v3 = vld [vmem:[#allocation6 + $0x2f8] sm:$0xff]  ;;  %v665_v12 = vld [vmem:[#allocation6 + $0x300] sm:$0xff] }
  0x75   : > { %v3177_v5 = vpack.c.bf16 %v664_v3, %v662_v2  ;;  %v787_v2 = vld [vmem:[#allocation6 + $0x3f0] sm:$0xff]  ;;  %v790_v3 = vld [vmem:[#allocation6 + $0x408] sm:$0xff] }
  0x76   : > { %3244 = vmatpush1.bf16.msra.mxu1 %v3243_v13  ;;  %v667_v13 = vld [vmem:[#allocation6 + $0x310] sm:$0xff] }
  0x77   : > { %3136 = vmatpush1.bf16.msra.mxu0 %v3135_v18  ;;  %v2841_v18 = vld [vmem:[%s5372_s4 + $0x210] sm:$0xff]  ;;  %3246 = vmatprep.subr.bf16.mxu1 %v3245_v16  ;;  %v3183_v16 = vpack.c.bf16 %v667_v13, %v665_v12  ;;  %v793_v13 = vld [vmem:[#allocation6 + $0x420] sm:$0xff] }
  0x78   : > { %3138 = vmatprep.subr.bf16.mxu0 %v3137_v19  ;;  %v639_v19 = vld [vmem:[%s4096_s11 + $0x18] sm:$0x1]  ;;  %v3247_v23 = vpack.c.bf16 %v2841_v18, %v2839_v17  ;;  %v669_v18 = vld [vmem:[#allocation6 + $0x320] sm:$0xff] }
  0x79   : > { %v686_v29 = vrot.slane %v639_v19, 1  ;;  %v671_v19 = vld [vmem:[#allocation6 + $0x330] sm:$0xff] }
  0x7a   : > { %3248 = vmatpush1.bf16.msra.mxu1 %v3247_v23  ;;  %v673_v23 = vld [vmem:[#allocation6 + $0x340] sm:$0xff] }
  0x7b   : > { %3140 = vmatpush1.bf16.msra.mxu0 %v3139_v28  ;;  %v685_v28 = vrot.slane %v637_v15, 1  ;;  %3250 = vmatprep.subr.bf16.mxu1 %v3249_v30  ;;  %v672_v15 = vld [vmem:[#allocation6 + $0x338] sm:$0xff]  ;;  %v765_v30 = vld [vmem:[%s4087_s28 + $0x8] sm:$0xfe] }
  0x7c   : > { %3142 = vmatprep.subr.bf16.mxu0 %v3141_v35  ;;  %v2850_v35 = vld [vmem:[%s5372_s4 + $0x258] sm:$0xff] }
  0x7d   : > { %v687_v42 = vsel %vm681_vm1, %v685_v28, %v686_v29  ;;  %v3253_v45 = vpack.c.bf16 %v2850_v35, %v2848_v34  ;;  %v638_v28 = vld [vmem:[%s4096_s11 + $0x10] sm:$0x1]  ;;  %v772_v29 = vld [vmem:[#allocation6 + $0x378] sm:$0xff] }
  0x7e   : > { %3252 = vmatpush1.bf16.msra.mxu1 %v3251_v43  ;;  %v683_v34 = vrot.slane %v638_v28, 1  ;;  %v3193_v35 = vpack.c.bf16 %v772_v29, %v770_v26  ;;  %v803_v26 = vld [vmem:[#allocation6 + $0x470] sm:$0xff]  ;;  %v2852_v28 = vld [vmem:[%s5372_s4 + $0x268] sm:$0xff]  ;;  %v2854_v29 = vld [vmem:[%s5372_s4 + $0x278] sm:$0xff] }
  0x7f   : > { %3144 = vmatpush1.bf16.msra.mxu0 %v3143_v48  ;;  %v2849_v48 = vld [vmem:[%s5372_s4 + $0x250] sm:$0xff]  ;;  %3254 = vmatprep.subr.bf16.mxu1 %v3253_v45  ;;  %v773_v45 = vld [vmem:[#allocation6 + $0x380] sm:$0xff] }
  0x80   : > { %3146 = vmatprep.subr.bf16.mxu0 %v3145_v52  ;;  %v651_v52 = vld [vmem:[#allocation6 + $0x290] sm:$0xff]  ;;  %v3255_v53 = vpack.c.bf16 %v2849_v48, %v2847_v47 }
  0x81   : > { %v3167_v56 = vpack.c.bf16 %v651_v52, %v649_v51  ;;  %v775_v47 = vld [vmem:[#allocation6 + $0x390] sm:$0xff] }
  0x82   : > { %3256 = vmatpush1.bf16.msra.mxu1 %v3255_v53  ;;  %v3199_v51 = vpack.c.bf16 %v775_v47, %v773_v45  ;;  %v777_v53 = vld [vmem:[#allocation6 + $0x3a0] sm:$0xff]  ;;  %v2861_v47 = vld [vmem:[%s5372_s4 + $0x2b0] sm:$0xff] }
  0x83   : > { %3148 = vmatpush1.bf16.msra.mxu0 %v3147_v60  ;;  %v658_v60 = vld [vmem:[#allocation6 + $0x2c8] sm:$0xff]  ;;  %v2859_v45 = vld [vmem:[%s5372_s4 + $0x2a0] sm:$0xff] }
  0x84   : > { %3150 = vmatprep.subr.bf16.mxu0 %v3149_v0  ;;  %v3173_v63 = vpack.c.bf16 %v660_v61, %v658_v60  ;;  %v657_v0 = vld [vmem:[#allocation6 + $0x2c0] sm:$0xff]  ;;  %v783_v60 = vld [vmem:[#allocation6 + $0x3d0] sm:$0xff]  ;;  %v786_v61 = vld [vmem:[#allocation6 + $0x3e8] sm:$0xff] }
  0x85   : > { %v3175_v4 = vpack.c.bf16 %v659_v1, %v657_v0  ;;  %v785_v1 = vld [vmem:[#allocation6 + $0x3e0] sm:$0xff] }
  0x87   : > { %3152 = vmatpush1.bf16.msra.mxu0 %v3151_v9  ;;  %v668_v9 = vld [vmem:[#allocation6 + $0x318] sm:$0xff] }
  0x88   : > { %3154 = vmatprep.subr.bf16.mxu0 %v3153_v14  ;;  %v3181_v11 = vpack.c.bf16 %v668_v9, %v666_v8  ;;  %v670_v14 = vld [vmem:[#allocation6 + $0x328] sm:$0xff]  ;;  %v791_v8 = vld [vmem:[#allocation6 + $0x410] sm:$0xff] }
  0x89   : > { %v3185_v17 = vpack.c.bf16 %v672_v15, %v670_v14  ;;  %v794_v9 = vld [vmem:[#allocation6 + $0x428] sm:$0xff]  ;;  %v795_v14 = vld [vmem:[#allocation6 + $0x430] sm:$0xff] }
  0x8a   : > { %v798_v15 = vld [vmem:[#allocation6 + $0x448] sm:$0xff] }
  0x8b   : > { %3156 = vmatpush1.bf16.msra.mxu0 %v3155_v22  ;;  %v3187_v22 = vpack.c.bf16 %v671_v19, %v669_v18  ;;  %v797_v19 = vld [vmem:[#allocation6 + $0x440] sm:$0xff] }
  0x8c   : > { %3158 = vmatprep.subr.bf16.mxu0 %v3157_v24  ;;  %v675_v24 = vld [vmem:[#allocation6 + $0x350] sm:$0xff] }
  0x8d   : > { %v3191_v32 = vpack.c.bf16 %v675_v24, %v673_v23  ;;  %v3223_v23 = vpack.c.bf16 %v799_v20, %v797_v19  ;;  %v959_v20 = vld [vmem:[%s5372_s4] sm:$0xff] }
  0x8e   : > { %630 = vmatmul.mubr.f32.vlgmr.msra.gmra.mrb[0].mxu0 %v410_v36  ;;  %v769_v36 = vld [vmem:[#allocation6 + $0x360] sm:$0xff] }
  0x8f   : > { %3160 = vmatpush1.bf16.msra.mxu0 %v3159_v37  ;;  %2821 = vmatprep.mubr.msk.f32.mxu0 %vm487_vm0, %v687_v42  ;;  %v771_v37 = vld [vmem:[#allocation6 + $0x370] sm:$0xff]  ;;  %v684_v42 = vsel %vm681_vm1, %v682_v33, %v683_v34  ;;  %v893_v34 = vlaneseq }
  0x90   : > { %3162 = vmatprep.subr.bf16.mxu0 %v3161_v38  ;;  %v812_v38 = vrot.slane %v765_v30, 1  ;;  %v3195_v43 = vpack.c.bf16 %v771_v37, %v769_v36  ;;  %v3257_v30 = vpack.c.bf16 %v2854_v29, %v2852_v28  ;;  %v965_v29 = vld [vmem:[%s5372_s4 + $0x30] sm:$0xff]  ;;  %v972_v36 = vld [vmem:[%s5372_s4 + $0x68] sm:$0xff] }
  0x91   : > { %vm4221_vm2 = vcmp.lt.s32.totalorder %v893_v34, 192 }
  0x92   : > { %v814_v48 = vsel %vm681_vm1, %v812_v38, %v813_v39  ;;  %3258 = vmatprep.subr.bf16.mxu1 %v3257_v30  ;;  %v2855_v38 = vld [vmem:[%s5372_s4 + $0x280] sm:$0xff]  ;;  %v2857_v39 = vld [vmem:[%s5372_s4 + $0x290] sm:$0xff]  ;;  %955 = vst.msk [vmem:[#allocation4 + $0x4] ss:$8 sm:$0x3] %vm4221_vm2, %v3938_v40  ;;  %v968_v30 = vld [vmem:[%s5372_s4 + $0x48] sm:$0xff] }
  0x93   : > { %3164 = vmatpush1.bf16.msra.mxu0 %v3163_v49  ;;  %v778_v49 = vld [vmem:[#allocation6 + $0x3a8] sm:$0xff]  ;;  %914 = vst.msk [vmem:[#allocation3] ss:$8 sm:$0x3] %vm4221_vm2, %v3938_v40  ;;  %v3263_v41 = vpack.c.bf16 %v2857_v39, %v2855_v38 }
  0x94   : > { %3166 = vmatprep.subr.bf16.mxu0 %v3165_v50  ;;  %v780_v50 = vld [vmem:[#allocation6 + $0x3b8] sm:$0xff] }
  0x95   : > { %v3201_v52 = vpack.c.bf16 %v780_v50, %v778_v49  ;;  %v2864_v49 = vld [vmem:[%s5372_s4 + $0x2c8] sm:$0xff]  ;;  %v2866_v50 = vld [vmem:[%s5372_s4 + $0x2d8] sm:$0xff] }
  0x97   : > { %3168 = vmatpush1.bf16.msra.mxu0 %v3167_v56  ;;  %v784_v56 = vld [vmem:[#allocation6 + $0x3d8] sm:$0xff] }
  0x98   : > { %3170 = vmatprep.subr.bf16.mxu0 %v3169_v57  ;;  %v3203_v57 = vpack.c.bf16 %v779_v54, %v777_v53  ;;  %v3205_v58 = vpack.c.bf16 %v784_v56, %v782_v55  ;;  %v2865_v53 = vld [vmem:[%s5372_s4 + $0x2d0] sm:$0xff]  ;;  %v2868_v55 = vld [vmem:[%s5372_s4 + $0x2e8] sm:$0xff]  ;;  %v2870_v56 = vld [vmem:[%s5372_s4 + $0x2f8] sm:$0xff] }
  0x9b   : > { %3172 = vmatpush1.bf16.msra.mxu0 %v3171_v62  ;;  %v788_v62 = vld [vmem:[#allocation6 + $0x3f8] sm:$0xff] }
  0x9c   : > { %3174 = vmatprep.subr.bf16.mxu0 %v3173_v63  ;;  %v3207_v63 = vpack.c.bf16 %v783_v60, %v781_v59  ;;  %v3209_v0 = vpack.c.bf16 %v788_v62, %v786_v61  ;;  %v2869_v59 = vld [vmem:[%s5372_s4 + $0x2f0] sm:$0xff]  ;;  %v960_v61 = vld [vmem:[%s5372_s4 + $0x8] sm:$0xff]  ;;  %v962_v62 = vld [vmem:[%s5372_s4 + $0x18] sm:$0xff] }
  0x9f   : > { %3176 = vmatpush1.bf16.msra.mxu0 %v3175_v4  ;;  %v792_v4 = vld [vmem:[#allocation6 + $0x418] sm:$0xff] }
  0xa0   : > { %3178 = vmatprep.subr.bf16.mxu0 %v3177_v5  ;;  %v3211_v5 = vpack.c.bf16 %v787_v2, %v785_v1  ;;  %v3213_v6 = vpack.c.bf16 %v792_v4, %v790_v3  ;;  %v891_v2 = vld [vmem:[%s5370_s2] ss:$4 sm:$0x3] }
  0xa3   : > { %3180 = vmatpush1.bf16.msra.mxu0 %v3179_v10  ;;  %v796_v10 = vld [vmem:[#allocation6 + $0x438] sm:$0xff] }
  0xa4   : > { %3182 = vmatprep.subr.bf16.mxu0 %v3181_v11  ;;  %v3215_v11 = vpack.c.bf16 %v791_v8, %v789_v7  ;;  %v3217_v12 = vpack.c.bf16 %v796_v10, %v794_v9 }
  0xa7   : > { %3184 = vmatpush1.bf16.msra.mxu0 %v3183_v16  ;;  %v800_v16 = vld [vmem:[#allocation6 + $0x458] sm:$0xff] }
  0xa8   : > { %3186 = vmatprep.subr.bf16.mxu0 %v3185_v17  ;;  %v3219_v17 = vpack.c.bf16 %v795_v14, %v793_v13  ;;  %v3221_v18 = vpack.c.bf16 %v800_v16, %v798_v15 }
  0xab   : > { %3188 = vmatpush1.bf16.msra.mxu0 %v3187_v22  ;;  %v804_v22 = vld [vmem:[#allocation6 + $0x478] sm:$0xff] }
  0xac   : > { %3190 = vmatprep.subr.bf16.mxu0 %v3189_v25  ;;  %v3225_v24 = vpack.c.bf16 %v804_v22, %v802_v21  ;;  %v801_v25 = vld [vmem:[#allocation6 + $0x460] sm:$0xff]  ;;  %v961_v21 = vld [vmem:[%s5372_s4 + $0x10] sm:$0xff]  ;;  %v964_v22 = vld [vmem:[%s5372_s4 + $0x28] sm:$0xff] }
  0xad   : > { %v3227_v27 = vpack.c.bf16 %v803_v26, %v801_v25  ;;  %v963_v25 = vld [vmem:[%s5372_s4 + $0x20] sm:$0xff] }
  0xaf   : > { %3192 = vmatpush1.bf16.msra.mxu0 %v3191_v32  ;;  %v2853_v32 = vld [vmem:[%s5372_s4 + $0x270] sm:$0xff] }
  0xb0   : > { %3194 = vmatprep.subr.bf16.mxu0 %v3193_v35  ;;  %v3259_v33 = vpack.c.bf16 %v2853_v32, %v2851_v31  ;;  %v2858_v35 = vld [vmem:[%s5372_s4 + $0x298] sm:$0xff] }
  0xb1   : > { %v970_v31 = vld [vmem:[%s5372_s4 + $0x58] sm:$0xff] }
  0xb2   : > { %756 = vmatmul.mubr.f32.vlgmr.msra.gmra.mrb[0].mxu0 %v684_v42  ;;  %3260 = vmatpush1.bf16.msra.mxu1 %v3259_v33  ;;  %v2860_v42 = vld [vmem:[%s5372_s4 + $0x2a8] sm:$0xff]  ;;  %v3283_v33 = vpack.c.bf16 %v965_v29, %v963_v25  ;;  %v1511_v29 = vld [vmem:[#allocation8 + $0x60] sm:$0xff] }
  0xb3   : > { %3196 = vmatpush1.bf16.msra.mxu0 %v3195_v43  ;;  %2822 = vmatprep.mubr.msk.f32.mxu0 %vm487_vm0, %v814_v48  ;;  %v2862_v43 = vld [vmem:[%s5372_s4 + $0x2b8] sm:$0xff]  ;;  %v3267_v48 = vpack.c.bf16 %v2861_v47, %v2859_v45 }
  0xb4   : > { %3198 = vmatprep.subr.bf16.mxu0 %v3197_v44  ;;  %v3265_v44 = vpack.c.bf16 %v2862_v43, %v2860_v42  ;;  %v973_v42 = vld [vmem:[%s5372_s4 + $0x70] sm:$0xff]  ;;  %v976_v43 = vld [vmem:[%s5372_s4 + $0x88] sm:$0xff] }
  0xb7   : > { %3200 = vmatpush1.bf16.msra.mxu0 %v3199_v51  ;;  %v3269_v51 = vpack.c.bf16 %v2866_v50, %v2864_v49  ;;  %v977_v49 = vld [vmem:[%s5372_s4 + $0x90] sm:$0xff]  ;;  %v980_v50 = vld [vmem:[%s5372_s4 + $0xa8] sm:$0xff] }
  0xb8   : > { %3202 = vmatprep.subr.bf16.mxu0 %v3201_v52  ;;  %v2863_v52 = vld [vmem:[%s5372_s4 + $0x2c0] sm:$0xff] }
  0xb9   : > { %v3271_v54 = vpack.c.bf16 %v2865_v53, %v2863_v52 }
  0xbb   : > { %3204 = vmatpush1.bf16.msra.mxu0 %v3203_v57  ;;  %v2867_v57 = vld [vmem:[%s5372_s4 + $0x2e0] sm:$0xff] }
  0xbc   : > { %3206 = vmatprep.subr.bf16.mxu0 %v3205_v58  ;;  %v3273_v58 = vpack.c.bf16 %v2870_v56, %v2868_v55  ;;  %v3275_v60 = vpack.c.bf16 %v2869_v59, %v2867_v57  ;;  %v981_v55 = vld [vmem:[%s5372_s4 + $0xb0] sm:$0xff]  ;;  %v984_v56 = vld [vmem:[%s5372_s4 + $0xc8] sm:$0xff]  ;;  %v986_v57 = vld [vmem:[%s5372_s4 + $0xd8] sm:$0xff] }
  0xbd   : > { %v1502_v59 = vld [vmem:[#allocation8 + $0x18] sm:$0xff] }
  0xbf   : > { %3208 = vmatpush1.bf16.msra.mxu0 %v3207_v63  ;;  %v3277_v63 = vpack.c.bf16 %v962_v62, %v960_v61  ;;  %v983_v62 = vld [vmem:[%s5372_s4 + $0xc0] sm:$0xff] }
  0xc0   : > { %3210 = vmatprep.subr.bf16.mxu0 %v3209_v0  ;;  %v894_v0 = vshrl.u32 %v893_v34, 7  ;;  %v3285_v34 = vpack.c.bf16 %v970_v31, %v968_v30  ;;  %v991_v31 = vld [vmem:[%s5372_s4 + $0x100] sm:$0xff] }
  0xc2   : > { %v4280_v1 = vsub.s32 0, %v894_v0  ;;  %v4285_v3 = vsub.s32 1, %v894_v0 }
  0xc3   : > { %3212 = vmatpush1.bf16.msra.mxu0 %v3211_v5 }
  0xc4   : > { %3214 = vmatprep.subr.bf16.mxu0 %v3213_v6  ;;  %v896_v4 = vrot.slane %v891_v2, %v4280_v1  ;;  %v900_v5 = vrot.slane %v891_v2, %v4285_v3  ;;  %v1501_v2 = vld [vmem:[#allocation8 + $0x10] sm:$0xff] }
  0xc7   : > { %3216 = vmatpush1.bf16.msra.mxu0 %v3215_v11 }
  0xc8   : > { %3218 = vmatprep.subr.bf16.mxu0 %v3217_v12 }
  0xcb   : > { %3220 = vmatpush1.bf16.msra.mxu0 %v3219_v17 }
  0xcc   : > { %3222 = vmatprep.subr.bf16.mxu0 %v3221_v18 }
  0xcf   : > { %3224 = vmatpush1.bf16.msra.mxu0 %v3223_v23  ;;  %v966_v23 = vld [vmem:[%s5372_s4 + $0x38] sm:$0xff] }
  0xd0   : > { %3226 = vmatprep.subr.bf16.mxu0 %v3225_v24  ;;  %v3279_v24 = vpack.c.bf16 %v961_v21, %v959_v20  ;;  %v3281_v28 = vpack.c.bf16 %v966_v23, %v964_v22  ;;  %v1507_v21 = vld [vmem:[#allocation8 + $0x40] sm:$0xff]  ;;  %v1509_v22 = vld [vmem:[#allocation8 + $0x50] sm:$0xff]  ;;  %v992_v23 = vld [vmem:[%s5372_s4 + $0x108] sm:$0xff] }
  0xd1   : > { %v3479_v25 = vpack.c.bf16 %v1509_v22, %v1507_v21  ;;  %v1529_v21 = vld [vmem:[#allocation8 + $0xf0] sm:$0xff]  ;;  %v2878_v22 = vld [vmem:[%s5372_s4 + $0x328] sm:$0xff] }
  0xd3   : > { %3228 = vmatpush1.bf16.msra.mxu0 %v3227_v27 }
  0xd6   : > { %883 = vmatmul.mubr.f32.vlgmr.msra.gmra.mrb[0].mxu0 %v4131_v46  ;;  %v2856_v46 = vld [vmem:[%s5372_s4 + $0x288] sm:$0xff] }
  0xd7   : > { %v3261_v37 = vpack.c.bf16 %v2858_v35, %v2856_v46  ;;  %v967_v46 = vld [vmem:[%s5372_s4 + $0x40] sm:$0xff]  ;;  %v969_v35 = vld [vmem:[%s5372_s4 + $0x50] sm:$0xff] }
  0xd8   : > { %v3287_v38 = vpack.c.bf16 %v969_v35, %v967_v46  ;;  %v996_v46 = vld [vmem:[%s5372_s4 + $0x128] sm:$0xff]  ;;  %v998_v35 = vld [vmem:[%s5372_s4 + $0x138] sm:$0xff] }
  0xd9   : > { %3262 = vmatprep.subr.bf16.mxu1 %v3261_v37  ;;  %v974_v37 = vld [vmem:[%s5372_s4 + $0x78] sm:$0xff] }
  0xda   : > { %3264 = vmatpush1.bf16.msra.mxu1 %v3263_v41  ;;  %v3289_v39 = vpack.c.bf16 %v974_v37, %v972_v36  ;;  %v971_v41 = vld [vmem:[%s5372_s4 + $0x60] sm:$0xff] }
  0xdb   : > { %3266 = vmatprep.subr.bf16.mxu1 %v3265_v44  ;;  %v978_v44 = vld [vmem:[%s5372_s4 + $0x98] sm:$0xff]  ;;  %v3291_v45 = vpack.c.bf16 %v973_v42, %v971_v41  ;;  %v1515_v41 = vld [vmem:[#allocation8 + $0x80] sm:$0xff]  ;;  %v3313_v42 = vpack.c.bf16 %v998_v35, %v996_v46 }
  0xdc   : > { %v3293_v47 = vpack.c.bf16 %v978_v44, %v976_v43  ;;  %v995_v43 = vld [vmem:[%s5372_s4 + $0x120] sm:$0xff]  ;;  %v997_v44 = vld [vmem:[%s5372_s4 + $0x130] sm:$0xff] }
  0xdd   : > { %v2881_v35 = vld [vmem:[%s5372_s4 + $0x340] sm:$0xff] }
  0xde   : > { %3268 = vmatpush1.bf16.msra.mxu1 %v3267_v48  ;;  %v975_v48 = vld [vmem:[%s5372_s4 + $0x80] sm:$0xff] }
  0xdf   : > { %3270 = vmatprep.subr.bf16.mxu1 %v3269_v51  ;;  %v982_v51 = vld [vmem:[%s5372_s4 + $0xb8] sm:$0xff]  ;;  %v3295_v52 = vpack.c.bf16 %v977_v49, %v975_v48  ;;  %v1000_v48 = vld [vmem:[%s5372_s4 + $0x148] sm:$0xff] }
  0xe0   : > { %v3297_v53 = vpack.c.bf16 %v982_v51, %v980_v50  ;;  %v1002_v49 = vld [vmem:[%s5372_s4 + $0x158] sm:$0xff]  ;;  %v3315_v51 = vpack.c.bf16 %v997_v44, %v995_v43  ;;  %v2887_v43 = vld [vmem:[%s5372_s4 + $0x370] sm:$0xff]  ;;  %v2890_v44 = vld [vmem:[%s5372_s4 + $0x388] sm:$0xff] }
  0xe2   : > { %3272 = vmatpush1.bf16.msra.mxu1 %v3271_v54  ;;  %v979_v54 = vld [vmem:[%s5372_s4 + $0xa0] sm:$0xff] }
  0xe3   : > { %3274 = vmatprep.subr.bf16.mxu1 %v3273_v58  ;;  %v1500_v58 = vld [vmem:[#allocation8 + $0x8] sm:$0xff]  ;;  %v3299_v61 = vpack.c.bf16 %v981_v55, %v979_v54  ;;  %v1519_v54 = vld [vmem:[#allocation8 + $0xa0] sm:$0xff]  ;;  %v3317_v55 = vpack.c.bf16 %v1002_v49, %v1000_v48 }
  0xe4   : > { %v3469_v0 = vpack.c.bf16 %v1502_v59, %v1500_v58  ;;  %v1521_v59 = vld [vmem:[#allocation8 + $0xb0] sm:$0xff]  ;;  %v2889_v49 = vld [vmem:[%s5372_s4 + $0x380] sm:$0xff] }
  0xe6   : > { %3276 = vmatpush1.bf16.msra.mxu1 %v3275_v60  ;;  %v1499_v60 = vld [vmem:[#allocation8] sm:$0xff]  ;;  %3470 = vmatprep.subr.bf16.mxu0 %v3469_v0  ;;  %v1524_v0 = vld [vmem:[#allocation8 + $0xc8] sm:$0xff] }
  0xe7   : > { %3278 = vmatprep.subr.bf16.mxu1 %v3277_v63  ;;  %v985_v63 = vld [vmem:[%s5372_s4 + $0xd0] sm:$0xff] }
 0x1a9   : > { %v884_v6 = vpop.f32.mrb[0].mxu0 }
 0x1aa   : > { %v903_v7 = vadd.f32 %v896_v4, %v884_v6  ;;  %v886_v8 = vpop.f32.mrb[1].mxu0  ;;  %v3301_v4 = vpack.c.bf16 %v986_v57, %v984_v56  ;;  %v990_v6 = vld [vmem:[%s5372_s4 + $0xf8] sm:$0xff]  ;;  %v999_v56 = vld [vmem:[%s5372_s4 + $0x140] sm:$0xff]  ;;  %v1001_v57 = vld [vmem:[%s5372_s4 + $0x150] sm:$0xff] }
 0x1ab   : > { %v904_v9 = vadd.f32 %v900_v5, %v886_v8  ;;  %v988_v5 = vld [vmem:[%s5372_s4 + $0xe8] sm:$0xff] }
 0x1ac   : > { %v905_v10 = vmax.f32 %v903_v7, 0.0  ;;  %v3471_v7 = vpack.c.bf16 %v1501_v2, %v1499_v60  ;;  %v1504_v8 = vld [vmem:[#allocation8 + $0x28] sm:$0xff]  ;;  %v1526_v2 = vld [vmem:[#allocation8 + $0xd8] sm:$0xff] }
 0x1ad   : > { %v906_v11 = vmax.f32 %v904_v9, 0.0  ;;  %v1506_v9 = vld [vmem:[#allocation8 + $0x38] sm:$0xff]  ;;  %v1004_v60 = vld [vmem:[%s5372_s4 + $0x168] sm:$0xff] }
 0x1ae   : > { %907 = vst [vmem:[#allocation2] sm:$0xff] %v905_v10  ;;  %v1503_v10 = vld [vmem:[#allocation8 + $0x20] sm:$0xff]  ;;  %3472 = vmatpush1.bf16.msra.mxu0 %v3471_v7  ;;  %v1005_v7 = vld [vmem:[%s5372_s4 + $0x170] sm:$0xff] }
 0x1af   : > { %909 = vst.msk [vmem:[#allocation2 + $0x8] sm:$0xff] %vm908_vm3, %v906_v11  ;;  %v1505_v11 = vld [vmem:[#allocation8 + $0x30] sm:$0xff] }
 0x1b6   : > { %v917_v12 = vld [vmem:[#allocation2 + $0x1] ss:$8 sm:$0x3]  ;;  %v922_v13 = vld [vmem:[#allocation2 + $0x3] ss:$8 sm:$0x3] }
 0x1b7   : > { %v927_v14 = vld [vmem:[#allocation2 + $0x5] ss:$8 sm:$0x3]  ;;  %v932_v15 = vld [vmem:[#allocation2 + $0x7] ss:$8 sm:$0x3] }
 0x1b8   : > { %919 = vst.msk [vmem:[#allocation3 + $0x1] ss:$8 sm:$0x3] %vm4221_vm2, %v917_v12  ;;  %924 = vst.msk [vmem:[#allocation3 + $0x2] ss:$8 sm:$0x3] %vm4221_vm2, %v922_v13  ;;  %v3473_v12 = vpack.c.bf16 %v1506_v9, %v1504_v8  ;;  %v3475_v13 = vpack.c.bf16 %v1505_v11, %v1503_v10  ;;  %v3493_v8 = vpack.c.bf16 %v1526_v2, %v1524_v0 }
 0x1b9   : > { %929 = vst.msk [vmem:[#allocation3 + $0x3] ss:$8 sm:$0x3] %vm4221_vm2, %v927_v14  ;;  %934 = vst.msk [vmem:[#allocation3 + $0x4] ss:$8 sm:$0x3] %vm4221_vm2, %v932_v15  ;;  %v3303_v14 = vpack.c.bf16 %v985_v63, %v983_v62  ;;  %v3491_v62 = vpack.c.bf16 %v1521_v59, %v1519_v54  ;;  %v3319_v63 = vpack.c.bf16 %v1001_v57, %v999_v56 }
 0x1ba   : > { %v936_v16 = vld [vmem:[#allocation2] ss:$8 sm:$0x3]  ;;  %v940_v17 = vld [vmem:[#allocation2 + $0x2] ss:$8 sm:$0x3]  ;;  %3474 = vmatprep.subr.bf16.mxu0 %v3473_v12 }
 0x1bb   : > { %937 = vst.msk [vmem:[#allocation4] ss:$8 sm:$0x3] %vm4221_vm2, %v936_v16  ;;  %942 = vst.msk [vmem:[#allocation4 + $0x1] ss:$8 sm:$0x3] %vm4221_vm2, %v940_v17  ;;  %3476 = vmatpush1.bf16.msra.mxu0 %v3475_v13 }
 0x1bc   : > { %v945_v18 = vld [vmem:[#allocation2 + $0x4] ss:$8 sm:$0x3]  ;;  %v950_v19 = vld [vmem:[#allocation2 + $0x6] ss:$8 sm:$0x3] }
 0x1bd   : > { %947 = vst.msk [vmem:[#allocation4 + $0x2] ss:$8 sm:$0x3] %vm4221_vm2, %v945_v18  ;;  %952 = vst.msk [vmem:[#allocation4 + $0x3] ss:$8 sm:$0x3] %vm4221_vm2, %v950_v19  ;;  %v3305_v18 = vpack.c.bf16 %v990_v6, %v988_v5 }
 0x1be   : > { %v987_v15 = vld [vmem:[%s5372_s4 + $0xe0] sm:$0xff]  ;;  %v1508_v16 = vld [vmem:[#allocation8 + $0x48] sm:$0xff]  ;;  %v1510_v17 = vld [vmem:[#allocation8 + $0x58] sm:$0xff] }
 0x1bf   : > { %v989_v19 = vld [vmem:[%s5372_s4 + $0xf0] sm:$0xff]  ;;  %v3477_v20 = vpack.c.bf16 %v1510_v17, %v1508_v16  ;;  %v1003_v6 = vld [vmem:[%s5372_s4 + $0x160] sm:$0xff]  ;;  %v2874_v10 = vld [vmem:[%s5372_s4 + $0x308] sm:$0xff] }
 0x1c0   : > { %v958_v32 = vld [vmem:[#allocation3 + $0x8] sm:$0xf]  ;;  %v1525_v9 = vld [vmem:[#allocation8 + $0xd0] sm:$0xff]  ;;  %v3323_v13 = vpack.c.bf16 %v1005_v7, %v1003_v6  ;;  %v1527_v16 = vld [vmem:[#allocation8 + $0xe0] sm:$0xff] }
 0x1c1   : > { %3478 = vmatprep.subr.bf16.mxu0 %v3477_v20  ;;  %v2876_v11 = vld [vmem:[%s5372_s4 + $0x318] sm:$0xff]  ;;  %v2895_v56 = vld [vmem:[%s5372_s4 + $0x3b0] sm:$0xff]  ;;  %v2898_v57 = vld [vmem:[%s5372_s4 + $0x3c8] sm:$0xff] }
 0x1c2   : > { %3480 = vmatpush1.bf16.msra.mxu0 %v3479_v25  ;;  %v3325_v17 = vpack.c.bf16 %v2876_v11, %v2874_v10  ;;  %v3499_v25 = vpack.c.bf16 %v1529_v21, %v1527_v16  ;;  %v2904_v0 = vld [vmem:[%s5372_s4 + $0x3f8] sm:$0xff]  ;;  %v2903_v6 = vld [vmem:[%s5372_s4 + $0x3f0] sm:$0xff]  ;;  %v2906_v7 = vld [vmem:[%s5372_s4 + $0x408] sm:$0xff] }
 0x1c3   : > { %v2905_v11 = vld [vmem:[%s5372_s4 + $0x400] sm:$0xff] }
 0x1c4   : > { %v1008_v26 = vld [vmem:[#allocation4 + $0x8] sm:$0xf]  ;;  %v1007_v27 = vld [vmem:[#allocation4] sm:$0xf] }
 0x1c5   : > { %2871 = vmatprep.mubr.msk.f32.mxu1 %vm908_vm3, %v1008_v26  ;;  %v3307_v26 = vpack.c.bf16 %v989_v19, %v987_v15  ;;  %v1530_v15 = vld [vmem:[#allocation8 + $0xf8] sm:$0xff]  ;;  %v2875_v19 = vld [vmem:[%s5372_s4 + $0x310] sm:$0xff] }
 0x1c6   : > { %1126 = vmatmul.mubr.f32.vlgmr.msra.gmra.mrb[0].mxu1 %v1007_v27  ;;  %v1512_v27 = vld [vmem:[#allocation8 + $0x68] sm:$0xff] }
 0x1c7   : > { %3280 = vmatpush1.bf16.msra.mxu1 %v3279_v24  ;;  %2872 = vmatprep.mubr.msk.f32.mxu1 %vm908_vm3, %v958_v32  ;;  %v994_v24 = vld [vmem:[%s5372_s4 + $0x118] sm:$0xff]  ;;  %v993_v32 = vld [vmem:[%s5372_s4 + $0x110] sm:$0xff] }
 0x1c8   : > { %3282 = vmatprep.subr.bf16.mxu1 %v3281_v28  ;;  %v1514_v28 = vld [vmem:[#allocation8 + $0x78] sm:$0xff]  ;;  %v3309_v30 = vpack.c.bf16 %v994_v24, %v992_v23  ;;  %v3311_v37 = vpack.c.bf16 %v993_v32, %v991_v31  ;;  %v2882_v32 = vld [vmem:[%s5372_s4 + $0x348] sm:$0xff] }
 0x1c9   : > { %v2880_v23 = vld [vmem:[%s5372_s4 + $0x338] sm:$0xff] }
 0x1ca   : > { %v1207_v24 = vld [vmem:[#allocation3 + $0x8] sm:$0x1e] }
 0x1cb   : > { %3284 = vmatpush1.bf16.msra.mxu1 %v3283_v33  ;;  %v3481_v33 = vpack.c.bf16 %v1514_v28, %v1512_v27  ;;  %v3329_v27 = vpack.c.bf16 %v2880_v23, %v2878_v22  ;;  %v2877_v28 = vld [vmem:[%s5372_s4 + $0x320] sm:$0xff]  ;;  %v1260_v31 = vrot.slane %v1207_v24, 1  ;;  %v2915_v24 = vld [vmem:[%s5372_s4 + $0x450] sm:$0xff] }
 0x1cc   : > { %3286 = vmatprep.subr.bf16.mxu1 %v3285_v34  ;;  %v1513_v34 = vld [vmem:[#allocation8 + $0x70] sm:$0xff]  ;;  %v2913_v23 = vld [vmem:[%s5372_s4 + $0x440] sm:$0xff] }
 0x1cd   : > { %v3483_v36 = vpack.c.bf16 %v1513_v34, %v1511_v29  ;;  %3482 = vmatprep.subr.bf16.mxu0 %v3481_v33  ;;  %v2879_v29 = vld [vmem:[%s5372_s4 + $0x330] sm:$0xff]  ;;  %v2884_v33 = vld [vmem:[%s5372_s4 + $0x358] sm:$0xff] }
 0x1ce   : > { %v3331_v34 = vpack.c.bf16 %v2879_v29, %v2877_v28  ;;  %v3333_v46 = vpack.c.bf16 %v2884_v33, %v2882_v32  ;;  %v2917_v29 = vld [vmem:[%s5372_s4 + $0x460] sm:$0xff]  ;;  %v2925_v32 = vld [vmem:[%s5372_s4 + $0x498] sm:$0xff] }
 0x1cf   : > { %3288 = vmatpush1.bf16.msra.mxu1 %v3287_v38  ;;  %v1516_v38 = vld [vmem:[#allocation8 + $0x88] sm:$0xff]  ;;  %3484 = vmatpush1.bf16.msra.mxu0 %v3483_v36  ;;  %v2883_v36 = vld [vmem:[%s5372_s4 + $0x350] sm:$0xff] }
 0x1d0   : > { %3290 = vmatprep.subr.bf16.mxu1 %v3289_v39  ;;  %v1518_v39 = vld [vmem:[#allocation8 + $0x98] sm:$0xff] }
 0x1d3   : > { %3292 = vmatpush1.bf16.msra.mxu1 %v3291_v45  ;;  %v3485_v45 = vpack.c.bf16 %v1518_v39, %v1516_v38  ;;  %v2888_v38 = vld [vmem:[%s5372_s4 + $0x378] sm:$0xff]  ;;  %v3335_v39 = vpack.c.bf16 %v2883_v36, %v2881_v35  ;;  %v2924_v35 = vld [vmem:[%s5372_s4 + $0x490] sm:$0xff] }
 0x1d4   : > { %3294 = vmatprep.subr.bf16.mxu1 %v3293_v47  ;;  %v1517_v47 = vld [vmem:[#allocation8 + $0x90] sm:$0xff] }
 0x1d5   : > { %v3487_v50 = vpack.c.bf16 %v1517_v47, %v1515_v41  ;;  %3486 = vmatprep.subr.bf16.mxu0 %v3485_v45  ;;  %v2892_v45 = vld [vmem:[%s5372_s4 + $0x398] sm:$0xff]  ;;  %v1206_v36 = vld [vmem:[#allocation3] sm:$0x1e] }
 0x1d6   : > { %v3341_v48 = vpack.c.bf16 %v2892_v45, %v2890_v44  ;;  %v2926_v44 = vld [vmem:[%s5372_s4 + $0x4a0] sm:$0xff]  ;;  %v2928_v45 = vld [vmem:[%s5372_s4 + $0x4b0] sm:$0xff] }
 0x1d7   : > { %3296 = vmatpush1.bf16.msra.mxu1 %v3295_v52  ;;  %v1520_v52 = vld [vmem:[#allocation8 + $0xa8] sm:$0xff]  ;;  %3488 = vmatpush1.bf16.msra.mxu0 %v3487_v50  ;;  %v2891_v50 = vld [vmem:[%s5372_s4 + $0x390] sm:$0xff] }
 0x1d8   : > { %3298 = vmatprep.subr.bf16.mxu1 %v3297_v53  ;;  %v1522_v53 = vld [vmem:[#allocation8 + $0xb8] sm:$0xff] }
 0x1d9   : > { %v3489_v58 = vpack.c.bf16 %v1522_v53, %v1520_v52  ;;  %v2896_v52 = vld [vmem:[%s5372_s4 + $0x3b8] sm:$0xff]  ;;  %v3343_v53 = vpack.c.bf16 %v2891_v50, %v2889_v49  ;;  %v3379_v50 = vpack.c.bf16 %v2928_v45, %v2926_v44  ;;  %v2966_v44 = vld [vmem:[%s5372_s4 + $0x5e0] sm:$0xff]  ;;  %v2968_v45 = vld [vmem:[%s5372_s4 + $0x5f0] sm:$0xff] }
 0x1da   : > { %v2933_v49 = vld [vmem:[%s5372_s4 + $0x4d8] sm:$0xff] }
 0x1db   : > { %3300 = vmatpush1.bf16.msra.mxu1 %v3299_v61  ;;  %v1006_v61 = vld [vmem:[%s5372_s4 + $0x178] sm:$0xff]  ;;  %3490 = vmatprep.subr.bf16.mxu0 %v3489_v58 }
 0x1dc   : > { %3302 = vmatprep.subr.bf16.mxu1 %v3301_v4  ;;  %v1523_v4 = vld [vmem:[#allocation8 + $0xc0] sm:$0xff]  ;;  %v3321_v5 = vpack.c.bf16 %v1006_v61, %v1004_v60  ;;  %3492 = vmatpush1.bf16.msra.mxu0 %v3491_v62  ;;  %v2900_v58 = vld [vmem:[%s5372_s4 + $0x3d8] sm:$0xff]  ;;  %v2899_v62 = vld [vmem:[%s5372_s4 + $0x3d0] sm:$0xff] }
 0x1dd   : > { %v3495_v12 = vpack.c.bf16 %v1525_v9, %v1523_v4  ;;  %3494 = vmatprep.subr.bf16.mxu0 %v3493_v8  ;;  %v3349_v60 = vpack.c.bf16 %v2900_v58, %v2898_v57  ;;  %v2897_v61 = vld [vmem:[%s5372_s4 + $0x3c0] sm:$0xff]  ;;  %v2908_v8 = vld [vmem:[%s5372_s4 + $0x418] sm:$0xff] }
 0x1de   : > { %v3351_v2 = vpack.c.bf16 %v2899_v62, %v2897_v61  ;;  %v3357_v10 = vpack.c.bf16 %v2908_v8, %v2906_v7  ;;  %v2934_v58 = vld [vmem:[%s5372_s4 + $0x4e0] sm:$0xff]  ;;  %v2941_v61 = vld [vmem:[%s5372_s4 + $0x518] sm:$0xff] }
 0x1df   : > { %3304 = vmatpush1.bf16.msra.mxu1 %v3303_v14  ;;  %v1528_v14 = vld [vmem:[#allocation8 + $0xe8] sm:$0xff]  ;;  %v2942_v8 = vld [vmem:[%s5372_s4 + $0x520] sm:$0xff] }
 0x1e0   : > { %3306 = vmatprep.subr.bf16.mxu1 %v3305_v18  ;;  %v2873_v18 = vld [vmem:[%s5372_s4 + $0x300] sm:$0xff]  ;;  %v3497_v20 = vpack.c.bf16 %v1530_v15, %v1528_v14  ;;  %3496 = vmatpush1.bf16.msra.mxu0 %v3495_v12  ;;  %v2907_v12 = vld [vmem:[%s5372_s4 + $0x410] sm:$0xff]  ;;  %v2912_v14 = vld [vmem:[%s5372_s4 + $0x438] sm:$0xff] }
 0x1e1   : > { %v3359_v15 = vpack.c.bf16 %v2907_v12, %v2905_v11  ;;  %v2949_v11 = vld [vmem:[%s5372_s4 + $0x558] sm:$0xff] }
 0x1e2   : > { %3498 = vmatprep.subr.bf16.mxu0 %v3497_v20  ;;  %v2916_v20 = vld [vmem:[%s5372_s4 + $0x458] sm:$0xff] }
 0x1e3   : > { %3308 = vmatpush1.bf16.msra.mxu1 %v3307_v26  ;;  %v3327_v26 = vpack.c.bf16 %v2875_v19, %v2873_v18  ;;  %v2911_v18 = vld [vmem:[%s5372_s4 + $0x430] sm:$0xff]  ;;  %v2914_v19 = vld [vmem:[%s5372_s4 + $0x448] sm:$0xff] }
 0x1e4   : > { %3310 = vmatprep.subr.bf16.mxu1 %v3309_v30  ;;  %v957_v30 = vld [vmem:[#allocation3] sm:$0xf]  ;;  %3500 = vmatpush1.bf16.msra.mxu0 %v3499_v25  ;;  %v3365_v22 = vpack.c.bf16 %v2916_v20, %v2914_v19  ;;  %v2918_v25 = vld [vmem:[%s5372_s4 + $0x468] sm:$0xff]  ;;  %v2950_v20 = vld [vmem:[%s5372_s4 + $0x560] sm:$0xff] }
 0x1e7   : > { %3312 = vmatpush1.bf16.msra.mxu1 %v3311_v37  ;;  %v2886_v37 = vld [vmem:[%s5372_s4 + $0x368] sm:$0xff] }
 0x1e8   : > { %3314 = vmatprep.subr.bf16.mxu1 %v3313_v42  ;;  %v3337_v41 = vpack.c.bf16 %v2888_v38, %v2886_v37  ;;  %v2885_v42 = vld [vmem:[%s5372_s4 + $0x360] sm:$0xff]  ;;  %v2927_v37 = vld [vmem:[%s5372_s4 + $0x4a8] sm:$0xff]  ;;  %v2929_v38 = vld [vmem:[%s5372_s4 + $0x4b8] sm:$0xff] }
 0x1e9   : > { %v3339_v47 = vpack.c.bf16 %v2887_v43, %v2885_v42  ;;  %v1259_v42 = vrot.slane %v1206_v36, 1  ;;  %v3377_v43 = vpack.c.bf16 %v2929_v38, %v2927_v37  ;;  %v2962_v37 = vld [vmem:[%s5372_s4 + $0x5c0] sm:$0xff]  ;;  %v2964_v38 = vld [vmem:[%s5372_s4 + $0x5d0] sm:$0xff] }
 0x1eb   : > { %3316 = vmatpush1.bf16.msra.mxu1 %v3315_v51  ;;  %v2894_v51 = vld [vmem:[%s5372_s4 + $0x3a8] sm:$0xff] }
 0x1ec   : > { %3318 = vmatprep.subr.bf16.mxu1 %v3317_v55  ;;  %v3345_v54 = vpack.c.bf16 %v2896_v52, %v2894_v51  ;;  %v2893_v55 = vld [vmem:[%s5372_s4 + $0x3a0] sm:$0xff] }
 0x1ed   : > { %v3347_v59 = vpack.c.bf16 %v2895_v56, %v2893_v55  ;;  %v2930_v52 = vld [vmem:[%s5372_s4 + $0x4c0] sm:$0xff]  ;;  %v2937_v55 = vld [vmem:[%s5372_s4 + $0x4f8] sm:$0xff] }
 0x1ef   : > { %3320 = vmatpush1.bf16.msra.mxu1 %v3319_v63  ;;  %v2902_v63 = vld [vmem:[%s5372_s4 + $0x3e8] sm:$0xff] }
 0x1f0   : > { %3322 = vmatprep.subr.bf16.mxu1 %v3321_v5  ;;  %v3353_v4 = vpack.c.bf16 %v2904_v0, %v2902_v63  ;;  %v2901_v5 = vld [vmem:[%s5372_s4 + $0x3e0] sm:$0xff] }
 0x1f1   : > { %v3355_v9 = vpack.c.bf16 %v2903_v6, %v2901_v5  ;;  %v2938_v0 = vld [vmem:[%s5372_s4 + $0x500] sm:$0xff]  ;;  %v2945_v5 = vld [vmem:[%s5372_s4 + $0x538] sm:$0xff] }
 0x1f3   : > { %3324 = vmatpush1.bf16.msra.mxu1 %v3323_v13  ;;  %v2910_v13 = vld [vmem:[%s5372_s4 + $0x428] sm:$0xff] }
 0x1f4   : > { %3326 = vmatprep.subr.bf16.mxu1 %v3325_v17  ;;  %v3361_v16 = vpack.c.bf16 %v2912_v14, %v2910_v13  ;;  %v2909_v17 = vld [vmem:[%s5372_s4 + $0x420] sm:$0xff] }
 0x1f5   : > { %v3363_v21 = vpack.c.bf16 %v2911_v18, %v2909_v17  ;;  %v2946_v14 = vld [vmem:[%s5372_s4 + $0x540] sm:$0xff]  ;;  %v2953_v17 = vld [vmem:[%s5372_s4 + $0x578] sm:$0xff] }
 0x1f6   : > { %1200 = vmatmul.mubr.f32.vlgmr.msra.gmra.mrb[0].mxu1 %v957_v30  ;;  %v2919_v30 = vld [vmem:[%s5372_s4 + $0x470] sm:$0xff] }
 0x1f7   : > { %3328 = vmatpush1.bf16.msra.mxu1 %v3327_v26  ;;  %2921 = vmatprep.mubr.msk.f32.mxu1 %vm908_vm3, %v1260_v31  ;;  %v2920_v26 = vld [vmem:[%s5372_s4 + $0x478] sm:$0xff]  ;;  %v2923_v31 = vld [vmem:[%s5372_s4 + $0x488] sm:$0xff]  ;;  %v3371_v33 = vpack.c.bf16 %v2919_v30, %v2917_v29 }
 0x1f8   : > { %3330 = vmatprep.subr.bf16.mxu1 %v3329_v27  ;;  %v3367_v27 = vpack.c.bf16 %v2915_v24, %v2913_v23  ;;  %v3369_v28 = vpack.c.bf16 %v2920_v26, %v2918_v25  ;;  %v2957_v23 = vld [vmem:[%s5372_s4 + $0x598] sm:$0xff]  ;;  %v2954_v26 = vld [vmem:[%s5372_s4 + $0x580] sm:$0xff] }
 0x1f9   : > { %v2961_v29 = vld [vmem:[%s5372_s4 + $0x5b8] sm:$0xff] }
 0x1fb   : > { %3332 = vmatpush1.bf16.msra.mxu1 %v3331_v34  ;;  %v3373_v34 = vpack.c.bf16 %v2925_v32, %v2923_v31  ;;  %v2958_v32 = vld [vmem:[%s5372_s4 + $0x5a0] sm:$0xff] }
 0x1fc   : > { %3334 = vmatprep.subr.bf16.mxu1 %v3333_v46  ;;  %v2922_v46 = vld [vmem:[%s5372_s4 + $0x480] sm:$0xff] }
 0x1ff   : > { %3336 = vmatpush1.bf16.msra.mxu1 %v3335_v39  ;;  %v1338_v39 = vld [vmem:[#allocation4 + $0x8] sm:$0x1e] }
 0x200   : > { %3338 = vmatprep.subr.bf16.mxu1 %v3337_v41  ;;  %v3375_v41 = vpack.c.bf16 %v2924_v35, %v2922_v46  ;;  %v2965_v46 = vld [vmem:[%s5372_s4 + $0x5d8] sm:$0xff] }
 0x203   : > { %3340 = vmatpush1.bf16.msra.mxu1 %v3339_v47  ;;  %v1391_v47 = vrot.slane %v1338_v39, 1  ;;  %v2967_v39 = vld [vmem:[%s5372_s4 + $0x5e8] sm:$0xff] }
 0x204   : > { %3342 = vmatprep.subr.bf16.mxu1 %v3341_v48  ;;  %v2931_v48 = vld [vmem:[%s5372_s4 + $0x4c8] sm:$0xff] }
 0x205   : > { %v3381_v51 = vpack.c.bf16 %v2933_v49, %v2931_v48  ;;  %v1553_v48 = vld [vmem:[#allocation8 + $0x198] sm:$0xff]  ;;  %v3419_v49 = vpack.c.bf16 %v2968_v45, %v2966_v44  ;;  %v1582_v45 = vld [vmem:[#allocation8 + $0x280] sm:$0xff] }
 0x207   : > { %3344 = vmatpush1.bf16.msra.mxu1 %v3343_v53  ;;  %v2932_v53 = vld [vmem:[%s5372_s4 + $0x4d0] sm:$0xff] }
 0x208   : > { %3346 = vmatprep.subr.bf16.mxu1 %v3345_v54  ;;  %v2935_v54 = vld [vmem:[%s5372_s4 + $0x4e8] sm:$0xff]  ;;  %v3383_v56 = vpack.c.bf16 %v2932_v53, %v2930_v52  ;;  %v1552_v52 = vld [vmem:[#allocation8 + $0x190] sm:$0xff]  ;;  %v1337_v53 = vld [vmem:[#allocation4] sm:$0x1e] }
 0x209   : > { %v3385_v57 = vpack.c.bf16 %v2937_v55, %v2935_v54  ;;  %v1555_v54 = vld [vmem:[#allocation8 + $0x1a8] sm:$0xff]  ;;  %v1557_v55 = vld [vmem:[#allocation8 + $0x1b8] sm:$0xff] }
 0x20b   : > { %3348 = vmatpush1.bf16.msra.mxu1 %v3347_v59  ;;  %v2936_v59 = vld [vmem:[%s5372_s4 + $0x4f0] sm:$0xff] }
 0x20c   : > { %3350 = vmatprep.subr.bf16.mxu1 %v3349_v60  ;;  %v2939_v60 = vld [vmem:[%s5372_s4 + $0x508] sm:$0xff]  ;;  %v3387_v62 = vpack.c.bf16 %v2936_v59, %v2934_v58  ;;  %v3425_v58 = vpack.c.bf16 %v1557_v55, %v1555_v54  ;;  %v1554_v59 = vld [vmem:[#allocation8 + $0x1a0] sm:$0xff] }
 0x20d   : > { %v3389_v63 = vpack.c.bf16 %v2941_v61, %v2939_v60  ;;  %v1556_v60 = vld [vmem:[#allocation8 + $0x1b0] sm:$0xff]  ;;  %v1559_v61 = vld [vmem:[#allocation8 + $0x1c8] sm:$0xff] }
 0x20e   : > { %v1587_v55 = vld [vmem:[#allocation8 + $0x2a8] sm:$0xff] }
 0x20f   : > { %3352 = vmatpush1.bf16.msra.mxu1 %v3351_v2  ;;  %v2940_v2 = vld [vmem:[%s5372_s4 + $0x510] sm:$0xff] }
 0x210   : > { %3354 = vmatprep.subr.bf16.mxu1 %v3353_v4  ;;  %v2943_v4 = vld [vmem:[%s5372_s4 + $0x528] sm:$0xff]  ;;  %v3391_v6 = vpack.c.bf16 %v2940_v2, %v2938_v0  ;;  %v1558_v2 = vld [vmem:[#allocation8 + $0x1c0] sm:$0xff] }
 0x211   : > { %v3393_v7 = vpack.c.bf16 %v2945_v5, %v2943_v4  ;;  %v1560_v4 = vld [vmem:[#allocation8 + $0x1d0] sm:$0xff]  ;;  %v1563_v5 = vld [vmem:[#allocation8 + $0x1e8] sm:$0xff] }
 0x213   : > { %3356 = vmatpush1.bf16.msra.mxu1 %v3355_v9  ;;  %v2944_v9 = vld [vmem:[%s5372_s4 + $0x530] sm:$0xff] }
 0x214   : > { %3358 = vmatprep.subr.bf16.mxu1 %v3357_v10  ;;  %v2947_v10 = vld [vmem:[%s5372_s4 + $0x548] sm:$0xff]  ;;  %v3395_v12 = vpack.c.bf16 %v2944_v9, %v2942_v8  ;;  %v1562_v9 = vld [vmem:[#allocation8 + $0x1e0] sm:$0xff] }
 0x215   : > { %v3397_v13 = vpack.c.bf16 %v2949_v11, %v2947_v10  ;;  %v1564_v10 = vld [vmem:[#allocation8 + $0x1f0] sm:$0xff]  ;;  %v1567_v11 = vld [vmem:[#allocation8 + $0x208] sm:$0xff] }
 0x217   : > { %3360 = vmatpush1.bf16.msra.mxu1 %v3359_v15  ;;  %v2948_v15 = vld [vmem:[%s5372_s4 + $0x550] sm:$0xff] }
 0x218   : > { %3362 = vmatprep.subr.bf16.mxu1 %v3361_v16  ;;  %v2951_v16 = vld [vmem:[%s5372_s4 + $0x568] sm:$0xff]  ;;  %v3399_v18 = vpack.c.bf16 %v2948_v15, %v2946_v14  ;;  %v1566_v15 = vld [vmem:[#allocation8 + $0x200] sm:$0xff] }
 0x219   : > { %v3401_v19 = vpack.c.bf16 %v2953_v17, %v2951_v16  ;;  %v1568_v16 = vld [vmem:[#allocation8 + $0x210] sm:$0xff]  ;;  %v1571_v17 = vld [vmem:[#allocation8 + $0x228] sm:$0xff] }
 0x21b   : > { %3364 = vmatpush1.bf16.msra.mxu1 %v3363_v21  ;;  %v2952_v21 = vld [vmem:[%s5372_s4 + $0x570] sm:$0xff] }
 0x21c   : > { %3366 = vmatprep.subr.bf16.mxu1 %v3365_v22  ;;  %v2955_v22 = vld [vmem:[%s5372_s4 + $0x588] sm:$0xff]  ;;  %v3403_v24 = vpack.c.bf16 %v2952_v21, %v2950_v20  ;;  %v1570_v21 = vld [vmem:[#allocation8 + $0x220] sm:$0xff] }
 0x21d   : > { %v3405_v25 = vpack.c.bf16 %v2957_v23, %v2955_v22  ;;  %v1572_v22 = vld [vmem:[#allocation8 + $0x230] sm:$0xff]  ;;  %v1575_v23 = vld [vmem:[#allocation8 + $0x248] sm:$0xff] }
 0x21f   : > { %3368 = vmatpush1.bf16.msra.mxu1 %v3367_v27  ;;  %v2956_v27 = vld [vmem:[%s5372_s4 + $0x590] sm:$0xff] }
 0x220   : > { %3370 = vmatprep.subr.bf16.mxu1 %v3369_v28  ;;  %v2959_v28 = vld [vmem:[%s5372_s4 + $0x5a8] sm:$0xff]  ;;  %v3407_v30 = vpack.c.bf16 %v2956_v27, %v2954_v26  ;;  %v1574_v27 = vld [vmem:[#allocation8 + $0x240] sm:$0xff] }
 0x221   : > { %v3409_v31 = vpack.c.bf16 %v2961_v29, %v2959_v28  ;;  %v1576_v28 = vld [vmem:[#allocation8 + $0x250] sm:$0xff]  ;;  %v1579_v29 = vld [vmem:[#allocation8 + $0x268] sm:$0xff] }
 0x223   : > { %3372 = vmatpush1.bf16.msra.mxu1 %v3371_v33  ;;  %v2960_v33 = vld [vmem:[%s5372_s4 + $0x5b0] sm:$0xff] }
 0x224   : > { %3374 = vmatprep.subr.bf16.mxu1 %v3373_v34  ;;  %v2963_v34 = vld [vmem:[%s5372_s4 + $0x5c8] sm:$0xff]  ;;  %v3411_v35 = vpack.c.bf16 %v2960_v33, %v2958_v32  ;;  %v1578_v33 = vld [vmem:[#allocation8 + $0x260] sm:$0xff] }
 0x225   : > { %v3413_v36 = vpack.c.bf16 %v2965_v46, %v2963_v34  ;;  %v1580_v34 = vld [vmem:[#allocation8 + $0x270] sm:$0xff]  ;;  %v1532_v46 = vld [vmem:[#allocation8 + $0x108] sm:$0xff] }
 0x226   : > { %1329 = vmatmul.mubr.f32.vlgmr.msra.gmra.mrb[0].mxu1 %v1259_v42  ;;  %v3415_v42 = vpack.c.bf16 %v2964_v38, %v2962_v37  ;;  %v1531_v37 = vld [vmem:[#allocation8 + $0x100] sm:$0xff] }
 0x227   : > { %3376 = vmatpush1.bf16.msra.mxu1 %v3375_v41  ;;  %2970 = vmatprep.mubr.msk.f32.mxu1 %vm908_vm3, %v1391_v47  ;;  %v2969_v41 = vld [vmem:[%s5372_s4 + $0x5f8] sm:$0xff]  ;;  %v1551_v47 = vld [vmem:[#allocation8 + $0x188] sm:$0xff] }
 0x228   : > { %3378 = vmatprep.subr.bf16.mxu1 %v3377_v43  ;;  %v3417_v43 = vpack.c.bf16 %v2969_v41, %v2967_v39  ;;  %v1533_v39 = vld [vmem:[#allocation8 + $0x110] sm:$0xff] }
 0x229   : > { %v3503_v41 = vpack.c.bf16 %v1533_v39, %v1531_v37  ;;  %v1755_v37 = vld [vmem:[#allocation8 + $0x310] sm:$0xff]  ;;  %v1760_v39 = vld [vmem:[#allocation8 + $0x338] sm:$0xff] }
 0x22b   : > { %3380 = vmatpush1.bf16.msra.mxu1 %v3379_v50  ;;  %v3421_v50 = vpack.c.bf16 %v1553_v48, %v1551_v47  ;;  %v1584_v47 = vld [vmem:[#allocation8 + $0x290] sm:$0xff]  ;;  %v1536_v48 = vld [vmem:[#allocation8 + $0x128] sm:$0xff] }
 0x22c   : > { %3382 = vmatprep.subr.bf16.mxu1 %v3381_v51  ;;  %v1550_v51 = vld [vmem:[#allocation8 + $0x180] sm:$0xff] }
 0x22f   : > { %3384 = vmatpush1.bf16.msra.mxu1 %v3383_v56  ;;  %v3423_v56 = vpack.c.bf16 %v1552_v52, %v1550_v51  ;;  %v1535_v51 = vld [vmem:[#allocation8 + $0x120] sm:$0xff]  ;;  %v1537_v52 = vld [vmem:[#allocation8 + $0x130] sm:$0xff] }
 0x230   : > { %3386 = vmatprep.subr.bf16.mxu1 %v3385_v57  ;;  %v1390_v57 = vrot.slane %v1337_v53, 1  ;;  %v3507_v54 = vpack.c.bf16 %v1537_v52, %v1535_v51 }
 0x233   : > { %3388 = vmatpush1.bf16.msra.mxu1 %v3387_v62  ;;  %v1561_v62 = vld [vmem:[#allocation8 + $0x1d8] sm:$0xff] }
 0x234   : > { %3390 = vmatprep.subr.bf16.mxu1 %v3389_v63  ;;  %v3427_v63 = vpack.c.bf16 %v1556_v60, %v1554_v59  ;;  %v3429_v0 = vpack.c.bf16 %v1561_v62, %v1559_v61  ;;  %v1588_v59 = vld [vmem:[#allocation8 + $0x2b0] sm:$0xff]  ;;  %v1540_v60 = vld [vmem:[#allocation8 + $0x148] sm:$0xff]  ;;  %v1542_v62 = vld [vmem:[#allocation8 + $0x158] sm:$0xff] }
 0x237   : > { %3392 = vmatpush1.bf16.msra.mxu1 %v3391_v6  ;;  %v1565_v6 = vld [vmem:[#allocation8 + $0x1f8] sm:$0xff] }
 0x238   : > { %3394 = vmatprep.subr.bf16.mxu1 %v3393_v7  ;;  %v3431_v7 = vpack.c.bf16 %v1560_v4, %v1558_v2  ;;  %v3433_v8 = vpack.c.bf16 %v1565_v6, %v1563_v5  ;;  %v3509_v2 = vpack.c.bf16 %v1542_v62, %v1540_v60  ;;  %v1591_v5 = vld [vmem:[#allocation8 + $0x2c8] sm:$0xff]  ;;  %v1593_v6 = vld [vmem:[#allocation8 + $0x2d8] sm:$0xff] }
 0x239   : > { %v1766_v60 = vld [vmem:[#allocation8 + $0x368] sm:$0xff] }
 0x23b   : > { %3396 = vmatpush1.bf16.msra.mxu1 %v3395_v12  ;;  %v1569_v12 = vld [vmem:[#allocation8 + $0x218] sm:$0xff] }
 0x23c   : > { %3398 = vmatprep.subr.bf16.mxu1 %v3397_v13  ;;  %v3435_v13 = vpack.c.bf16 %v1564_v10, %v1562_v9  ;;  %v3437_v14 = vpack.c.bf16 %v1569_v12, %v1567_v11  ;;  %v1592_v9 = vld [vmem:[#allocation8 + $0x2d0] sm:$0xff]  ;;  %v1544_v10 = vld [vmem:[#allocation8 + $0x168] sm:$0xff]  ;;  %v1546_v11 = vld [vmem:[#allocation8 + $0x178] sm:$0xff] }
 0x23f   : > { %3400 = vmatpush1.bf16.msra.mxu1 %v3399_v18  ;;  %v1573_v18 = vld [vmem:[#allocation8 + $0x238] sm:$0xff] }
 0x240   : > { %3402 = vmatprep.subr.bf16.mxu1 %v3401_v19  ;;  %v3439_v19 = vpack.c.bf16 %v1568_v16, %v1566_v15  ;;  %v3441_v20 = vpack.c.bf16 %v1573_v18, %v1571_v17  ;;  %v1545_v15 = vld [vmem:[#allocation8 + $0x170] sm:$0xff]  ;;  %v1595_v16 = vld [vmem:[#allocation8 + $0x2e8] sm:$0xff]  ;;  %v1597_v18 = vld [vmem:[#allocation8 + $0x2f8] sm:$0xff] }
 0x243   : > { %3404 = vmatpush1.bf16.msra.mxu1 %v3403_v24  ;;  %v1577_v24 = vld [vmem:[#allocation8 + $0x258] sm:$0xff] }
 0x244   : > { %3406 = vmatprep.subr.bf16.mxu1 %v3405_v25  ;;  %v3443_v25 = vpack.c.bf16 %v1572_v22, %v1570_v21  ;;  %v3445_v26 = vpack.c.bf16 %v1577_v24, %v1575_v23  ;;  %v3465_v21 = vpack.c.bf16 %v1597_v18, %v1595_v16  ;;  %v1754_v23 = vld [vmem:[#allocation8 + $0x308] sm:$0xff]  ;;  %v1756_v24 = vld [vmem:[#allocation8 + $0x318] sm:$0xff] }
 0x245   : > { %v1778_v16 = vld [vmem:[#allocation8 + $0x3c8] sm:$0xff] }
 0x247   : > { %3408 = vmatpush1.bf16.msra.mxu1 %v3407_v30  ;;  %v1581_v30 = vld [vmem:[#allocation8 + $0x278] sm:$0xff] }
 0x248   : > { %3410 = vmatprep.subr.bf16.mxu1 %v3409_v31  ;;  %v3447_v31 = vpack.c.bf16 %v1576_v28, %v1574_v27  ;;  %v3449_v32 = vpack.c.bf16 %v1581_v30, %v1579_v29 }
 0x24b   : > { %3412 = vmatpush1.bf16.msra.mxu1 %v3411_v35  ;;  %v3451_v35 = vpack.c.bf16 %v1580_v34, %v1578_v33 }
 0x24c   : > { %3414 = vmatprep.subr.bf16.mxu1 %v3413_v36  ;;  %v1534_v36 = vld [vmem:[#allocation8 + $0x118] sm:$0xff] }
 0x24d   : > { %v3501_v38 = vpack.c.bf16 %v1534_v36, %v1532_v46  ;;  %v1753_v36 = vld [vmem:[#allocation8 + $0x300] sm:$0xff] }
 0x24f   : > { %3416 = vmatpush1.bf16.msra.mxu1 %v3415_v42  ;;  %v1583_v42 = vld [vmem:[#allocation8 + $0x288] sm:$0xff]  ;;  %3502 = vmatprep.subr.bf16.mxu0 %v3501_v38 }
 0x250   : > { %3418 = vmatprep.subr.bf16.mxu1 %v3417_v43  ;;  %v1585_v43 = vld [vmem:[#allocation8 + $0x298] sm:$0xff]  ;;  %3504 = vmatpush1.bf16.msra.mxu0 %v3503_v41  ;;  %v1758_v38 = vld [vmem:[#allocation8 + $0x328] sm:$0xff]  ;;  %v3519_v41 = vpack.c.bf16 %v1755_v37, %v1753_v36  ;;  %v1789_v37 = vld [vmem:[#allocation8 + $0x420] sm:$0xff] }
 0x251   : > { %v3453_v44 = vpack.c.bf16 %v1585_v43, %v1583_v42  ;;  %v1757_v43 = vld [vmem:[#allocation8 + $0x320] sm:$0xff]  ;;  %v3521_v52 = vpack.c.bf16 %v1760_v39, %v1758_v38  ;;  %v1791_v38 = vld [vmem:[#allocation8 + $0x430] sm:$0xff]  ;;  %v1794_v39 = vld [vmem:[#allocation8 + $0x448] sm:$0xff] }
 0x253   : > { %3420 = vmatpush1.bf16.msra.mxu1 %v3419_v49  ;;  %v3455_v49 = vpack.c.bf16 %v1584_v47, %v1582_v45 }
 0x254   : > { %3422 = vmatprep.subr.bf16.mxu1 %v3421_v50  ;;  %v1538_v50 = vld [vmem:[#allocation8 + $0x138] sm:$0xff] }
 0x255   : > { %v3505_v53 = vpack.c.bf16 %v1538_v50, %v1536_v48 }
 0x256   : > { %1460 = vmatmul.mubr.f32.vlgmr.msra.gmra.mrb[0].mxu1 %v1390_v57 }
 0x257   : > { %3424 = vmatpush1.bf16.msra.mxu1 %v3423_v56  ;;  %v1589_v56 = vld [vmem:[#allocation8 + $0x2b8] sm:$0xff]  ;;  %3506 = vmatprep.subr.bf16.mxu0 %v3505_v53  ;;  %v1762_v53 = vld [vmem:[#allocation8 + $0x348] sm:$0xff] }
 0x258   : > { %3426 = vmatprep.subr.bf16.mxu1 %v3425_v58  ;;  %v3457_v57 = vpack.c.bf16 %v1589_v56, %v1587_v55  ;;  %v1586_v58 = vld [vmem:[#allocation8 + $0x2a0] sm:$0xff]  ;;  %3508 = vmatpush1.bf16.msra.mxu0 %v3507_v54  ;;  %v1764_v54 = vld [vmem:[#allocation8 + $0x358] sm:$0xff] }
 0x259   : > { %v3459_v61 = vpack.c.bf16 %v1588_v59, %v1586_v58  ;;  %3510 = vmatprep.subr.bf16.mxu0 %v3509_v2  ;;  %v1761_v58 = vld [vmem:[#allocation8 + $0x340] sm:$0xff]  ;;  %v1763_v59 = vld [vmem:[#allocation8 + $0x350] sm:$0xff] }
 0x25a   : > { %v3527_v62 = vpack.c.bf16 %v1763_v59, %v1761_v58  ;;  %v1767_v2 = vld [vmem:[#allocation8 + $0x370] sm:$0xff]  ;;  %v3939_v59 = vmov 0.0|0.0  }
 0x25b   : > { %3428 = vmatpush1.bf16.msra.mxu1 %v3427_v63  ;;  %v1539_v63 = vld [vmem:[#allocation8 + $0x140] sm:$0xff]  ;;  %v2978_v58 = vld [vmem:[%s5374_s6 + $0xd0] sm:$0xff] }
 0x25c   : > { %3430 = vmatprep.subr.bf16.mxu1 %v3429_v0  ;;  %v1541_v0 = vld [vmem:[#allocation8 + $0x150] sm:$0xff] }
 0x25d   : > { %v3511_v4 = vpack.c.bf16 %v1541_v0, %v1539_v63  ;;  %v1765_v0 = vld [vmem:[#allocation8 + $0x360] sm:$0xff] }
 0x25f   : > { %3432 = vmatpush1.bf16.msra.mxu1 %v3431_v7  ;;  %v1590_v7 = vld [vmem:[#allocation8 + $0x2c0] sm:$0xff]  ;;  %3512 = vmatpush1.bf16.msra.mxu0 %v3511_v4  ;;  %v1770_v4 = vld [vmem:[#allocation8 + $0x388] sm:$0xff] }
 0x260   : > { %3434 = vmatprep.subr.bf16.mxu1 %v3433_v8  ;;  %v3461_v8 = vpack.c.bf16 %v1593_v6, %v1591_v5  ;;  %v3463_v12 = vpack.c.bf16 %v1592_v9, %v1590_v7  ;;  %v1772_v5 = vld [vmem:[#allocation8 + $0x398] sm:$0xff]  ;;  %v3531_v6 = vpack.c.bf16 %v1767_v2, %v1765_v0  ;;  %v1771_v9 = vld [vmem:[#allocation8 + $0x390] sm:$0xff]  ;;  %v2981_v0 = vld [vmem:[%s5374_s6 + $0xe8] sm:$0xff] }
 0x261   : > { %v3533_v7 = vpack.c.bf16 %v1772_v5, %v1770_v4  ;;  %v2982_v4 = vld [vmem:[%s5374_s6 + $0xf0] sm:$0xff]  ;;  %v2983_v5 = vld [vmem:[%s5374_s6 + $0xf8] sm:$0xff] }
 0x263   : > { %3436 = vmatpush1.bf16.msra.mxu1 %v3435_v13  ;;  %v3513_v13 = vpack.c.bf16 %v1546_v11, %v1544_v10  ;;  %v1774_v10 = vld [vmem:[#allocation8 + $0x3a8] sm:$0xff]  ;;  %v1776_v11 = vld [vmem:[#allocation8 + $0x3b8] sm:$0xff] }
 0x264   : > { %3438 = vmatprep.subr.bf16.mxu1 %v3437_v14  ;;  %v1543_v14 = vld [vmem:[#allocation8 + $0x160] sm:$0xff] }
 0x265   : > { %v3515_v17 = vpack.c.bf16 %v1545_v15, %v1543_v14  ;;  %3514 = vmatprep.subr.bf16.mxu0 %v3513_v13  ;;  %v3537_v13 = vpack.c.bf16 %v1776_v11, %v1774_v10  ;;  %v1773_v14 = vld [vmem:[#allocation8 + $0x3a0] sm:$0xff]  ;;  %v1775_v15 = vld [vmem:[#allocation8 + $0x3b0] sm:$0xff]  ;;  %v2987_v11 = vld [vmem:[%s5374_s6 + $0x118] sm:$0xff] }
 0x266   : > { %v3539_v18 = vpack.c.bf16 %v1775_v15, %v1773_v14  ;;  %v2986_v10 = vld [vmem:[%s5374_s6 + $0x110] sm:$0xff]  ;;  %v2989_v14 = vld [vmem:[%s5374_s6 + $0x128] sm:$0xff] }
 0x267   : > { %3440 = vmatpush1.bf16.msra.mxu1 %v3439_v19  ;;  %v1594_v19 = vld [vmem:[#allocation8 + $0x2e0] sm:$0xff]  ;;  %3516 = vmatpush1.bf16.msra.mxu0 %v3515_v17  ;;  %v1780_v17 = vld [vmem:[#allocation8 + $0x3d8] sm:$0xff] }
 0x268   : > { %3442 = vmatprep.subr.bf16.mxu1 %v3441_v20  ;;  %v1596_v20 = vld [vmem:[#allocation8 + $0x2f0] sm:$0xff] }
 0x269   : > { %v3467_v22 = vpack.c.bf16 %v1596_v20, %v1594_v19  ;;  %v3541_v19 = vpack.c.bf16 %v1780_v17, %v1778_v16  ;;  %v1777_v20 = vld [vmem:[#allocation8 + $0x3c0] sm:$0xff]  ;;  %v2990_v16 = vld [vmem:[%s5374_s6 + $0x130] sm:$0xff]  ;;  %v2991_v17 = vld [vmem:[%s5374_s6 + $0x138] sm:$0xff] }
 0x26b   : > { %3444 = vmatpush1.bf16.msra.mxu1 %v3443_v25  ;;  %v3517_v25 = vpack.c.bf16 %v1756_v24, %v1754_v23  ;;  %v1784_v23 = vld [vmem:[#allocation8 + $0x3f8] sm:$0xff] }
 0x26c   : > { %3446 = vmatprep.subr.bf16.mxu1 %v3445_v26  ;;  %v2971_v26 = vld [vmem:[%s5370_s2 + $0x1] ss:$4 sm:$0x3] }
 0x26d   : > { %3518 = vmatprep.subr.bf16.mxu0 %v3517_v25  ;;  %v1474_v27 = vrot.slane %v2971_v26, %v4280_v1  ;;  %v1478_v28 = vrot.slane %v2971_v26, %v4285_v3  ;;  %v1781_v26 = vld [vmem:[#allocation8 + $0x3e0] sm:$0xff] }
 0x26f   : > { %3448 = vmatpush1.bf16.msra.mxu1 %v3447_v31 }
 0x270   : > { %3450 = vmatprep.subr.bf16.mxu1 %v3449_v32 }
 0x273   : > { %3452 = vmatpush1.bf16.msra.mxu1 %v3451_v35 }
 0x274   : > { %3454 = vmatprep.subr.bf16.mxu1 %v3453_v44  ;;  %v1759_v44 = vld [vmem:[#allocation8 + $0x330] sm:$0xff] }
 0x275   : > { %v3523_v56 = vpack.c.bf16 %v1759_v44, %v1757_v43  ;;  %v1793_v44 = vld [vmem:[#allocation8 + $0x440] sm:$0xff] }
 0x277   : > { %3456 = vmatpush1.bf16.msra.mxu1 %v3455_v49 }
 0x278   : > { %3458 = vmatprep.subr.bf16.mxu1 %v3457_v57  ;;  %v3525_v57 = vpack.c.bf16 %v1764_v54, %v1762_v53 }
 0x27b   : > { %3460 = vmatpush1.bf16.msra.mxu1 %v3459_v61  ;;  %v1768_v61 = vld [vmem:[#allocation8 + $0x378] sm:$0xff] }
 0x27c   : > { %3462 = vmatprep.subr.bf16.mxu1 %v3461_v8  ;;  %v3529_v63 = vpack.c.bf16 %v1768_v61, %v1766_v60  ;;  %v1769_v8 = vld [vmem:[#allocation8 + $0x380] sm:$0xff]  ;;  %v2979_v61 = vld [vmem:[%s5374_s6 + $0xd8] sm:$0xff] }
 0x27f   : > { %3464 = vmatpush1.bf16.msra.mxu1 %v3463_v12  ;;  %v3535_v12 = vpack.c.bf16 %v1771_v9, %v1769_v8  ;;  %v2985_v8 = vld [vmem:[%s5374_s6 + $0x108] sm:$0xff] }
 0x280   : > { %3466 = vmatprep.subr.bf16.mxu1 %v3465_v21  ;;  %v1779_v21 = vld [vmem:[#allocation8 + $0x3d0] sm:$0xff] }
 0x281   : > { %v3543_v24 = vpack.c.bf16 %v1779_v21, %v1777_v20  ;;  %v2993_v20 = vld [vmem:[%s5374_s6 + $0x148] sm:$0xff] }
 0x283   : > { %3468 = vmatpush1.bf16.msra.mxu1 %v3467_v22  ;;  %v1782_v22 = vld [vmem:[#allocation8 + $0x3e8] sm:$0xff] }
 0x284   : > { %v3545_v25 = vpack.c.bf16 %v1784_v23, %v1782_v22  ;;  %3565 = vmatprep.subr.bf16.mxu1 %v3939_v59  ;;  %v2994_v22 = vld [vmem:[%s5374_s6 + $0x150] sm:$0xff]  ;;  %v2995_v23 = vld [vmem:[%s5374_s6 + $0x158] sm:$0xff] }
 0x329   : > { %v1461_v29 = vpop.f32.mrb[0].mxu1 }
 0x32a   : > { %v1481_v30 = vadd.f32 %v1474_v27, %v1461_v29  ;;  %v1463_v31 = vpop.f32.mrb[1].mxu1  ;;  %v1783_v27 = vld [vmem:[#allocation8 + $0x3f0] sm:$0xff]  ;;  %v1788_v29 = vld [vmem:[#allocation8 + $0x418] sm:$0xff] }
 0x32b   : > { %v1482_v32 = vadd.f32 %v1478_v28, %v1463_v31  ;;  %v1786_v28 = vld [vmem:[#allocation8 + $0x408] sm:$0xff] }
 0x32c   : > { %v1483_v33 = vmax.f32 %v1481_v30, 0.0  ;;  %v3547_v30 = vpack.c.bf16 %v1783_v27, %v1781_v26  ;;  %v3549_v31 = vpack.c.bf16 %v1788_v29, %v1786_v28  ;;  %v2997_v26 = vld [vmem:[%s5374_s6 + $0x168] sm:$0xff]  ;;  %v2998_v27 = vld [vmem:[%s5374_s6 + $0x170] sm:$0xff]  ;;  %v2999_v29 = vld [vmem:[%s5374_s6 + $0x178] sm:$0xff] }
 0x32d   : > { %v1484_v34 = vmax.f32 %v1482_v32, 0.0  ;;  %v1785_v32 = vld [vmem:[#allocation8 + $0x400] sm:$0xff] }
 0x32e   : > { %v1490_v46 = vrot.slane %v1483_v33, 7  ;;  %v1787_v33 = vld [vmem:[#allocation8 + $0x410] sm:$0xff] }
 0x32f   : > { %v1491_v35 = vrot.slane %v1484_v34, 7  ;;  %v1790_v34 = vld [vmem:[#allocation8 + $0x428] sm:$0xff] }
 0x330   : > { %1494 = vst [vmem:[#allocation5] sm:$0x1e] %v1490_v46  ;;  %v1792_v46 = vld [vmem:[#allocation8 + $0x438] sm:$0xff] }
 0x331   : > { %1496 = vst.msk [vmem:[#allocation5 + $0x8] sm:$0x1e] %vm1495_vm5, %v1491_v35  ;;  %v3551_v35 = vpack.c.bf16 %v1787_v33, %v1785_v32  ;;  %v3553_v36 = vpack.c.bf16 %v1792_v46, %v1790_v34  ;;  %v2214_v33 = vld [vmem:[%s5375_s7 + $0x8] sm:$0xff]  ;;  %v2216_v34 = vld [vmem:[%s5375_s7 + $0x18] sm:$0xff]  ;;  %v2213_v46 = vld [vmem:[%s5375_s7] sm:$0xff] }
 0x337   : > { %v1547_v42 = vld [vmem:[#allocation5] sm:$0x1e] }
 0x338   : > { %v1498_v45 = vld [vmem:[#allocation5 + $0x8] sm:$0xf]  ;;  %v1497_v49 = vld [vmem:[#allocation5] sm:$0xf]  ;;  %v1600_v55 = vrot.slane %v1547_v42, 1  ;;  %v3555_v42 = vpack.c.bf16 %v1791_v38, %v1789_v37  ;;  %v2218_v37 = vld [vmem:[%s5375_s7 + $0x28] sm:$0xff] }
 0x339   : > { %v1548_v47 = vld [vmem:[#allocation5 + $0x8] sm:$0x1e]  ;;  %2973 = vmatprep.mubr.msk.f32.mxu0 %vm908_vm3, %v1498_v45  ;;  %v1795_v45 = vld [vmem:[#allocation8 + $0x450] sm:$0xff] }
 0x33a   : > { %v1751_v48 = vld [vmem:[#allocation5 + $0x8] sm:$0x3c]  ;;  %v1601_v50 = vrot.slane %v1548_v47, 1  ;;  %1744 = vmatmul.mubr.f32.vlgmr.msra.gmra.mrb[2].mxu0 %v1497_v49  ;;  %v1798_v47 = vld [vmem:[#allocation8 + $0x468] sm:$0xff]  ;;  %v3559_v49 = vpack.c.bf16 %v1795_v45, %v1793_v44  ;;  %v1750_v54 = vld [vmem:[#allocation5] sm:$0x3c] }
 0x33b   : > { %v1804_v51 = vrot.slane %v1751_v48, 2  ;;  %3520 = vmatpush1.bf16.msra.mxu0 %v3519_v41  ;;  %v1796_v41 = vld [vmem:[#allocation8 + $0x458] sm:$0xff]  ;;  %v2222_v44 = vld [vmem:[%s5375_s7 + $0x48] sm:$0xff] }
 0x33c   : > { %2972 = vmatprep.mubr.msk.f32.mxu1 %vm908_vm3, %v1601_v50  ;;  %3522 = vmatprep.subr.bf16.mxu0 %v3521_v52  ;;  %v3557_v43 = vpack.c.bf16 %v1796_v41, %v1794_v39  ;;  %v1800_v48 = vld [vmem:[#allocation8 + $0x478] sm:$0xff]  ;;  %v1799_v52 = vld [vmem:[#allocation8 + $0x470] sm:$0xff] }
 0x33d   : > { %2974 = vmatprep.mubr.msk.f32.mxu0 %vm908_vm3, %v1804_v51  ;;  %1670 = vmatmul.mubr.f32.vlgmr.msra.gmra.mrb[2].mxu1 %v1600_v55  ;;  %v3561_v50 = vpack.c.bf16 %v1800_v48, %v1798_v47  ;;  %v1797_v51 = vld [vmem:[#allocation8 + $0x460] sm:$0xff]  ;;  %v1803_v55 = vrot.slane %v1750_v54, 2  ;;  %v2220_v38 = vld [vmem:[%s5375_s7 + $0x38] sm:$0xff] }
 0x33e   : > { %v3563_v53 = vpack.c.bf16 %v1799_v52, %v1797_v51  ;;  %v3677_v41 = vpack.c.bf16 %v2220_v38, %v2218_v37  ;;  %v2224_v45 = vld [vmem:[%s5375_s7 + $0x58] sm:$0xff]  ;;  %v3002_v37 = vld [vmem:[%s5374_s6 + $0x180] sm:$0xff]  ;;  %v3003_v38 = vld [vmem:[%s5374_s6 + $0x188] sm:$0xff] }
 0x33f   : > { %3524 = vmatpush1.bf16.msra.mxu0 %v3523_v56  ;;  %v2976_v56 = vld [vmem:[%s5374_s6 + $0xc0] sm:$0xff]  ;;  %v3681_v48 = vpack.c.bf16 %v2224_v45, %v2222_v44 }
 0x340   : > { %3526 = vmatprep.subr.bf16.mxu0 %v3525_v57  ;;  %v2977_v57 = vld [vmem:[%s5374_s6 + $0xc8] sm:$0xff] }
 0x341   : > { %v3566_v60 = vpack.c.bf16 %v2977_v57, %v2976_v56 }
 0x343   : > { %3528 = vmatpush1.bf16.msra.mxu0 %v3527_v62  ;;  %3567 = vmatpush1.bf16.msra.mxu1 %v3566_v60  ;;  %v3569_v62 = vpack.c.bf16 %v2979_v61, %v2978_v58 }
 0x344   : > { %3530 = vmatprep.subr.bf16.mxu0 %v3529_v63  ;;  %3568 = vmatprep.subr.bf16.mxu1 %v3939_v59  ;;  %v2980_v63 = vld [vmem:[%s5374_s6 + $0xe0] sm:$0xff] }
 0x345   : > { %v3572_v2 = vpack.c.bf16 %v2981_v0, %v2980_v63 }
 0x347   : > { %3532 = vmatpush1.bf16.msra.mxu0 %v3531_v6  ;;  %3570 = vmatpush1.bf16.msra.mxu1 %v3569_v62  ;;  %v3575_v6 = vpack.c.bf16 %v2983_v5, %v2982_v4  ;;  %v1908_v4 = vld [vmem:[%s5374_s6 + $0x10] sm:$0xff]  ;;  %v1909_v5 = vld [vmem:[%s5374_s6 + $0x18] sm:$0xff] }
 0x348   : > { %3534 = vmatprep.subr.bf16.mxu0 %v3533_v7  ;;  %3571 = vmatprep.subr.bf16.mxu1 %v3939_v59  ;;  %v2984_v7 = vld [vmem:[%s5374_s6 + $0x100] sm:$0xff] }
 0x349   : > { %v3578_v9 = vpack.c.bf16 %v2985_v8, %v2984_v7  ;;  %v3605_v7 = vpack.c.bf16 %v1909_v5, %v1908_v4  ;;  %v1910_v8 = vld [vmem:[%s5374_s6 + $0x20] sm:$0xff] }
 0x34a   : > { %v3018_v5 = vld [vmem:[%s5374_s6 + $0x200] sm:$0xff] }
 0x34b   : > { %3536 = vmatpush1.bf16.msra.mxu0 %v3535_v12  ;;  %3573 = vmatpush1.bf16.msra.mxu1 %v3572_v2  ;;  %v3581_v12 = vpack.c.bf16 %v2987_v11, %v2986_v10  ;;  %v1912_v11 = vld [vmem:[%s5374_s6 + $0x30] sm:$0xff] }
 0x34c   : > { %3538 = vmatprep.subr.bf16.mxu0 %v3537_v13  ;;  %3574 = vmatprep.subr.bf16.mxu1 %v3939_v59  ;;  %v2988_v13 = vld [vmem:[%s5374_s6 + $0x120] sm:$0xff] }
 0x34d   : > { %v3584_v15 = vpack.c.bf16 %v2989_v14, %v2988_v13  ;;  %v1914_v14 = vld [vmem:[%s5374_s6 + $0x40] sm:$0xff] }
 0x34f   : > { %3540 = vmatpush1.bf16.msra.mxu0 %v3539_v18  ;;  %3576 = vmatpush1.bf16.msra.mxu1 %v3575_v6  ;;  %v3587_v18 = vpack.c.bf16 %v2991_v17, %v2990_v16  ;;  %v1916_v17 = vld [vmem:[%s5374_s6 + $0x50] sm:$0xff] }
 0x350   : > { %3542 = vmatprep.subr.bf16.mxu0 %v3541_v19  ;;  %3577 = vmatprep.subr.bf16.mxu1 %v3939_v59  ;;  %v2992_v19 = vld [vmem:[%s5374_s6 + $0x140] sm:$0xff] }
 0x351   : > { %v3590_v21 = vpack.c.bf16 %v2993_v20, %v2992_v19  ;;  %v1918_v20 = vld [vmem:[%s5374_s6 + $0x60] sm:$0xff] }
 0x353   : > { %3544 = vmatpush1.bf16.msra.mxu0 %v3543_v24  ;;  %3579 = vmatpush1.bf16.msra.mxu1 %v3578_v9  ;;  %v3593_v24 = vpack.c.bf16 %v2995_v23, %v2994_v22  ;;  %v1911_v9 = vld [vmem:[%s5374_s6 + $0x28] sm:$0xff]  ;;  %v1920_v23 = vld [vmem:[%s5374_s6 + $0x70] sm:$0xff] }
 0x354   : > { %3546 = vmatprep.subr.bf16.mxu0 %v3545_v25  ;;  %3580 = vmatprep.subr.bf16.mxu1 %v3939_v59  ;;  %v2996_v25 = vld [vmem:[%s5374_s6 + $0x160] sm:$0xff]  ;;  %v3608_v10 = vpack.c.bf16 %v1911_v9, %v1910_v8  ;;  %v3020_v8 = vld [vmem:[%s5374_s6 + $0x210] sm:$0xff]  ;;  %v3021_v9 = vld [vmem:[%s5374_s6 + $0x218] sm:$0xff] }
 0x355   : > { %v3596_v28 = vpack.c.bf16 %v2997_v26, %v2996_v25  ;;  %v1922_v26 = vld [vmem:[%s5374_s6 + $0x80] sm:$0xff] }
 0x357   : > { %3548 = vmatpush1.bf16.msra.mxu0 %v3547_v30  ;;  %3582 = vmatpush1.bf16.msra.mxu1 %v3581_v12  ;;  %v3599_v30 = vpack.c.bf16 %v2999_v29, %v2998_v27  ;;  %v1913_v12 = vld [vmem:[%s5374_s6 + $0x38] sm:$0xff]  ;;  %v1923_v27 = vld [vmem:[%s5374_s6 + $0x88] sm:$0xff]  ;;  %v1924_v29 = vld [vmem:[%s5374_s6 + $0x90] sm:$0xff] }
 0x358   : > { %3550 = vmatprep.subr.bf16.mxu0 %v3549_v31  ;;  %3583 = vmatprep.subr.bf16.mxu1 %v3939_v59  ;;  %v3611_v13 = vpack.c.bf16 %v1913_v12, %v1912_v11  ;;  %v3022_v11 = vld [vmem:[%s5374_s6 + $0x220] sm:$0xff]  ;;  %v3023_v12 = vld [vmem:[%s5374_s6 + $0x228] sm:$0xff] }
 0x35b   : > { %3552 = vmatpush1.bf16.msra.mxu0 %v3551_v35  ;;  %3585 = vmatpush1.bf16.msra.mxu1 %v3584_v15  ;;  %v3673_v35 = vpack.c.bf16 %v2216_v34, %v2214_v33  ;;  %v1915_v15 = vld [vmem:[%s5374_s6 + $0x48] sm:$0xff] }
 0x35c   : > { %3554 = vmatprep.subr.bf16.mxu0 %v3553_v36  ;;  %3586 = vmatprep.subr.bf16.mxu1 %v3939_v59  ;;  %v2215_v36 = vld [vmem:[%s5375_s7 + $0x10] sm:$0xff]  ;;  %v3614_v16 = vpack.c.bf16 %v1915_v15, %v1914_v14  ;;  %v1927_v33 = vld [vmem:[%s5374_s6 + $0xa8] sm:$0xff]  ;;  %v3025_v15 = vld [vmem:[%s5374_s6 + $0x238] sm:$0xff] }
 0x35d   : > { %v3675_v39 = vpack.c.bf16 %v2215_v36, %v2213_v46  ;;  %v1928_v46 = vld [vmem:[%s5374_s6 + $0xb0] sm:$0xff] }
 0x35e   : > { %v3024_v14 = vld [vmem:[%s5374_s6 + $0x230] sm:$0xff] }
 0x35f   : > { %3556 = vmatpush1.bf16.msra.mxu0 %v3555_v42  ;;  %3588 = vmatpush1.bf16.msra.mxu1 %v3587_v18  ;;  %v2217_v42 = vld [vmem:[%s5375_s7 + $0x20] sm:$0xff]  ;;  %v1917_v18 = vld [vmem:[%s5374_s6 + $0x58] sm:$0xff] }
 0x360   : > { %3558 = vmatprep.subr.bf16.mxu0 %v3557_v43  ;;  %3589 = vmatprep.subr.bf16.mxu1 %v3939_v59  ;;  %v2219_v43 = vld [vmem:[%s5375_s7 + $0x30] sm:$0xff]  ;;  %v3617_v19 = vpack.c.bf16 %v1917_v18, %v1916_v17 }
 0x361   : > { %v3679_v47 = vpack.c.bf16 %v2219_v43, %v2217_v42  ;;  %v3004_v42 = vld [vmem:[%s5374_s6 + $0x190] sm:$0xff]  ;;  %v3005_v43 = vld [vmem:[%s5374_s6 + $0x198] sm:$0xff] }
 0x363   : > { %3560 = vmatpush1.bf16.msra.mxu0 %v3559_v49  ;;  %3591 = vmatpush1.bf16.msra.mxu1 %v3590_v21  ;;  %v2975_v49 = vld [vmem:[%s5370_s2 + $0x2] ss:$4 sm:$0x3]  ;;  %v1919_v21 = vld [vmem:[%s5374_s6 + $0x68] sm:$0xff] }
 0x364   : > { %3562 = vmatprep.subr.bf16.mxu0 %v3561_v50  ;;  %3592 = vmatprep.subr.bf16.mxu1 %v3939_v59  ;;  %v1887_v50 = vrot.slane %v2975_v49, %v4280_v1  ;;  %v1891_v52 = vrot.slane %v2975_v49, %v4285_v3  ;;  %v1906_v1 = vld [vmem:[%s5374_s6] sm:$0xff]  ;;  %v1907_v3 = vld [vmem:[%s5374_s6 + $0x8] sm:$0xff]  ;;  %v3620_v22 = vpack.c.bf16 %v1919_v21, %v1918_v20  ;;  %v2223_v20 = vld [vmem:[%s5375_s7 + $0x50] sm:$0xff] }
 0x365   : > { %v3602_v0 = vpack.c.bf16 %v1907_v3, %v1906_v1  ;;  %v3007_v49 = vld [vmem:[%s5374_s6 + $0x1a8] sm:$0xff]  ;;  %v3013_v1 = vld [vmem:[%s5374_s6 + $0x1d8] sm:$0xff] }
 0x367   : > { %3564 = vmatpush1.bf16.msra.mxu0 %v3563_v53  ;;  %3594 = vmatpush1.bf16.msra.mxu1 %v3593_v24  ;;  %v1921_v24 = vld [vmem:[%s5374_s6 + $0x78] sm:$0xff] }
 0x368   : > { %3595 = vmatprep.subr.bf16.mxu1 %v3939_v59  ;;  %3674 = vmatprep.subr.bf16.mxu0 %v3673_v35  ;;  %v3623_v25 = vpack.c.bf16 %v1921_v24, %v1920_v23  ;;  %v1929_v35 = vld [vmem:[%s5374_s6 + $0xb8] sm:$0xff] }
 0x369   : > { %v3635_v36 = vpack.c.bf16 %v1929_v35, %v1928_v46  ;;  %v3036_v35 = vld [vmem:[%s5376_s8 + $0x100] sm:$0xff] }
 0x36a   : > { %1873 = vmatmul.mubr.f32.vlgmr.msra.gmra.mrb[2].mxu0 %v1803_v55 }
 0x36b   : > { %2293 = vmatprep.mubr.f32.mxu0 %v3938_v40  ;;  %3597 = vmatpush1.bf16.msra.mxu1 %v3596_v28  ;;  %v3626_v28 = vpack.c.bf16 %v1923_v27, %v1922_v26  ;;  %v3030_v27 = vld [vmem:[%s5376_s8 + $0xd0] sm:$0xff] }
 0x36c   : > { %3598 = vmatprep.subr.bf16.mxu1 %v3939_v59  ;;  %3676 = vmatpush1.bf16.msra.mxu0 %v3675_v39 }
 0x36d   : > { %3678 = vmatprep.subr.bf16.mxu0 %v3677_v41  ;;  %v3638_v41 = vpack.c.bf16 %v3003_v38, %v3002_v37  ;;  %v3038_v38 = vld [vmem:[%s5376_s8 + $0x110] sm:$0xff] }
 0x36f   : > { %3600 = vmatpush1.bf16.msra.mxu1 %v3599_v30  ;;  %v1925_v30 = vld [vmem:[%s5374_s6 + $0x98] sm:$0xff] }
 0x370   : > { %3601 = vmatprep.subr.bf16.mxu1 %v3939_v59  ;;  %3680 = vmatpush1.bf16.msra.mxu0 %v3679_v47  ;;  %v3641_v47 = vpack.c.bf16 %v3005_v43, %v3004_v42  ;;  %v3040_v42 = vld [vmem:[%s5376_s8 + $0x120] sm:$0xff]  ;;  %v3041_v43 = vld [vmem:[%s5376_s8 + $0x128] sm:$0xff] }
 0x371   : > { %3682 = vmatprep.subr.bf16.mxu0 %v3681_v48  ;;  %v3006_v48 = vld [vmem:[%s5374_s6 + $0x1a0] sm:$0xff] }
 0x410   : > { %v1671_v31 = vpop.f32.mrb[2].mxu1 }
 0x411   : > { %v1673_v32 = vpop.f32.mrb[3].mxu1 }
 0x43d   : > { %v1874_v51 = vpop.f32.mrb[2].mxu0 }
 0x43e   : > { %v3805_v53 = vadd.f32 %v1874_v51, %v1671_v31  ;;  %v1876_v54 = vpop.f32.mrb[3].mxu0  ;;  %v3629_v31 = vpack.c.bf16 %v1925_v30, %v1924_v29  ;;  %v3008_v51 = vld [vmem:[%s5374_s6 + $0x1b0] sm:$0xff]  ;;  %v3032_v30 = vld [vmem:[%s5376_s8 + $0xe0] sm:$0xff] }
 0x43f   : > { %v3806_v55 = vadd.f32 %v1876_v54, %v1673_v32  ;;  %v1926_v32 = vld [vmem:[%s5374_s6 + $0xa0] sm:$0xff] }
 0x440   : > { %v4867_v56 = vadd.f32 %v3805_v53, %v1887_v50  ;;  %v3632_v34 = vpack.c.bf16 %v1927_v33, %v1926_v32  ;;  %v3644_v50 = vpack.c.bf16 %v3007_v49, %v3006_v48  ;;  %v3010_v54 = vld [vmem:[%s5374_s6 + $0x1c0] sm:$0xff]  ;;  %v3034_v33 = vld [vmem:[%s5376_s8 + $0xf0] sm:$0xff] }
 0x441   : > { %v4869_v57 = vadd.f32 %v3806_v55, %v1891_v52  ;;  %v3009_v52 = vld [vmem:[%s5374_s6 + $0x1b8] sm:$0xff]  ;;  %v3011_v55 = vld [vmem:[%s5374_s6 + $0x1c8] sm:$0xff]  ;;  %v3044_v49 = vld [vmem:[%s5376_s8 + $0x140] sm:$0xff] }
 0x442   : > { %v1898_v58 = vrot.slane %v4867_v56, 7  ;;  %v3647_v53 = vpack.c.bf16 %v3009_v52, %v3008_v51  ;;  %v3046_v52 = vld [vmem:[%s5376_s8 + $0x150] sm:$0xff] }
 0x443   : > { %v1899_v60 = vrot.slane %v4869_v57, 7 }
 0x444   : > { %1902 = vst [vmem:[#allocation5] sm:$0x1e] %v1898_v58  ;;  %v3650_v58 = vpack.c.bf16 %v3011_v55, %v3010_v54  ;;  %v3048_v55 = vld [vmem:[%s5376_s8 + $0x160] sm:$0xff] }
 0x445   : > { %1903 = vst.msk [vmem:[#allocation5 + $0x8] sm:$0x1e] %vm1495_vm5, %v1899_v60  ;;  %v3012_v60 = vld [vmem:[%s5374_s6 + $0x1d0] sm:$0xff] }
 0x446   : > { %v3653_v3 = vpack.c.bf16 %v3013_v1, %v3012_v60  ;;  %v3050_v60 = vld [vmem:[%s5376_s8 + $0x170] sm:$0xff] }
 0x44b   : > { %v1930_v61 = vld [vmem:[#allocation5] sm:$0x1e] }
 0x44c   : > { %v1931_v62 = vld [vmem:[#allocation5 + $0x8] sm:$0x1e]  ;;  %v1959_v2 = vrot.slane %v1930_v61, 1  ;;  %v1904_v44 = vld [vmem:[#allocation5] sm:$0xf]  ;;  %v3014_v61 = vld [vmem:[%s5374_s6 + $0x1e0] sm:$0xff] }
 0x44d   : > { %v1960_v63 = vrot.slane %v1931_v62, 1  ;;  %v1905_v6 = vld [vmem:[#allocation5 + $0x8] sm:$0xf]  ;;  %v3015_v62 = vld [vmem:[%s5374_s6 + $0x1e8] sm:$0xff]  ;;  %v2107_v17 = vld [vmem:[#allocation5] sm:$0x3c] }
 0x44e   : > { %v2108_v39 = vld [vmem:[#allocation5 + $0x8] sm:$0x3c]  ;;  %v2136_v18 = vrot.slane %v2107_v17, 2 }
 0x44f   : > { %3000 = vmatprep.mubr.msk.f32.mxu1 %vm908_vm3, %v1960_v63  ;;  %v2137_v45 = vrot.slane %v2108_v39, 2  ;;  %v3656_v63 = vpack.c.bf16 %v3015_v62, %v3014_v61  ;;  %v3039_v39 = vld [vmem:[%s5376_s8 + $0x118] sm:$0xff]  ;;  %v2620_v62 = vld [vmem:[%s5377_s9 + $0x8] sm:$0xff] }
 0x450   : > { %2029 = vmatmul.mubr.f32.vlgmr.msra.gmra.mrb[4].mxu1 %v1959_v2  ;;  %v3017_v2 = vld [vmem:[%s5374_s6 + $0x1f8] sm:$0xff] }
 0x451   : > { %3603 = vmatpush1.bf16.msra.mxu1 %v3602_v0  ;;  %3001 = vmatprep.mubr.msk.f32.mxu1 %vm908_vm3, %v1905_v6  ;;  %v3016_v0 = vld [vmem:[%s5374_s6 + $0x1f0] sm:$0xff]  ;;  %v3019_v6 = vld [vmem:[%s5374_s6 + $0x208] sm:$0xff] }
 0x452   : > { %3604 = vmatprep.subr.bf16.mxu1 %v3939_v59  ;;  %v3659_v4 = vpack.c.bf16 %v3017_v2, %v3016_v0  ;;  %v2619_v0 = vld [vmem:[%s5377_s9] sm:$0xff] }
 0x455   : > { %3606 = vmatpush1.bf16.msra.mxu1 %v3605_v7  ;;  %v3662_v7 = vpack.c.bf16 %v3019_v6, %v3018_v5  ;;  %v2624_v5 = vld [vmem:[%s5377_s9 + $0x28] sm:$0xff]  ;;  %v2626_v6 = vld [vmem:[%s5377_s9 + $0x38] sm:$0xff] }
 0x456   : > { %3607 = vmatprep.subr.bf16.mxu1 %v3939_v59 }
 0x459   : > { %3609 = vmatpush1.bf16.msra.mxu1 %v3608_v10  ;;  %v3665_v10 = vpack.c.bf16 %v3021_v9, %v3020_v8  ;;  %v3797_v8 = vpack.c.bf16 %v2626_v6, %v2624_v5  ;;  %v2623_v9 = vld [vmem:[%s5377_s9 + $0x20] sm:$0xff]  ;;  %v3056_v5 = vld [vmem:[%s5376_s8 + $0x190] sm:$0xff]  ;;  %v3057_v6 = vld [vmem:[%s5376_s8 + $0x198] sm:$0xff] }
 0x45a   : > { %3610 = vmatprep.subr.bf16.mxu1 %v3939_v59 }
 0x45d   : > { %3612 = vmatpush1.bf16.msra.mxu1 %v3611_v13  ;;  %v3668_v13 = vpack.c.bf16 %v3023_v12, %v3022_v11  ;;  %v2628_v11 = vld [vmem:[%s5377_s9 + $0x48] sm:$0xff]  ;;  %v2630_v12 = vld [vmem:[%s5377_s9 + $0x58] sm:$0xff] }
 0x45e   : > { %3613 = vmatprep.subr.bf16.mxu1 %v3939_v59 }
 0x461   : > { %3615 = vmatpush1.bf16.msra.mxu1 %v3614_v16  ;;  %v3671_v16 = vpack.c.bf16 %v3025_v15, %v3024_v14  ;;  %v3801_v14 = vpack.c.bf16 %v2630_v12, %v2628_v11  ;;  %v3059_v11 = vld [vmem:[%s5376_s8 + $0x1a8] sm:$0xff] }
 0x462   : > { %3616 = vmatprep.subr.bf16.mxu1 %v3939_v59 }
 0x465   : > { %3618 = vmatpush1.bf16.msra.mxu1 %v3617_v19  ;;  %v2221_v19 = vld [vmem:[%s5375_s7 + $0x40] sm:$0xff] }
 0x466   : > { %3619 = vmatprep.subr.bf16.mxu1 %v3939_v59  ;;  %v3683_v21 = vpack.c.bf16 %v2223_v20, %v2221_v19 }
 0x468   : > { %3684 = vmatpush1.bf16.msra.mxu0 %v3683_v21 }
 0x469   : > { %3621 = vmatpush1.bf16.msra.mxu1 %v3620_v22  ;;  %3685 = vmatprep.subr.bf16.mxu0 %v3939_v59  ;;  %v3028_v22 = vld [vmem:[%s5376_s8 + $0xc0] sm:$0xff] }
 0x46a   : > { %3622 = vmatprep.subr.bf16.mxu1 %v3939_v59 }
 0x46d   : > { %3624 = vmatpush1.bf16.msra.mxu1 %v3623_v25 }
 0x46e   : > { %3625 = vmatprep.subr.bf16.mxu1 %v3939_v59 }
 0x471   : > { %3627 = vmatpush1.bf16.msra.mxu1 %v3626_v28  ;;  %v3031_v28 = vld [vmem:[%s5376_s8 + $0xd8] sm:$0xff] }
 0x472   : > { %3628 = vmatprep.subr.bf16.mxu1 %v3939_v59  ;;  %v3689_v29 = vpack.c.bf16 %v3031_v28, %v3030_v27  ;;  %v2314_v27 = vld [vmem:[%s5376_s8 + $0x10] sm:$0xff]  ;;  %v2315_v28 = vld [vmem:[%s5376_s8 + $0x18] sm:$0xff] }
 0x475   : > { %3630 = vmatpush1.bf16.msra.mxu1 %v3629_v31  ;;  %v3033_v31 = vld [vmem:[%s5376_s8 + $0xe8] sm:$0xff] }
 0x476   : > { %3631 = vmatprep.subr.bf16.mxu1 %v3939_v59  ;;  %v3692_v32 = vpack.c.bf16 %v3033_v31, %v3032_v30  ;;  %v3725_v30 = vpack.c.bf16 %v2315_v28, %v2314_v27  ;;  %v2316_v31 = vld [vmem:[%s5376_s8 + $0x20] sm:$0xff]  ;;  %v3069_v27 = vld [vmem:[%s5376_s8 + $0x1f8] sm:$0xff] }
 0x479   : > { %3633 = vmatpush1.bf16.msra.mxu1 %v3632_v34  ;;  %v3035_v34 = vld [vmem:[%s5376_s8 + $0xf8] sm:$0xff] }
 0x47a   : > { %3634 = vmatprep.subr.bf16.mxu1 %v3939_v59  ;;  %v3695_v46 = vpack.c.bf16 %v3035_v34, %v3034_v33  ;;  %v2318_v34 = vld [vmem:[%s5376_s8 + $0x30] sm:$0xff] }
 0x47d   : > { %3636 = vmatpush1.bf16.msra.mxu1 %v3635_v36  ;;  %v3037_v36 = vld [vmem:[%s5376_s8 + $0x108] sm:$0xff] }
 0x47e   : > { %3637 = vmatprep.subr.bf16.mxu1 %v3939_v59  ;;  %v3698_v37 = vpack.c.bf16 %v3037_v36, %v3036_v35  ;;  %v2320_v36 = vld [vmem:[%s5376_s8 + $0x40] sm:$0xff] }
 0x480   : > { %2102 = vmatmul.mubr.f32.vlgmr.msra.gmra.mrb[4].mxu1 %v1904_v44  ;;  %v3704_v44 = vpack.c.bf16 %v3041_v43, %v3040_v42  ;;  %v2324_v43 = vld [vmem:[%s5376_s8 + $0x60] sm:$0xff] }
 0x481   : > { %3639 = vmatpush1.bf16.msra.mxu1 %v3638_v41  ;;  %3026 = vmatprep.mubr.msk.f32.mxu1 %vm908_vm3, %v2137_v45  ;;  %v3701_v41 = vpack.c.bf16 %v3039_v39, %v3038_v38  ;;  %v3042_v45 = vld [vmem:[%s5376_s8 + $0x130] sm:$0xff] }
 0x482   : > { %3640 = vmatprep.subr.bf16.mxu1 %v3939_v59  ;;  %v2322_v39 = vld [vmem:[%s5376_s8 + $0x50] sm:$0xff] }
 0x485   : > { %3642 = vmatpush1.bf16.msra.mxu1 %v3641_v47  ;;  %v3043_v47 = vld [vmem:[%s5376_s8 + $0x138] sm:$0xff] }
 0x486   : > { %3643 = vmatprep.subr.bf16.mxu1 %v3939_v59  ;;  %v3707_v48 = vpack.c.bf16 %v3043_v47, %v3042_v45  ;;  %v2326_v47 = vld [vmem:[%s5376_s8 + $0x70] sm:$0xff] }
 0x489   : > { %3645 = vmatpush1.bf16.msra.mxu1 %v3644_v50  ;;  %v3045_v50 = vld [vmem:[%s5376_s8 + $0x148] sm:$0xff] }
 0x48a   : > { %3646 = vmatprep.subr.bf16.mxu1 %v3939_v59  ;;  %v3710_v51 = vpack.c.bf16 %v3045_v50, %v3044_v49  ;;  %v2328_v50 = vld [vmem:[%s5376_s8 + $0x80] sm:$0xff] }
 0x48d   : > { %3648 = vmatpush1.bf16.msra.mxu1 %v3647_v53  ;;  %v3047_v53 = vld [vmem:[%s5376_s8 + $0x158] sm:$0xff] }
 0x48e   : > { %3649 = vmatprep.subr.bf16.mxu1 %v3939_v59  ;;  %v3713_v54 = vpack.c.bf16 %v3047_v53, %v3046_v52  ;;  %v2330_v53 = vld [vmem:[%s5376_s8 + $0x90] sm:$0xff] }
 0x491   : > { %3651 = vmatpush1.bf16.msra.mxu1 %v3650_v58  ;;  %v3049_v58 = vld [vmem:[%s5376_s8 + $0x168] sm:$0xff] }
 0x492   : > { %3652 = vmatprep.subr.bf16.mxu1 %v3939_v59  ;;  %v3716_v1 = vpack.c.bf16 %v3049_v58, %v3048_v55  ;;  %v2332_v58 = vld [vmem:[%s5376_s8 + $0xa0] sm:$0xff] }
 0x495   : > { %3654 = vmatpush1.bf16.msra.mxu1 %v3653_v3  ;;  %v3051_v3 = vld [vmem:[%s5376_s8 + $0x178] sm:$0xff] }
 0x496   : > { %3655 = vmatprep.subr.bf16.mxu1 %v3939_v59  ;;  %v3719_v61 = vpack.c.bf16 %v3051_v3, %v3050_v60  ;;  %v2333_v60 = vld [vmem:[%s5376_s8 + $0xa8] sm:$0xff]  ;;  %v2334_v3 = vld [vmem:[%s5376_s8 + $0xb0] sm:$0xff] }
 0x499   : > { %3657 = vmatpush1.bf16.msra.mxu1 %v3656_v63  ;;  %v2622_v63 = vld [vmem:[%s5377_s9 + $0x18] sm:$0xff] }
 0x49a   : > { %3658 = vmatprep.subr.bf16.mxu1 %v3939_v59  ;;  %v3793_v2 = vpack.c.bf16 %v2622_v63, %v2620_v62  ;;  %v3054_v63 = vld [vmem:[%s5376_s8 + $0x180] sm:$0xff] }
 0x49d   : > { %3660 = vmatpush1.bf16.msra.mxu1 %v3659_v4  ;;  %v2621_v4 = vld [vmem:[%s5377_s9 + $0x10] sm:$0xff] }
 0x49e   : > { %3661 = vmatprep.subr.bf16.mxu1 %v3939_v59 }
 0x4a1   : > { %3663 = vmatpush1.bf16.msra.mxu1 %v3662_v7  ;;  %v3795_v7 = vpack.c.bf16 %v2621_v4, %v2619_v0  ;;  %v3055_v0 = vld [vmem:[%s5376_s8 + $0x188] sm:$0xff] }
 0x4a2   : > { %3664 = vmatprep.subr.bf16.mxu1 %v3939_v59  ;;  %v3758_v4 = vpack.c.bf16 %v3055_v0, %v3054_v63 }
 0x4a5   : > { %3666 = vmatpush1.bf16.msra.mxu1 %v3665_v10  ;;  %v2625_v10 = vld [vmem:[%s5377_s9 + $0x30] sm:$0xff] }
 0x4a6   : > { %3667 = vmatprep.subr.bf16.mxu1 %v3939_v59 }
 0x4a9   : > { %3669 = vmatpush1.bf16.msra.mxu1 %v3668_v13  ;;  %v3799_v13 = vpack.c.bf16 %v2625_v10, %v2623_v9  ;;  %v3761_v9 = vpack.c.bf16 %v3057_v6, %v3056_v5  ;;  %v3058_v10 = vld [vmem:[%s5376_s8 + $0x1a0] sm:$0xff] }
 0x4aa   : > { %3670 = vmatprep.subr.bf16.mxu1 %v3939_v59  ;;  %v3764_v12 = vpack.c.bf16 %v3059_v11, %v3058_v10 }
 0x4ad   : > { %3672 = vmatpush1.bf16.msra.mxu1 %v3671_v16 }
 0x4ae   : > { %3794 = vmatprep.subr.bf16.mxu1 %v3793_v2 }
 0x4b0   : > { %2206 = vmatmul.mubr.f32.vlgmr.msra.gmra.mrb[4].mxu1 %v2136_v18 }
 0x4b1   : > { %2698 = vmatprep.mubr.f32.mxu1 %v3938_v40  ;;  %v3029_v40 = vld [vmem:[%s5376_s8 + $0xc8] sm:$0xff]  ;;  %3796 = vmatpush1.bf16.msra.mxu1 %v3795_v7 }
 0x4b2   : > { %v3686_v24 = vpack.c.bf16 %v3029_v40, %v3028_v22  ;;  %3798 = vmatprep.subr.bf16.mxu1 %v3797_v8 }
 0x4b5   : > { %3800 = vmatpush1.bf16.msra.mxu1 %v3799_v13  ;;  %v3060_v13 = vld [vmem:[%s5376_s8 + $0x1b0] sm:$0xff] }
 0x4b6   : > { %3802 = vmatprep.subr.bf16.mxu1 %v3801_v14  ;;  %v3061_v14 = vld [vmem:[%s5376_s8 + $0x1b8] sm:$0xff] }
 0x583   : > { %v2207_v23 = vpop.f32.mrb[4].mxu1 }
 0x584   : > { %v2212_v25 = vmax.f32 %v2207_v23, 0.0  ;;  %v2209_v26 = vpop.f32.mrb[5].mxu1 }
 0x586   : > { %3027 = vmatmul.mubr.msk.f32.vlgmr.msra.gmra.mrb[4].mxu0 %vm2225_vm6, %v2212_v25 }
 0x587   : > { %3687 = vmatpush1.bf16.msra.mxu0 %v3686_v24 }
 0x588   : > { %3688 = vmatprep.subr.bf16.mxu0 %v3939_v59 }
 0x58b   : > { %3690 = vmatpush1.bf16.msra.mxu0 %v3689_v29 }
 0x58c   : > { %3691 = vmatprep.subr.bf16.mxu0 %v3939_v59 }
 0x58f   : > { %3693 = vmatpush1.bf16.msra.mxu0 %v3692_v32  ;;  %v2317_v32 = vld [vmem:[%s5376_s8 + $0x28] sm:$0xff] }
 0x590   : > { %3694 = vmatprep.subr.bf16.mxu0 %v3939_v59  ;;  %v3728_v33 = vpack.c.bf16 %v2317_v32, %v2316_v31  ;;  %v3072_v32 = vld [vmem:[%s5376_s8 + $0x210] sm:$0xff] }
 0x593   : > { %3696 = vmatpush1.bf16.msra.mxu0 %v3695_v46  ;;  %v2319_v46 = vld [vmem:[%s5376_s8 + $0x38] sm:$0xff] }
 0x594   : > { %3697 = vmatprep.subr.bf16.mxu0 %v3939_v59  ;;  %v3731_v35 = vpack.c.bf16 %v2319_v46, %v2318_v34  ;;  %v3074_v46 = vld [vmem:[%s5376_s8 + $0x220] sm:$0xff] }
 0x597   : > { %3699 = vmatpush1.bf16.msra.mxu0 %v3698_v37  ;;  %v2321_v37 = vld [vmem:[%s5376_s8 + $0x48] sm:$0xff] }
 0x598   : > { %3700 = vmatprep.subr.bf16.mxu0 %v3939_v59  ;;  %v3734_v38 = vpack.c.bf16 %v2321_v37, %v2320_v36  ;;  %v3076_v37 = vld [vmem:[%s5376_s8 + $0x230] sm:$0xff] }
 0x59b   : > { %3702 = vmatpush1.bf16.msra.mxu0 %v3701_v41  ;;  %v2323_v41 = vld [vmem:[%s5376_s8 + $0x58] sm:$0xff] }
 0x59c   : > { %3703 = vmatprep.subr.bf16.mxu0 %v3939_v59  ;;  %v3737_v42 = vpack.c.bf16 %v2323_v41, %v2322_v39 }
 0x59f   : > { %3705 = vmatpush1.bf16.msra.mxu0 %v3704_v44  ;;  %v2325_v44 = vld [vmem:[%s5376_s8 + $0x68] sm:$0xff] }
 0x5a0   : > { %3706 = vmatprep.subr.bf16.mxu0 %v3939_v59  ;;  %v3740_v45 = vpack.c.bf16 %v2325_v44, %v2324_v43  ;;  %v2627_v43 = vld [vmem:[%s5377_s9 + $0x40] sm:$0xff]  ;;  %v2629_v44 = vld [vmem:[%s5377_s9 + $0x50] sm:$0xff] }
 0x5a3   : > { %3708 = vmatpush1.bf16.msra.mxu0 %v3707_v48  ;;  %v2327_v48 = vld [vmem:[%s5376_s8 + $0x78] sm:$0xff] }
 0x5a4   : > { %3709 = vmatprep.subr.bf16.mxu0 %v3939_v59  ;;  %v3743_v49 = vpack.c.bf16 %v2327_v48, %v2326_v47 }
 0x5a7   : > { %3711 = vmatpush1.bf16.msra.mxu0 %v3710_v51  ;;  %v2329_v51 = vld [vmem:[%s5376_s8 + $0x88] sm:$0xff] }
 0x5a8   : > { %3712 = vmatprep.subr.bf16.mxu0 %v3939_v59  ;;  %v3746_v52 = vpack.c.bf16 %v2329_v51, %v2328_v50 }
 0x5ab   : > { %3714 = vmatpush1.bf16.msra.mxu0 %v3713_v54  ;;  %v2331_v54 = vld [vmem:[%s5376_s8 + $0x98] sm:$0xff] }
 0x5ac   : > { %3715 = vmatprep.subr.bf16.mxu0 %v3939_v59  ;;  %v3749_v55 = vpack.c.bf16 %v2331_v54, %v2330_v53 }
 0x5af   : > { %3717 = vmatpush1.bf16.msra.mxu0 %v3716_v1  ;;  %v3752_v1 = vpack.c.bf16 %v2333_v60, %v2332_v58 }
 0x5b0   : > { %3718 = vmatprep.subr.bf16.mxu0 %v3939_v59 }
 0x5b3   : > { %3720 = vmatpush1.bf16.msra.mxu0 %v3719_v61  ;;  %v2335_v61 = vld [vmem:[%s5376_s8 + $0xb8] sm:$0xff] }
 0x5b4   : > { %3721 = vmatprep.subr.bf16.mxu0 %v3939_v59  ;;  %v3755_v62 = vpack.c.bf16 %v2335_v61, %v2334_v3 }
 0x659   : > { %v2295_v15 = vpop.f32.mrb[4].mxu0 }
 0x65a   : > { %v5168_v16 = vadd.f32 %v2295_v15, %v4867_v56  ;;  %v2297_v17 = vpop.f32.mrb[5].mxu0  ;;  %v2312_v56 = vld [vmem:[%s5376_s8] sm:$0xff]  ;;  %v3767_v15 = vpack.c.bf16 %v3061_v14, %v3060_v13 }
 0x65b   : > { %v5171_v18 = vadd.f32 %v2297_v17, %v4869_v57  ;;  %v2313_v57 = vld [vmem:[%s5376_s8 + $0x8] sm:$0xff]  ;;  %v3062_v17 = vld [vmem:[%s5376_s8 + $0x1c0] sm:$0xff] }
 0x65c   : > { %v2300_v19 = vmax.f32 %v5168_v16, 0.0  ;;  %v3722_v25 = vpack.c.bf16 %v2313_v57, %v2312_v56  ;;  %v3064_v56 = vld [vmem:[%s5376_s8 + $0x1d0] sm:$0xff]  ;;  %v3065_v57 = vld [vmem:[%s5376_s8 + $0x1d8] sm:$0xff] }
 0x65d   : > { %v2301_v20 = vmax.f32 %v5171_v18, 0.0 }
 0x65e   : > { %v2304_v21 = vrot.slane %v2300_v19, 7 }
 0x65f   : > { %v2305_v22 = vrot.slane %v2301_v20, 7 }
 0x660   : > { %2308 = vst [vmem:[#allocation5] sm:$0x1e] %v2304_v21  ;;  %v3063_v21 = vld [vmem:[%s5376_s8 + $0x1c8] sm:$0xff] }
 0x661   : > { %2309 = vst.msk [vmem:[#allocation5 + $0x8] sm:$0x1e] %vm1495_vm5, %v2305_v22  ;;  %v3770_v22 = vpack.c.bf16 %v3063_v21, %v3062_v17 }
 0x667   : > { %v2336_v40 = vld [vmem:[#allocation5] sm:$0x1e] }
 0x668   : > { %v2337_v23 = vld [vmem:[#allocation5 + $0x8] sm:$0x1e]  ;;  %v2365_v26 = vrot.slane %v2336_v40, 1  ;;  %v2310_v7 = vld [vmem:[#allocation5] sm:$0xf]  ;;  %v3773_v40 = vpack.c.bf16 %v3065_v57, %v3064_v56 }
 0x669   : > { %v2366_v24 = vrot.slane %v2337_v23, 1  ;;  %v2311_v29 = vld [vmem:[#allocation5 + $0x8] sm:$0xf]  ;;  %v3066_v23 = vld [vmem:[%s5376_s8 + $0x1e0] sm:$0xff]  ;;  %v2513_v41 = vld [vmem:[#allocation5] sm:$0x3c] }
 0x66a   : > { %v2514_v2 = vld [vmem:[#allocation5 + $0x8] sm:$0x3c] }
 0x66b   : > { %3052 = vmatprep.mubr.msk.f32.mxu0 %vm908_vm3, %v2366_v24  ;;  %v2543_v8 = vrot.slane %v2514_v2, 2  ;;  %v3067_v24 = vld [vmem:[%s5376_s8 + $0x1e8] sm:$0xff] }
 0x66c   : > { %2435 = vmatmul.mubr.f32.vlgmr.msra.gmra.mrb[6].mxu0 %v2365_v26  ;;  %v3068_v26 = vld [vmem:[%s5376_s8 + $0x1f0] sm:$0xff] }
 0x66d   : > { %3723 = vmatpush1.bf16.msra.mxu0 %v3722_v25  ;;  %3053 = vmatprep.mubr.msk.f32.mxu0 %vm908_vm3, %v2311_v29  ;;  %v3776_v25 = vpack.c.bf16 %v3067_v24, %v3066_v23  ;;  %v3779_v28 = vpack.c.bf16 %v3069_v27, %v3068_v26  ;;  %v3070_v29 = vld [vmem:[%s5376_s8 + $0x200] sm:$0xff] }
 0x66e   : > { %3724 = vmatprep.subr.bf16.mxu0 %v3939_v59 }
 0x671   : > { %3726 = vmatpush1.bf16.msra.mxu0 %v3725_v30  ;;  %v3071_v30 = vld [vmem:[%s5376_s8 + $0x208] sm:$0xff] }
 0x672   : > { %3727 = vmatprep.subr.bf16.mxu0 %v3939_v59  ;;  %v3782_v31 = vpack.c.bf16 %v3071_v30, %v3070_v29 }
 0x675   : > { %3729 = vmatpush1.bf16.msra.mxu0 %v3728_v33  ;;  %v3073_v33 = vld [vmem:[%s5376_s8 + $0x218] sm:$0xff] }
 0x676   : > { %3730 = vmatprep.subr.bf16.mxu0 %v3939_v59  ;;  %v3785_v34 = vpack.c.bf16 %v3073_v33, %v3072_v32 }
 0x679   : > { %3732 = vmatpush1.bf16.msra.mxu0 %v3731_v35  ;;  %v3075_v35 = vld [vmem:[%s5376_s8 + $0x228] sm:$0xff] }
 0x67a   : > { %3733 = vmatprep.subr.bf16.mxu0 %v3939_v59  ;;  %v3788_v36 = vpack.c.bf16 %v3075_v35, %v3074_v46 }
 0x67d   : > { %3735 = vmatpush1.bf16.msra.mxu0 %v3734_v38  ;;  %v3077_v38 = vld [vmem:[%s5376_s8 + $0x238] sm:$0xff] }
 0x67e   : > { %3736 = vmatprep.subr.bf16.mxu0 %v3939_v59  ;;  %v3791_v39 = vpack.c.bf16 %v3077_v38, %v3076_v37 }
 0x681   : > { %3738 = vmatpush1.bf16.msra.mxu0 %v3737_v42  ;;  %v2542_v42 = vrot.slane %v2513_v41, 2 }
 0x682   : > { %3739 = vmatprep.subr.bf16.mxu0 %v3939_v59 }
 0x685   : > { %3741 = vmatpush1.bf16.msra.mxu0 %v3740_v45  ;;  %v3803_v45 = vpack.c.bf16 %v2629_v44, %v2627_v43 }
 0x686   : > { %3742 = vmatprep.subr.bf16.mxu0 %v3939_v59 }
 0x687   : > { %3804 = vmatpush1.bf16.msra.mxu1 %v3803_v45 }
 0x689   : > { %3744 = vmatpush1.bf16.msra.mxu0 %v3743_v49 }
 0x68a   : > { %3745 = vmatprep.subr.bf16.mxu0 %v3939_v59 }
 0x68d   : > { %3747 = vmatpush1.bf16.msra.mxu0 %v3746_v52 }
 0x68e   : > { %3748 = vmatprep.subr.bf16.mxu0 %v3939_v59 }
 0x691   : > { %3750 = vmatpush1.bf16.msra.mxu0 %v3749_v55 }
 0x692   : > { %3751 = vmatprep.subr.bf16.mxu0 %v3939_v59 }
 0x695   : > { %3753 = vmatpush1.bf16.msra.mxu0 %v3752_v1 }
 0x696   : > { %3754 = vmatprep.subr.bf16.mxu0 %v3939_v59 }
 0x699   : > { %3756 = vmatpush1.bf16.msra.mxu0 %v3755_v62 }
 0x69a   : > { %3757 = vmatprep.subr.bf16.mxu0 %v3939_v59 }
 0x69c   : > { %2508 = vmatmul.mubr.f32.vlgmr.msra.gmra.mrb[6].mxu0 %v2310_v7 }
 0x69d   : > { %3759 = vmatpush1.bf16.msra.mxu0 %v3758_v4  ;;  %3078 = vmatprep.mubr.msk.f32.mxu0 %vm908_vm3, %v2543_v8 }
 0x69e   : > { %3760 = vmatprep.subr.bf16.mxu0 %v3939_v59 }
 0x6a1   : > { %3762 = vmatpush1.bf16.msra.mxu0 %v3761_v9 }
 0x6a2   : > { %3763 = vmatprep.subr.bf16.mxu0 %v3939_v59 }
 0x6a5   : > { %3765 = vmatpush1.bf16.msra.mxu0 %v3764_v12 }
 0x6a6   : > { %3766 = vmatprep.subr.bf16.mxu0 %v3939_v59 }
 0x6a9   : > { %3768 = vmatpush1.bf16.msra.mxu0 %v3767_v15 }
 0x6aa   : > { %3769 = vmatprep.subr.bf16.mxu0 %v3939_v59 }
 0x6ad   : > { %3771 = vmatpush1.bf16.msra.mxu0 %v3770_v22 }
 0x6ae   : > { %3772 = vmatprep.subr.bf16.mxu0 %v3939_v59 }
 0x6b1   : > { %3774 = vmatpush1.bf16.msra.mxu0 %v3773_v40 }
 0x6b2   : > { %3775 = vmatprep.subr.bf16.mxu0 %v3939_v59 }
 0x6b5   : > { %3777 = vmatpush1.bf16.msra.mxu0 %v3776_v25 }
 0x6b6   : > { %3778 = vmatprep.subr.bf16.mxu0 %v3939_v59 }
 0x6b9   : > { %3780 = vmatpush1.bf16.msra.mxu0 %v3779_v28 }
 0x6ba   : > { %3781 = vmatprep.subr.bf16.mxu0 %v3939_v59 }
 0x6bd   : > { %3783 = vmatpush1.bf16.msra.mxu0 %v3782_v31 }
 0x6be   : > { %3784 = vmatprep.subr.bf16.mxu0 %v3939_v59 }
 0x6c1   : > { %3786 = vmatpush1.bf16.msra.mxu0 %v3785_v34 }
 0x6c2   : > { %3787 = vmatprep.subr.bf16.mxu0 %v3939_v59 }
 0x6c5   : > { %3789 = vmatpush1.bf16.msra.mxu0 %v3788_v36 }
 0x6c6   : > { %3790 = vmatprep.subr.bf16.mxu0 %v3939_v59 }
 0x6c9   : > { %3792 = vmatpush1.bf16.msra.mxu0 %v3791_v39 }
 0x6cc   : > { %2612 = vmatmul.mubr.f32.vlgmr.msra.gmra.mrb[6].mxu0 %v2542_v42 }
 0x79f   : > { %v2613_v47 = vpop.f32.mrb[6].mxu0 }
 0x7a0   : > { %v2618_v48 = vmax.f32 %v2613_v47, 0.0  ;;  %v2615_v49 = vpop.f32.mrb[7].mxu0 }
 0x7a2   : > { %3079 = vmatmul.mubr.msk.f32.vlgmr.msra.gmra.mrb[6].mxu1 %vm2225_vm6, %v2618_v48 }
 0x875   : > { %v2700_v59 = vpop.f32.mrb[6].mxu1 }
 0x876   : > { %v2701_v50 = vadd.f32 %v2700_v59, %v2300_v19  ;;  %v2702_v51 = vpop.f32.mrb[7].mxu1 }
 0x877   : > { %v2703_v52 = vadd.f32 %v2702_v51, %v2301_v20 }
 0x878   : > { %v2705_v53 = vmax.f32 %v2701_v50, 0.0 }
 0x879   : > { %v2706_v54 = vmax.f32 %v2703_v52, 0.0 }
 0x87b   : > { %v2709_v55 = vcombine.low %v2705_v53, %v2706_v54 }
 0x87d   : > { %2714 = vst.msk [vmem:[%s409_s20] sm:$0xff] %vm2713_vm9, %v2709_v55 }
 0x87e PF: > { %s22_s13 = sadd.s32 1, %s3932_s13  }
 0x87f   : > { %p19_p5 = scmp.ge.s32.totalorder %s22_s13, 4  }
 0x881   :  { %21 = sbr.rel (!%p19_p5) target bundleno = 2 (0x2), region = 131 }
 0x888   :  { %2736 = vsyncpa [#allocation7], 1 }
 0x889   :  { %2738 = vsyncpa [#allocation7 + $0x1], 1 }
 0x88a   :  { %2739 = vsyncpa [#allocation9], 1 }

</bundles_post_ra>
